<compile_context>
chip_gen: v6e
topology: v6e:2x2x1
jax: 0.10.0
libtpu: 0.0.40
codegen_flags: <defaults>
</compile_context>

<pallas_src>
import functools

import jax
import jax.numpy as jnp
from jax.experimental import pallas as pl
from jax.experimental.pallas import tpu as pltpu


def _round_up(v, m):
    return (v + m - 1) // m * m


def make_multi_conv_kernel(channels, kernel_size, seq_len, block_n):
    """Builds the fused kernel for the whole layer stack (all sizes static)."""
    K = kernel_size
    pad = K - 1
    PA = _round_up(pad, 8) if pad > 0 else 0   # sublane-aligned left-pad region
    L = seq_len
    Nb = block_n
    num_layers = len(channels) - 1

    def kernel(*refs):
        x_ref = refs[0]
        w_refs = refs[1:1 + 5 * num_layers]
        out_ref = refs[1 + 5 * num_layers]
        scratch = refs[2 + 5 * num_layers:]
        xpad_refs = scratch[:num_layers]
        mpad_ref = scratch[num_layers]

        a = x_ref[...].astype(jnp.float32)              # [Nb, L, 1] raw input
        m = jnp.where(a == 0.0, 0.0, 1.0)               # initial mask (x != 0)

        for l in range(num_layers):
            cin, cout = channels[l], channels[l + 1]
            w_ref, b_ref, mb_ref, wd_ref, bd_ref = w_refs[5 * l:5 * l + 5]
            xp = xpad_refs[l]

            # Stage left-padded (x * mask) and the channel-summed mask in VMEM.
            xm = a * m                                   # [Nb, L, cin]
            if PA > 0:
                xp[:, pl.ds(0, PA), :] = jnp.zeros((Nb, PA, cin), jnp.float32)
                mpad_ref[:, pl.ds(0, PA), :] = jnp.zeros((Nb, PA, 1), jnp.float32)
            xp[:, pl.ds(PA, L), :] = xm
            mcol = jnp.sum(m, axis=-1, keepdims=True)    # [Nb, L, 1] channel sum
            mpad_ref[:, pl.ds(PA, L), :] = mcol

            # Causal conv over K taps (batched over Nb*L rows) + mask count.
            acc = jnp.zeros((Nb, L, cout), jnp.float32)
            cnt = jnp.zeros((Nb, L, 1), jnp.float32)
            for k in range(K):
                tap = xp[:, pl.ds(PA - pad + k, L), :]   # xm[t - pad + k]
                if cin == 1:
                    acc = acc + tap * w_ref[k]           # VPU broadcast (no MXU)
                else:
                    acc = acc + jnp.dot(
                        tap.reshape(Nb * L, cin), w_ref[k],
                        preferred_element_type=jnp.float32).reshape(Nb, L, cout)
                cnt = cnt + mpad_ref[:, pl.ds(PA - pad + k, L), :]

            # Partial-conv renormalization (mask_conv = count + frozen bias).
            mask_out = cnt + mb_ref[...]                 # [Nb, L, cout]
            holes = mask_out == 0.0
            mask_sum = jnp.where(holes, 1.0, mask_out)
            inv = pl.reciprocal(mask_sum, approx=False)  # EUP
            out = acc * inv + b_ref[...]                 # acc used directly (no -bias/+bias)
            out = jnp.where(holes, 0.0, out)
            # TODO(synk): nn.Dropout(0.2) is identity in eval mode; only ReLU applied.
            out = jnp.maximum(out, 0.0)

            # 1x1 downsample residual on the raw layer input, hole-masked.
            if cin == 1:
                res = a * wd_ref[...]                    # VPU broadcast
            else:
                res = jnp.dot(a.reshape(Nb * L, cin), wd_ref[...],
                              preferred_element_type=jnp.float32).reshape(Nb, L, cout)
            res = res + bd_ref[...]
            res = jnp.where(holes, 0.0, res)

            a = jnp.maximum(out + res, 0.0)              # next layer input
            m = jnp.where(holes, 0.0, 1.0)               # next layer (per-channel) mask

        out_ref[...] = a.astype(out_ref.dtype)

    return kernel, PA


def multi_conv_net(x_ncl, params, *, kernel_size, block_n=8):
    """x_ncl: [N, 1, L] (PyTorch NCL). Returns [N, C_last, L]."""
    N, _, L = x_ncl.shape
    channels = [params[0][0].shape[1]] + [p[0].shape[2] for p in params]
    K = kernel_size
    num_layers = len(params)
    c_last = channels[-1]

    Nb = min(block_n, N)
    n_pad = _round_up(N, Nb)
    x = jnp.transpose(x_ncl, (0, 2, 1)).astype(jnp.float32)     # -> [N, L, 1]
    if n_pad != N:
        x = jnp.pad(x, ((0, n_pad - N), (0, 0), (0, 0)))

    kernel, PA = make_multi_conv_kernel(channels, K, L, Nb)

    in_specs = [pl.BlockSpec((Nb, L, 1), lambda n: (n, 0, 0))]
    flat_params = []
    for l, (w, b, mb, wd, bd) in enumerate(params):
        cin, cout = channels[l], channels[l + 1]
        in_specs += [
            pl.BlockSpec((K, cin, cout), lambda n: (0, 0, 0)),   # input_conv weight
            pl.BlockSpec((1, 1, cout), lambda n: (0, 0, 0)),     # input_conv bias
            pl.BlockSpec((1, 1, cout), lambda n: (0, 0, 0)),     # mask_conv bias (frozen)
            pl.BlockSpec((cin, cout), lambda n: (0, 0)),         # downsample weight
            pl.BlockSpec((1, 1, cout), lambda n: (0, 0, 0)),     # downsample bias
        ]
        flat_params += [w, b, mb, wd, bd]

    scratch_shapes = (
        [pltpu.VMEM((Nb, PA + L, channels[l]), jnp.float32) for l in range(num_layers)]
        + [pltpu.VMEM((Nb, PA + L, 1), jnp.float32)]
    )

    grid_spec = pltpu.PrefetchScalarGridSpec(
        num_scalar_prefetch=0,
        grid=(n_pad // Nb,),
        in_specs=in_specs,
        out_specs=pl.BlockSpec((Nb, L, c_last), lambda n: (n, 0, 0)),
        scratch_shapes=scratch_shapes,
    )

    out = pl.pallas_call(
        kernel,
        out_shape=jax.ShapeDtypeStruct((n_pad, L, c_last), jnp.float32),
        grid_spec=grid_spec,
        compiler_params=pltpu.CompilerParams(
            dimension_semantics=("parallel",),
            vmem_limit_bytes=32 * 1024 * 1024),
    )(x, *flat_params)

    out = out[:N]
    return jnp.transpose(out, (0, 2, 1))                        # -> [N, C_last, L]


def init_params(key, channels, kernel_size):
    """PyTorch-default Conv1d init, stored in the fused kernel layout:
       w  [K, Cin, Cout]  input_conv weight (tap-major)
       b  [1, 1, Cout]    input_conv bias
       mb [1, 1, Cout]    mask_conv bias (weights are all-ones -> folded into sums;
                          bias is frozen in PyTorch but default-initialized)
       wd [Cin, Cout]     downsample (1x1 conv) weight
       bd [1, 1, Cout]    downsample bias
    """
    params = []
    for i in range(len(channels) - 1):
        cin, cout = channels[i], channels[i + 1]
        key, k1, k2, k3, k4, k5 = jax.random.split(key, 6)
        bound = 1.0 / float(cin * kernel_size) ** 0.5
        w = jax.random.uniform(k1, (kernel_size, cin, cout), jnp.float32, -bound, bound)
        b = jax.random.uniform(k2, (1, 1, cout), jnp.float32, -bound, bound)
        mb = jax.random.uniform(k3, (1, 1, cout), jnp.float32, -bound, bound)
        bound_d = 1.0 / float(cin) ** 0.5
        wd = jax.random.uniform(k4, (cin, cout), jnp.float32, -bound_d, bound_d)
        bd = jax.random.uniform(k5, (1, 1, cout), jnp.float32, -bound_d, bound_d)
        params.append((w, b, mb, wd, bd))
    return params


if __name__ == "__main__":
    N, L = 4, 128
    channels = [1, 8, 16]
    kernel_size = 3

    key = jax.random.PRNGKey(0)
    kx, kz, kp = jax.random.split(key, 3)

    x = jax.random.normal(kx, (N, 1, L), jnp.float32)
    # zero out ~30% of samples so the mask / partial-conv path is exercised
    keep = jax.random.bernoulli(kz, 0.7, (N, 1, L))
    x = jnp.where(keep, x, 0.0)

    params = init_params(kp, channels, kernel_size)

    fwd = jax.jit(functools.partial(multi_conv_net, kernel_size=kernel_size, block_n=2))
    out = fwd(x, params)
    out = jax.block_until_ready(out)
    assert out.shape == (N, channels[-1], L)
    print("KERNEL_OK")
</pallas_src>

<mosaic_0001>
module attributes {stable_mosaic.version = 11 : i64} {
  func.func @kernel(%arg0: i32, %arg1: memref<2x128x1xf32, #tpu.memory_space<vmem>>, %arg2: memref<3x1x8xf32, #tpu.memory_space<vmem>>, %arg3: memref<1x1x8xf32, #tpu.memory_space<vmem>>, %arg4: memref<1x1x8xf32, #tpu.memory_space<vmem>>, %arg5: memref<1x8xf32, #tpu.memory_space<vmem>>, %arg6: memref<1x1x8xf32, #tpu.memory_space<vmem>>, %arg7: memref<3x8x16xf32, #tpu.memory_space<vmem>>, %arg8: memref<1x1x16xf32, #tpu.memory_space<vmem>>, %arg9: memref<1x1x16xf32, #tpu.memory_space<vmem>>, %arg10: memref<8x16xf32, #tpu.memory_space<vmem>>, %arg11: memref<1x1x16xf32, #tpu.memory_space<vmem>>, %arg12: memref<2x128x16xf32, #tpu.memory_space<vmem>>, %arg13: memref<2x136x1xf32, #tpu.memory_space<vmem>>, %arg14: memref<2x136x8xf32, #tpu.memory_space<vmem>>, %arg15: memref<2x136x1xf32, #tpu.memory_space<vmem>>) attributes {dimension_semantics = [#tpu.dimension_semantics<parallel>], iteration_bounds = array<i64: 2>, scalar_prefetch = 0 : i64, scratch_operands = 3 : i64, tpu.core_type = #tpu.core_type<tc>, window_params = [{transform_indices = @transform_0, window_bounds = array<i64: 2, 128, 1>}, {pipeline_mode = #tpu.pipeline_mode<synchronous>, transform_indices = @transform_1, window_bounds = array<i64: 3, 1, 8>}, {pipeline_mode = #tpu.pipeline_mode<synchronous>, transform_indices = @transform_2, window_bounds = array<i64: 1, 1, 8>}, {pipeline_mode = #tpu.pipeline_mode<synchronous>, transform_indices = @transform_3, window_bounds = array<i64: 1, 1, 8>}, {pipeline_mode = #tpu.pipeline_mode<synchronous>, transform_indices = @transform_4, window_bounds = array<i64: 1, 8>}, {pipeline_mode = #tpu.pipeline_mode<synchronous>, transform_indices = @transform_5, window_bounds = array<i64: 1, 1, 8>}, {pipeline_mode = #tpu.pipeline_mode<synchronous>, transform_indices = @transform_6, window_bounds = array<i64: 3, 8, 16>}, {pipeline_mode = #tpu.pipeline_mode<synchronous>, transform_indices = @transform_7, window_bounds = array<i64: 1, 1, 16>}, {pipeline_mode = #tpu.pipeline_mode<synchronous>, transform_indices = @transform_8, window_bounds = array<i64: 1, 1, 16>}, {pipeline_mode = #tpu.pipeline_mode<synchronous>, transform_indices = @transform_9, window_bounds = array<i64: 8, 16>}, {pipeline_mode = #tpu.pipeline_mode<synchronous>, transform_indices = @transform_10, window_bounds = array<i64: 1, 1, 16>}, {transform_indices = @transform_11, window_bounds = array<i64: 2, 128, 16>}]} {
    %c0 = arith.constant 0 : index
    %c0_0 = arith.constant 0 : index
    %c0_1 = arith.constant 0 : index
    %0 = vector.load %arg1[%c0, %c0_0, %c0_1] : memref<2x128x1xf32, #tpu.memory_space<vmem>>, vector<2x128x1xf32>
    %cst = arith.constant 0.000000e+00 : f32
    %1 = vector.broadcast %cst : f32 to vector<2x128x1xf32>
    %2 = arith.cmpf oeq, %0, %1 : vector<2x128x1xf32>
    %cst_2 = arith.constant 0.000000e+00 : f32
    %cst_3 = arith.constant 1.000000e+00 : f32
    %3 = vector.broadcast %cst_2 : f32 to vector<2x128x1xf32>
    %4 = vector.broadcast %cst_3 : f32 to vector<2x128x1xf32>
    %5 = arith.select %2, %3, %4 : vector<2x128x1xi1>, vector<2x128x1xf32>
    %6 = arith.mulf %0, %5 : vector<2x128x1xf32>
    %cst_4 = arith.constant 0.000000e+00 : f32
    %7 = vector.broadcast %cst_4 : f32 to vector<2x8x1xf32>
    %c0_5 = arith.constant 0 : index
    %c0_6 = arith.constant 0 : index
    %c0_7 = arith.constant 0 : index
    %8 = vector.load %arg13[%c0_5, %c0_6, %c0_7] : memref<2x136x1xf32, #tpu.memory_space<vmem>>, vector<2x8x1xf32>
    tpu.vector_store %arg13[%c0_5, %c0_6, %c0_7], %7 {strides = array<i32>} : memref<2x136x1xf32, #tpu.memory_space<vmem>>, vector<2x8x1xf32>,
    %cst_8 = arith.constant 0.000000e+00 : f32
    %9 = vector.broadcast %cst_8 : f32 to vector<2x8x1xf32>
    %c0_9 = arith.constant 0 : index
    %c0_10 = arith.constant 0 : index
    %c0_11 = arith.constant 0 : index
    %10 = vector.load %arg15[%c0_9, %c0_10, %c0_11] : memref<2x136x1xf32, #tpu.memory_space<vmem>>, vector<2x8x1xf32>
    tpu.vector_store %arg15[%c0_9, %c0_10, %c0_11], %9 {strides = array<i32>} : memref<2x136x1xf32, #tpu.memory_space<vmem>>, vector<2x8x1xf32>,
    %c0_12 = arith.constant 0 : index
    %c8 = arith.constant 8 : index
    %c0_13 = arith.constant 0 : index
    %11 = vector.load %arg13[%c0_12, %c8, %c0_13] : memref<2x136x1xf32, #tpu.memory_space<vmem>>, vector<2x128x1xf32>
    tpu.vector_store %arg13[%c0_12, %c8, %c0_13], %6 {strides = array<i32>} : memref<2x136x1xf32, #tpu.memory_space<vmem>>, vector<2x128x1xf32>,
    %cst_14 = arith.constant dense<0.000000e+00> : vector<2x128xf32>
    %12 = vector.multi_reduction <add>, %5, %cst_14 [2] : vector<2x128x1xf32> to vector<2x128xf32>
    %13 = vector.shape_cast %12 : vector<2x128xf32> to vector<2x128x1xf32>
    %c0_15 = arith.constant 0 : index
    %c8_16 = arith.constant 8 : index
    %c0_17 = arith.constant 0 : index
    %14 = vector.load %arg15[%c0_15, %c8_16, %c0_17] : memref<2x136x1xf32, #tpu.memory_space<vmem>>, vector<2x128x1xf32>
    tpu.vector_store %arg15[%c0_15, %c8_16, %c0_17], %13 {strides = array<i32>} : memref<2x136x1xf32, #tpu.memory_space<vmem>>, vector<2x128x1xf32>,
    %cst_18 = arith.constant 0.000000e+00 : f32
    %15 = vector.broadcast %cst_18 : f32 to vector<2x128x8xf32>
    %cst_19 = arith.constant 0.000000e+00 : f32
    %16 = vector.broadcast %cst_19 : f32 to vector<2x128x1xf32>
    %c0_20 = arith.constant 0 : index
    %c6 = arith.constant 6 : index
    %c0_21 = arith.constant 0 : index
    %17 = vector.load %arg13[%c0_20, %c6, %c0_21] : memref<2x136x1xf32, #tpu.memory_space<vmem>>, vector<2x128x1xf32>
    %c0_22 = arith.constant 0 : index
    %c0_23 = arith.constant 0 : index
    %c0_24 = arith.constant 0 : index
    %18 = vector.load %arg2[%c0_22, %c0_23, %c0_24] : memref<3x1x8xf32, #tpu.memory_space<vmem>>, vector<1x1x8xf32>
    %19 = vector.shape_cast %18 : vector<1x1x8xf32> to vector<1x8xf32>
    %20 = vector.shape_cast %19 : vector<1x8xf32> to vector<1x1x8xf32>
    %21 = vector.broadcast %17 : vector<2x128x1xf32> to vector<2x128x8xf32>
    %22 = vector.broadcast %20 : vector<1x1x8xf32> to vector<2x128x8xf32>
    %23 = arith.mulf %21, %22 : vector<2x128x8xf32>
    %24 = arith.addf %15, %23 : vector<2x128x8xf32>
    %c0_25 = arith.constant 0 : index
    %c6_26 = arith.constant 6 : index
    %c0_27 = arith.constant 0 : index
    %25 = vector.load %arg15[%c0_25, %c6_26, %c0_27] : memref<2x136x1xf32, #tpu.memory_space<vmem>>, vector<2x128x1xf32>
    %26 = arith.addf %16, %25 : vector<2x128x1xf32>
    %c0_28 = arith.constant 0 : index
    %c7 = arith.constant 7 : index
    %c0_29 = arith.constant 0 : index
    %27 = vector.load %arg13[%c0_28, %c7, %c0_29] : memref<2x136x1xf32, #tpu.memory_space<vmem>>, vector<2x128x1xf32>
    %c1 = arith.constant 1 : index
    %c0_30 = arith.constant 0 : index
    %c0_31 = arith.constant 0 : index
    %28 = vector.load %arg2[%c1, %c0_30, %c0_31] : memref<3x1x8xf32, #tpu.memory_space<vmem>>, vector<1x1x8xf32>
    %29 = vector.shape_cast %28 : vector<1x1x8xf32> to vector<1x8xf32>
    %30 = vector.shape_cast %29 : vector<1x8xf32> to vector<1x1x8xf32>
    %31 = vector.broadcast %27 : vector<2x128x1xf32> to vector<2x128x8xf32>
    %32 = vector.broadcast %30 : vector<1x1x8xf32> to vector<2x128x8xf32>
    %33 = arith.mulf %31, %32 : vector<2x128x8xf32>
    %34 = arith.addf %24, %33 : vector<2x128x8xf32>
    %c0_32 = arith.constant 0 : index
    %c7_33 = arith.constant 7 : index
    %c0_34 = arith.constant 0 : index
    %35 = vector.load %arg15[%c0_32, %c7_33, %c0_34] : memref<2x136x1xf32, #tpu.memory_space<vmem>>, vector<2x128x1xf32>
    %36 = arith.addf %26, %35 : vector<2x128x1xf32>
    %c0_35 = arith.constant 0 : index
    %c8_36 = arith.constant 8 : index
    %c0_37 = arith.constant 0 : index
    %37 = vector.load %arg13[%c0_35, %c8_36, %c0_37] : memref<2x136x1xf32, #tpu.memory_space<vmem>>, vector<2x128x1xf32>
    %c2 = arith.constant 2 : index
    %c0_38 = arith.constant 0 : index
    %c0_39 = arith.constant 0 : index
    %38 = vector.load %arg2[%c2, %c0_38, %c0_39] : memref<3x1x8xf32, #tpu.memory_space<vmem>>, vector<1x1x8xf32>
    %39 = vector.shape_cast %38 : vector<1x1x8xf32> to vector<1x8xf32>
    %40 = vector.shape_cast %39 : vector<1x8xf32> to vector<1x1x8xf32>
    %41 = vector.broadcast %37 : vector<2x128x1xf32> to vector<2x128x8xf32>
    %42 = vector.broadcast %40 : vector<1x1x8xf32> to vector<2x128x8xf32>
    %43 = arith.mulf %41, %42 : vector<2x128x8xf32>
    %44 = arith.addf %34, %43 : vector<2x128x8xf32>
    %c0_40 = arith.constant 0 : index
    %c8_41 = arith.constant 8 : index
    %c0_42 = arith.constant 0 : index
    %45 = vector.load %arg15[%c0_40, %c8_41, %c0_42] : memref<2x136x1xf32, #tpu.memory_space<vmem>>, vector<2x128x1xf32>
    %46 = arith.addf %36, %45 : vector<2x128x1xf32>
    %c0_43 = arith.constant 0 : index
    %c0_44 = arith.constant 0 : index
    %c0_45 = arith.constant 0 : index
    %47 = vector.load %arg4[%c0_43, %c0_44, %c0_45] : memref<1x1x8xf32, #tpu.memory_space<vmem>>, vector<1x1x8xf32>
    %48 = vector.broadcast %46 : vector<2x128x1xf32> to vector<2x128x8xf32>
    %49 = vector.broadcast %47 : vector<1x1x8xf32> to vector<2x128x8xf32>
    %50 = arith.addf %48, %49 : vector<2x128x8xf32>
    %cst_46 = arith.constant 0.000000e+00 : f32
    %51 = vector.broadcast %cst_46 : f32 to vector<2x128x8xf32>
    %52 = arith.cmpf oeq, %50, %51 : vector<2x128x8xf32>
    %cst_47 = arith.constant 1.000000e+00 : f32
    %53 = vector.broadcast %cst_47 : f32 to vector<2x128x8xf32>
    %54 = arith.select %52, %53, %50 : vector<2x128x8xi1>, vector<2x128x8xf32>
    %55 = tpu.reciprocal %54 : vector<2x128x8xf32> -> vector<2x128x8xf32>
    %56 = arith.mulf %44, %55 : vector<2x128x8xf32>
    %c0_48 = arith.constant 0 : index
    %c0_49 = arith.constant 0 : index
    %c0_50 = arith.constant 0 : index
    %57 = vector.load %arg3[%c0_48, %c0_49, %c0_50] : memref<1x1x8xf32, #tpu.memory_space<vmem>>, vector<1x1x8xf32>
    %58 = vector.broadcast %57 : vector<1x1x8xf32> to vector<2x128x8xf32>
    %59 = arith.addf %56, %58 : vector<2x128x8xf32>
    %cst_51 = arith.constant 0.000000e+00 : f32
    %60 = vector.broadcast %cst_51 : f32 to vector<2x128x8xf32>
    %61 = arith.select %52, %60, %59 : vector<2x128x8xi1>, vector<2x128x8xf32>
    %cst_52 = arith.constant 0.000000e+00 : f32
    %62 = vector.broadcast %cst_52 : f32 to vector<2x128x8xf32>
    %63 = arith.maximumf %61, %62 : vector<2x128x8xf32>
    %c0_53 = arith.constant 0 : index
    %c0_54 = arith.constant 0 : index
    %64 = vector.load %arg5[%c0_53, %c0_54] : memref<1x8xf32, #tpu.memory_space<vmem>>, vector<1x8xf32>
    %65 = vector.shape_cast %64 : vector<1x8xf32> to vector<1x1x8xf32>
    %66 = vector.broadcast %0 : vector<2x128x1xf32> to vector<2x128x8xf32>
    %67 = vector.broadcast %65 : vector<1x1x8xf32> to vector<2x128x8xf32>
    %68 = arith.mulf %66, %67 : vector<2x128x8xf32>
    %c0_55 = arith.constant 0 : index
    %c0_56 = arith.constant 0 : index
    %c0_57 = arith.constant 0 : index
    %69 = vector.load %arg6[%c0_55, %c0_56, %c0_57] : memref<1x1x8xf32, #tpu.memory_space<vmem>>, vector<1x1x8xf32>
    %70 = vector.broadcast %69 : vector<1x1x8xf32> to vector<2x128x8xf32>
    %71 = arith.addf %68, %70 : vector<2x128x8xf32>
    %cst_58 = arith.constant 0.000000e+00 : f32
    %72 = vector.broadcast %cst_58 : f32 to vector<2x128x8xf32>
    %73 = arith.select %52, %72, %71 : vector<2x128x8xi1>, vector<2x128x8xf32>
    %74 = arith.addf %63, %73 : vector<2x128x8xf32>
    %cst_59 = arith.constant 0.000000e+00 : f32
    %75 = vector.broadcast %cst_59 : f32 to vector<2x128x8xf32>
    %76 = arith.maximumf %74, %75 : vector<2x128x8xf32>
    %cst_60 = arith.constant 0.000000e+00 : f32
    %cst_61 = arith.constant 1.000000e+00 : f32
    %77 = vector.broadcast %cst_60 : f32 to vector<2x128x8xf32>
    %78 = vector.broadcast %cst_61 : f32 to vector<2x128x8xf32>
    %79 = arith.select %52, %77, %78 : vector<2x128x8xi1>, vector<2x128x8xf32>
    %80 = arith.mulf %76, %79 : vector<2x128x8xf32>
    %cst_62 = arith.constant 0.000000e+00 : f32
    %81 = vector.broadcast %cst_62 : f32 to vector<2x8x8xf32>
    %c0_63 = arith.constant 0 : index
    %c0_64 = arith.constant 0 : index
    %c0_65 = arith.constant 0 : index
    %82 = vector.load %arg14[%c0_63, %c0_64, %c0_65] : memref<2x136x8xf32, #tpu.memory_space<vmem>>, vector<2x8x8xf32>
    tpu.vector_store %arg14[%c0_63, %c0_64, %c0_65], %81 {strides = array<i32>} : memref<2x136x8xf32, #tpu.memory_space<vmem>>, vector<2x8x8xf32>,
    %cst_66 = arith.constant 0.000000e+00 : f32
    %83 = vector.broadcast %cst_66 : f32 to vector<2x8x1xf32>
    %c0_67 = arith.constant 0 : index
    %c0_68 = arith.constant 0 : index
    %c0_69 = arith.constant 0 : index
    %84 = vector.load %arg15[%c0_67, %c0_68, %c0_69] : memref<2x136x1xf32, #tpu.memory_space<vmem>>, vector<2x8x1xf32>
    tpu.vector_store %arg15[%c0_67, %c0_68, %c0_69], %83 {strides = array<i32>} : memref<2x136x1xf32, #tpu.memory_space<vmem>>, vector<2x8x1xf32>,
    %c0_70 = arith.constant 0 : index
    %c8_71 = arith.constant 8 : index
    %c0_72 = arith.constant 0 : index
    %85 = vector.load %arg14[%c0_70, %c8_71, %c0_72] : memref<2x136x8xf32, #tpu.memory_space<vmem>>, vector<2x128x8xf32>
    tpu.vector_store %arg14[%c0_70, %c8_71, %c0_72], %80 {strides = array<i32>} : memref<2x136x8xf32, #tpu.memory_space<vmem>>, vector<2x128x8xf32>,
    %cst_73 = arith.constant dense<0.000000e+00> : vector<2x128xf32>
    %86 = vector.multi_reduction <add>, %79, %cst_73 [2] : vector<2x128x8xf32> to vector<2x128xf32>
    %87 = vector.shape_cast %86 : vector<2x128xf32> to vector<2x128x1xf32>
    %c0_74 = arith.constant 0 : index
    %c8_75 = arith.constant 8 : index
    %c0_76 = arith.constant 0 : index
    %88 = vector.load %arg15[%c0_74, %c8_75, %c0_76] : memref<2x136x1xf32, #tpu.memory_space<vmem>>, vector<2x128x1xf32>
    tpu.vector_store %arg15[%c0_74, %c8_75, %c0_76], %87 {strides = array<i32>} : memref<2x136x1xf32, #tpu.memory_space<vmem>>, vector<2x128x1xf32>,
    %cst_77 = arith.constant 0.000000e+00 : f32
    %89 = vector.broadcast %cst_77 : f32 to vector<2x128x16xf32>
    %cst_78 = arith.constant 0.000000e+00 : f32
    %90 = vector.broadcast %cst_78 : f32 to vector<2x128x1xf32>
    %c0_79 = arith.constant 0 : index
    %c6_80 = arith.constant 6 : index
    %c0_81 = arith.constant 0 : index
    %91 = vector.load %arg14[%c0_79, %c6_80, %c0_81] : memref<2x136x8xf32, #tpu.memory_space<vmem>>, vector<2x128x8xf32>
    %92 = vector.shape_cast %91 : vector<2x128x8xf32> to vector<256x8xf32>
    %c0_82 = arith.constant 0 : index
    %c0_83 = arith.constant 0 : index
    %c0_84 = arith.constant 0 : index
    %93 = vector.load %arg7[%c0_82, %c0_83, %c0_84] : memref<3x8x16xf32, #tpu.memory_space<vmem>>, vector<1x8x16xf32>
    %94 = vector.shape_cast %93 : vector<1x8x16xf32> to vector<8x16xf32>
    %cst_85 = arith.constant dense<0.000000e+00> : vector<256x16xf32>
    %95 = tpu.matmul %92, %94, %cst_85 {dimension_numbers = #tpu.dot_dimension_numbers<[1], [0], [0], [1], [0, 0, 1, 1], [], []>} : vector<256x8xf32>, vector<8x16xf32>, vector<256x16xf32> -> vector<256x16xf32>
    %96 = vector.shape_cast %95 : vector<256x16xf32> to vector<2x128x16xf32>
    %97 = arith.addf %89, %96 : vector<2x128x16xf32>
    %c0_86 = arith.constant 0 : index
    %c6_87 = arith.constant 6 : index
    %c0_88 = arith.constant 0 : index
    %98 = vector.load %arg15[%c0_86, %c6_87, %c0_88] : memref<2x136x1xf32, #tpu.memory_space<vmem>>, vector<2x128x1xf32>
    %99 = arith.addf %90, %98 : vector<2x128x1xf32>
    %c0_89 = arith.constant 0 : index
    %c7_90 = arith.constant 7 : index
    %c0_91 = arith.constant 0 : index
    %100 = vector.load %arg14[%c0_89, %c7_90, %c0_91] : memref<2x136x8xf32, #tpu.memory_space<vmem>>, vector<2x128x8xf32>
    %101 = vector.shape_cast %100 : vector<2x128x8xf32> to vector<256x8xf32>
    %c1_92 = arith.constant 1 : index
    %c0_93 = arith.constant 0 : index
    %c0_94 = arith.constant 0 : index
    %102 = vector.load %arg7[%c1_92, %c0_93, %c0_94] : memref<3x8x16xf32, #tpu.memory_space<vmem>>, vector<1x8x16xf32>
    %103 = vector.shape_cast %102 : vector<1x8x16xf32> to vector<8x16xf32>
    %cst_95 = arith.constant dense<0.000000e+00> : vector<256x16xf32>
    %104 = tpu.matmul %101, %103, %cst_95 {dimension_numbers = #tpu.dot_dimension_numbers<[1], [0], [0], [1], [0, 0, 1, 1], [], []>} : vector<256x8xf32>, vector<8x16xf32>, vector<256x16xf32> -> vector<256x16xf32>
    %105 = vector.shape_cast %104 : vector<256x16xf32> to vector<2x128x16xf32>
    %106 = arith.addf %97, %105 : vector<2x128x16xf32>
    %c0_96 = arith.constant 0 : index
    %c7_97 = arith.constant 7 : index
    %c0_98 = arith.constant 0 : index
    %107 = vector.load %arg15[%c0_96, %c7_97, %c0_98] : memref<2x136x1xf32, #tpu.memory_space<vmem>>, vector<2x128x1xf32>
    %108 = arith.addf %99, %107 : vector<2x128x1xf32>
    %c0_99 = arith.constant 0 : index
    %c8_100 = arith.constant 8 : index
    %c0_101 = arith.constant 0 : index
    %109 = vector.load %arg14[%c0_99, %c8_100, %c0_101] : memref<2x136x8xf32, #tpu.memory_space<vmem>>, vector<2x128x8xf32>
    %110 = vector.shape_cast %109 : vector<2x128x8xf32> to vector<256x8xf32>
    %c2_102 = arith.constant 2 : index
    %c0_103 = arith.constant 0 : index
    %c0_104 = arith.constant 0 : index
    %111 = vector.load %arg7[%c2_102, %c0_103, %c0_104] : memref<3x8x16xf32, #tpu.memory_space<vmem>>, vector<1x8x16xf32>
    %112 = vector.shape_cast %111 : vector<1x8x16xf32> to vector<8x16xf32>
    %cst_105 = arith.constant dense<0.000000e+00> : vector<256x16xf32>
    %113 = tpu.matmul %110, %112, %cst_105 {dimension_numbers = #tpu.dot_dimension_numbers<[1], [0], [0], [1], [0, 0, 1, 1], [], []>} : vector<256x8xf32>, vector<8x16xf32>, vector<256x16xf32> -> vector<256x16xf32>
    %114 = vector.shape_cast %113 : vector<256x16xf32> to vector<2x128x16xf32>
    %115 = arith.addf %106, %114 : vector<2x128x16xf32>
    %c0_106 = arith.constant 0 : index
    %c8_107 = arith.constant 8 : index
    %c0_108 = arith.constant 0 : index
    %116 = vector.load %arg15[%c0_106, %c8_107, %c0_108] : memref<2x136x1xf32, #tpu.memory_space<vmem>>, vector<2x128x1xf32>
    %117 = arith.addf %108, %116 : vector<2x128x1xf32>
    %c0_109 = arith.constant 0 : index
    %c0_110 = arith.constant 0 : index
    %c0_111 = arith.constant 0 : index
    %118 = vector.load %arg9[%c0_109, %c0_110, %c0_111] : memref<1x1x16xf32, #tpu.memory_space<vmem>>, vector<1x1x16xf32>
    %119 = vector.broadcast %117 : vector<2x128x1xf32> to vector<2x128x16xf32>
    %120 = vector.broadcast %118 : vector<1x1x16xf32> to vector<2x128x16xf32>
    %121 = arith.addf %119, %120 : vector<2x128x16xf32>
    %cst_112 = arith.constant 0.000000e+00 : f32
    %122 = vector.broadcast %cst_112 : f32 to vector<2x128x16xf32>
    %123 = arith.cmpf oeq, %121, %122 : vector<2x128x16xf32>
    %cst_113 = arith.constant 1.000000e+00 : f32
    %124 = vector.broadcast %cst_113 : f32 to vector<2x128x16xf32>
    %125 = arith.select %123, %124, %121 : vector<2x128x16xi1>, vector<2x128x16xf32>
    %126 = tpu.reciprocal %125 : vector<2x128x16xf32> -> vector<2x128x16xf32>
    %127 = arith.mulf %115, %126 : vector<2x128x16xf32>
    %c0_114 = arith.constant 0 : index
    %c0_115 = arith.constant 0 : index
    %c0_116 = arith.constant 0 : index
    %128 = vector.load %arg8[%c0_114, %c0_115, %c0_116] : memref<1x1x16xf32, #tpu.memory_space<vmem>>, vector<1x1x16xf32>
    %129 = vector.broadcast %128 : vector<1x1x16xf32> to vector<2x128x16xf32>
    %130 = arith.addf %127, %129 : vector<2x128x16xf32>
    %cst_117 = arith.constant 0.000000e+00 : f32
    %131 = vector.broadcast %cst_117 : f32 to vector<2x128x16xf32>
    %132 = arith.select %123, %131, %130 : vector<2x128x16xi1>, vector<2x128x16xf32>
    %cst_118 = arith.constant 0.000000e+00 : f32
    %133 = vector.broadcast %cst_118 : f32 to vector<2x128x16xf32>
    %134 = arith.maximumf %132, %133 : vector<2x128x16xf32>
    %135 = vector.shape_cast %76 : vector<2x128x8xf32> to vector<256x8xf32>
    %c0_119 = arith.constant 0 : index
    %c0_120 = arith.constant 0 : index
    %136 = vector.load %arg10[%c0_119, %c0_120] : memref<8x16xf32, #tpu.memory_space<vmem>>, vector<8x16xf32>
    %cst_121 = arith.constant dense<0.000000e+00> : vector<256x16xf32>
    %137 = tpu.matmul %135, %136, %cst_121 {dimension_numbers = #tpu.dot_dimension_numbers<[1], [0], [0], [1], [0, 0, 1, 1], [], []>} : vector<256x8xf32>, vector<8x16xf32>, vector<256x16xf32> -> vector<256x16xf32>
    %138 = vector.shape_cast %137 : vector<256x16xf32> to vector<2x128x16xf32>
    %c0_122 = arith.constant 0 : index
    %c0_123 = arith.constant 0 : index
    %c0_124 = arith.constant 0 : index
    %139 = vector.load %arg11[%c0_122, %c0_123, %c0_124] : memref<1x1x16xf32, #tpu.memory_space<vmem>>, vector<1x1x16xf32>
    %140 = vector.broadcast %139 : vector<1x1x16xf32> to vector<2x128x16xf32>
    %141 = arith.addf %138, %140 : vector<2x128x16xf32>
    %cst_125 = arith.constant 0.000000e+00 : f32
    %142 = vector.broadcast %cst_125 : f32 to vector<2x128x16xf32>
    %143 = arith.select %123, %142, %141 : vector<2x128x16xi1>, vector<2x128x16xf32>
    %144 = arith.addf %134, %143 : vector<2x128x16xf32>
    %cst_126 = arith.constant 0.000000e+00 : f32
    %145 = vector.broadcast %cst_126 : f32 to vector<2x128x16xf32>
    %146 = arith.maximumf %144, %145 : vector<2x128x16xf32>
    %c0_127 = arith.constant 0 : index
    %c0_128 = arith.constant 0 : index
    %c0_129 = arith.constant 0 : index
    %147 = vector.load %arg12[%c0_127, %c0_128, %c0_129] : memref<2x128x16xf32, #tpu.memory_space<vmem>>, vector<2x128x16xf32>
    tpu.vector_store %arg12[%c0_127, %c0_128, %c0_129], %146 {strides = array<i32>} : memref<2x128x16xf32, #tpu.memory_space<vmem>>, vector<2x128x16xf32>,
    return
  }
  func.func @transform_0(%arg0: i32) -> (i32, i32, i32) {
    %c0_i32 = arith.constant 0 : i32
    %c0_i32_0 = arith.constant 0 : i32
    %c0_i32_1 = arith.constant 0 : i32
    return %arg0, %c0_i32, %c0_i32_0 : i32, i32, i32
  }
  func.func @transform_1(%arg0: i32) -> (i32, i32, i32) {
    %c0_i32 = arith.constant 0 : i32
    %c0_i32_0 = arith.constant 0 : i32
    %c0_i32_1 = arith.constant 0 : i32
    %c0_i32_2 = arith.constant 0 : i32
    return %c0_i32, %c0_i32_0, %c0_i32_1 : i32, i32, i32
  }
  func.func @transform_2(%arg0: i32) -> (i32, i32, i32) {
    %c0_i32 = arith.constant 0 : i32
    %c0_i32_0 = arith.constant 0 : i32
    %c0_i32_1 = arith.constant 0 : i32
    %c0_i32_2 = arith.constant 0 : i32
    return %c0_i32, %c0_i32_0, %c0_i32_1 : i32, i32, i32
  }
  func.func @transform_3(%arg0: i32) -> (i32, i32, i32) {
    %c0_i32 = arith.constant 0 : i32
    %c0_i32_0 = arith.constant 0 : i32
    %c0_i32_1 = arith.constant 0 : i32
    %c0_i32_2 = arith.constant 0 : i32
    return %c0_i32, %c0_i32_0, %c0_i32_1 : i32, i32, i32
  }
  func.func @transform_4(%arg0: i32) -> (i32, i32) {
    %c0_i32 = arith.constant 0 : i32
    %c0_i32_0 = arith.constant 0 : i32
    %c0_i32_1 = arith.constant 0 : i32
    return %c0_i32, %c0_i32_0 : i32, i32
  }
  func.func @transform_5(%arg0: i32) -> (i32, i32, i32) {
    %c0_i32 = arith.constant 0 : i32
    %c0_i32_0 = arith.constant 0 : i32
    %c0_i32_1 = arith.constant 0 : i32
    %c0_i32_2 = arith.constant 0 : i32
    return %c0_i32, %c0_i32_0, %c0_i32_1 : i32, i32, i32
  }
  func.func @transform_6(%arg0: i32) -> (i32, i32, i32) {
    %c0_i32 = arith.constant 0 : i32
    %c0_i32_0 = arith.constant 0 : i32
    %c0_i32_1 = arith.constant 0 : i32
    %c0_i32_2 = arith.constant 0 : i32
    return %c0_i32, %c0_i32_0, %c0_i32_1 : i32, i32, i32
  }
  func.func @transform_7(%arg0: i32) -> (i32, i32, i32) {
    %c0_i32 = arith.constant 0 : i32
    %c0_i32_0 = arith.constant 0 : i32
    %c0_i32_1 = arith.constant 0 : i32
    %c0_i32_2 = arith.constant 0 : i32
    return %c0_i32, %c0_i32_0, %c0_i32_1 : i32, i32, i32
  }
  func.func @transform_8(%arg0: i32) -> (i32, i32, i32) {
    %c0_i32 = arith.constant 0 : i32
    %c0_i32_0 = arith.constant 0 : i32
    %c0_i32_1 = arith.constant 0 : i32
    %c0_i32_2 = arith.constant 0 : i32
    return %c0_i32, %c0_i32_0, %c0_i32_1 : i32, i32, i32
  }
  func.func @transform_9(%arg0: i32) -> (i32, i32) {
    %c0_i32 = arith.constant 0 : i32
    %c0_i32_0 = arith.constant 0 : i32
    %c0_i32_1 = arith.constant 0 : i32
    return %c0_i32, %c0_i32_0 : i32, i32
  }
  func.func @transform_10(%arg0: i32) -> (i32, i32, i32) {
    %c0_i32 = arith.constant 0 : i32
    %c0_i32_0 = arith.constant 0 : i32
    %c0_i32_1 = arith.constant 0 : i32
    %c0_i32_2 = arith.constant 0 : i32
    return %c0_i32, %c0_i32_0, %c0_i32_1 : i32, i32, i32
  }
  func.func @transform_11(%arg0: i32) -> (i32, i32, i32) {
    %c0_i32 = arith.constant 0 : i32
    %c0_i32_0 = arith.constant 0 : i32
    %c0_i32_1 = arith.constant 0 : i32
    return %arg0, %c0_i32, %c0_i32_0 : i32, i32, i32
  }
}

</mosaic_0001>

<bundles_post_ra>
// kernel: multi_conv_net.1
= control target key start
LH: loop header
LB: loop body
LE: loop exit
PB: predicated region body
PF: predicated region fallthrough
CT: control target
= control target key end

     0   :  { %s5667_s17 = smov 0   ;;  %s8565_s0 = inlined_call_operand.vmem [shape: f32[4,128,1], index: 0, kind: input, shape index: {}]   ;;  %s8566_s1 = inlined_call_operand.vmem [shape: f32[3,1,8], index: 1, kind: input, shape index: {}]   ;;  %s8567_s2 = inlined_call_operand.vmem [shape: f32[1,1,8], index: 2, kind: input, shape index: {}]   ;;  %s8568_s3 = inlined_call_operand.vmem [shape: f32[1,1,8], index: 3, kind: input, shape index: {}]   ;;  %s8569_s4 = inlined_call_operand.vmem [shape: f32[1,8], index: 4, kind: input, shape index: {}]   ;;  %s8570_s5 = inlined_call_operand.vmem [shape: f32[1,1,8], index: 5, kind: input, shape index: {}]   ;;  %s8571_s6 = inlined_call_operand.vmem [shape: f32[3,8,16], index: 6, kind: input, shape index: {}]   ;;  %s8572_s7 = inlined_call_operand.vmem [shape: f32[1,1,16], index: 7, kind: input, shape index: {}]   ;;  %s8573_s8 = inlined_call_operand.vmem [shape: f32[1,1,16], index: 8, kind: input, shape index: {}]   ;;  %s8574_s9 = inlined_call_operand.vmem [shape: f32[8,16], index: 9, kind: input, shape index: {}]   ;;  %s8575_s10 = inlined_call_operand.vmem [shape: f32[1,1,16], index: 10, kind: input, shape index: {}]   ;;  %s8576_s11 = inlined_call_operand.vmem [shape: f32[4,128,16], index: 11, kind: output, shape index: {}]  }
   0x1 LB: > { %s4930_s18 = sadd.s32 4294967295, %s5602_s17   ;;  %p4934_p0 = scmp.ge.s32.totalorder %s5602_s17, 1  ;;  %s5602_s17 = sphi %s5667_s17, %s21_s17  }
   0x2   : > { %p339_p1 = scmp.lt.s32.totalorder %s5602_s17, 3 }
   0x4   : > { %p340_p2 = pnand %p4934_p0, %p339_p1 }
   0x6   : > { %343 = sbr.rel (%p340_p2) target bundleno = 792 (0x318), region = 64 }
   0xb   : > { %s4935_s19 = sshll.u32 %s4930_s18, 1  ;;  %vm8581_vm0 = vcmask 7168   ;;  %v5604_v0 = vmov 0   ;;  %v5605_v1 = vmov 0.0   ;;  %v8577_v8 = vmov 1.0  }
   0xc   : > { %5431 = vset.pattern.permute.xlu1 %v5604_v0  ;;  %5430 = vset.pattern.permute.xlu0 %v5604_v0  ;;  %p382_p3 = scmp.lt.s32.totalorder %s4935_s19, 3  ;;  %524 = vst.msk [vmem:[#allocation2] sm:$0xff] %vm8581_vm0, %v5605_v1  ;;  %525 = vst.msk [vmem:[#allocation2 + $0x88] sm:$0xff] %vm8581_vm0, %v5605_v1 }
   0xd   : > { %526 = vst.msk [vmem:[#allocation4] sm:$0xff] %vm8581_vm0, %v5605_v1  ;;  %527 = vst.msk [vmem:[#allocation4 + $0x88] sm:$0xff] %vm8581_vm0, %v5605_v1 }
   0xe   : > { %s8871_s19 = smov (!%p382_p3, %s4935_s19), 3 }
   0xf   : > { %s5085_s20 = sshll.u32 %s8871_s19, 7 }
  0x10   : > { %s5691_s23 = scalar_lea.vmem %s8565_s0, %s5085_s20  ;;  %s8082_s30 = scalar_lea.vmem %s8576_s11, %s5085_s20 }
  0x11   : > { %v396_v2 = vld [vmem:[%s5691_s23 + $0x8] sm:$0xff]  ;;  %v397_v3 = vld [vmem:[%s5691_s23 + $0x10] sm:$0xff]  ;;  %v395_v4 = vld [vmem:[%s5691_s23] sm:$0xff] }
  0x12   : > { %vm428_vm1 = vcmp.eq.f32.partialorder %v396_v2, 0.0  ;;  %vm429_vm2 = vcmp.eq.f32.partialorder %v397_v3, 0.0  ;;  %vm427_vm3 = vcmp.eq.f32.partialorder %v395_v4, 0.0  ;;  %v398_v5 = vld [vmem:[%s5691_s23 + $0x18] sm:$0xff]  ;;  %v399_v6 = vld [vmem:[%s5691_s23 + $0x20] sm:$0xff]  ;;  %v400_v7 = vld [vmem:[%s5691_s23 + $0x28] sm:$0xff] }
  0x13   : > { %v460_v9 = vsel %vm428_vm1, 0.0, %v8577_v8  ;;  %v461_v10 = vsel %vm429_vm2, 0.0, %v8577_v8  ;;  %v459_v11 = vsel %vm427_vm3, 0.0, %v8577_v8  ;;  %vm430_vm4 = vcmp.eq.f32.partialorder %v398_v5, 0.0  ;;  %v401_v12 = vld [vmem:[%s5691_s23 + $0x30] sm:$0xff]  ;;  %v402_v13 = vld [vmem:[%s5691_s23 + $0x38] sm:$0xff] }
  0x14   : > { %v492_v14 = vmul.f32 %v460_v9, %v396_v2  ;;  %v493_v15 = vmul.f32 %v461_v10, %v397_v3  ;;  %593 = vst.msk [vmem:[#allocation4 + $0x10] sm:$0xff] %vm8581_vm0, %v460_v9  ;;  %594 = vst.msk [vmem:[#allocation4 + $0x18] sm:$0xff] %vm8581_vm0, %v461_v10  ;;  %v491_v16 = vmul.f32 %v459_v11, %v395_v4  ;;  %v462_v17 = vsel %vm430_vm4, 0.0, %v8577_v8  ;;  %v403_v19 = vld [vmem:[%s5691_s23 + $0x40] sm:$0xff]  ;;  %v404_v20 = vld [vmem:[%s5691_s23 + $0x48] sm:$0xff] }
  0x15   : > { %592 = vst.msk [vmem:[#allocation4 + $0x8] sm:$0xff] %vm8581_vm0, %v459_v11  ;;  %v494_v18 = vmul.f32 %v462_v17, %v398_v5  ;;  %595 = vst.msk [vmem:[#allocation4 + $0x20] sm:$0xff] %vm8581_vm0, %v462_v17  ;;  %vm431_vm5 = vcmp.eq.f32.partialorder %v399_v6, 0.0  ;;  %vm432_vm6 = vcmp.eq.f32.partialorder %v400_v7, 0.0  ;;  %vm433_vm7 = vcmp.eq.f32.partialorder %v401_v12, 0.0  ;;  %v405_v21 = vld [vmem:[%s5691_s23 + $0x50] sm:$0xff] }
  0x16   : > { %529 = vst.msk [vmem:[#allocation2 + $0x10] sm:$0xff] %vm8581_vm0, %v492_v14  ;;  %530 = vst.msk [vmem:[#allocation2 + $0x18] sm:$0xff] %vm8581_vm0, %v493_v15  ;;  %v463_v22 = vsel %vm431_vm5, 0.0, %v8577_v8  ;;  %v464_v23 = vsel %vm432_vm6, 0.0, %v8577_v8  ;;  %vm434_vm8 = vcmp.eq.f32.partialorder %v402_v13, 0.0  ;;  %v465_v24 = vsel %vm433_vm7, 0.0, %v8577_v8 }
  0x17   : > { %528 = vst.msk [vmem:[#allocation2 + $0x8] sm:$0xff] %vm8581_vm0, %v491_v16  ;;  %v406_v25 = vld [vmem:[%s5691_s23 + $0x58] sm:$0xff]  ;;  %531 = vst.msk [vmem:[#allocation2 + $0x20] sm:$0xff] %vm8581_vm0, %v494_v18  ;;  %v495_v26 = vmul.f32 %v463_v22, %v399_v6  ;;  %v496_v27 = vmul.f32 %v464_v23, %v400_v7  ;;  %v466_v28 = vsel %vm434_vm8, 0.0, %v8577_v8  ;;  %v497_v29 = vmul.f32 %v465_v24, %v401_v12  ;;  %v407_v31 = vld [vmem:[%s5691_s23 + $0x60] sm:$0xff] }
  0x18   : > { %596 = vst.msk [vmem:[#allocation4 + $0x28] sm:$0xff] %vm8581_vm0, %v463_v22  ;;  %597 = vst.msk [vmem:[#allocation4 + $0x30] sm:$0xff] %vm8581_vm0, %v464_v23  ;;  %v498_v30 = vmul.f32 %v466_v28, %v402_v13  ;;  %vm435_vm9 = vcmp.eq.f32.partialorder %v403_v19, 0.0  ;;  %vm436_vm10 = vcmp.eq.f32.partialorder %v404_v20, 0.0  ;;  %vm437_vm11 = vcmp.eq.f32.partialorder %v405_v21, 0.0  ;;  %v408_v32 = vld [vmem:[%s5691_s23 + $0x68] sm:$0xff] }
  0x19   : > { %598 = vst.msk [vmem:[#allocation4 + $0x38] sm:$0xff] %vm8581_vm0, %v465_v24  ;;  %599 = vst.msk [vmem:[#allocation4 + $0x40] sm:$0xff] %vm8581_vm0, %v466_v28  ;;  %v409_v33 = vld [vmem:[%s5691_s23 + $0x70] sm:$0xff]  ;;  %v467_v34 = vsel %vm435_vm9, 0.0, %v8577_v8  ;;  %v468_v35 = vsel %vm436_vm10, 0.0, %v8577_v8  ;;  %vm438_vm12 = vcmp.eq.f32.partialorder %v406_v25, 0.0 }
  0x1a   : > { %532 = vst.msk [vmem:[#allocation2 + $0x28] sm:$0xff] %vm8581_vm0, %v495_v26  ;;  %533 = vst.msk [vmem:[#allocation2 + $0x30] sm:$0xff] %vm8581_vm0, %v496_v27  ;;  %v469_v36 = vsel %vm437_vm11, 0.0, %v8577_v8  ;;  %v410_v37 = vld [vmem:[%s5691_s23 + $0x78] sm:$0xff]  ;;  %v499_v38 = vmul.f32 %v467_v34, %v403_v19  ;;  %v500_v39 = vmul.f32 %v468_v35, %v404_v20  ;;  %v470_v40 = vsel %vm438_vm12, 0.0, %v8577_v8  ;;  %v411_v43 = vld [vmem:[%s5691_s23 + $0x80] sm:$0xff] }
  0x1b   : > { %534 = vst.msk [vmem:[#allocation2 + $0x38] sm:$0xff] %vm8581_vm0, %v497_v29  ;;  %535 = vst.msk [vmem:[#allocation2 + $0x40] sm:$0xff] %vm8581_vm0, %v498_v30  ;;  %v501_v41 = vmul.f32 %v469_v36, %v405_v21  ;;  %v502_v42 = vmul.f32 %v470_v40, %v406_v25  ;;  %vm439_vm13 = vcmp.eq.f32.partialorder %v407_v31, 0.0  ;;  %vm440_vm14 = vcmp.eq.f32.partialorder %v408_v32, 0.0  ;;  %v412_v44 = vld [vmem:[%s5691_s23 + $0x88] sm:$0xff]  ;;  %v413_v45 = vld [vmem:[%s5691_s23 + $0x90] sm:$0xff] }
  0x1c   : > { %600 = vst.msk [vmem:[#allocation4 + $0x48] sm:$0xff] %vm8581_vm0, %v467_v34  ;;  %601 = vst.msk [vmem:[#allocation4 + $0x50] sm:$0xff] %vm8581_vm0, %v468_v35  ;;  %vm441_vm15 = vcmp.eq.f32.partialorder %v409_v33, 0.0  ;;  %v471_v46 = vsel %vm439_vm13, 0.0, %v8577_v8  ;;  %v472_v47 = vsel %vm440_vm14, 0.0, %v8577_v8  ;;  %vm442_vm1 = vcmp.eq.f32.partialorder %v410_v37, 0.0 }
  0x1d   : > { %602 = vst.msk [vmem:[#allocation4 + $0x58] sm:$0xff] %vm8581_vm0, %v469_v36  ;;  %603 = vst.msk [vmem:[#allocation4 + $0x60] sm:$0xff] %vm8581_vm0, %v470_v40  ;;  %v473_v48 = vsel %vm441_vm15, 0.0, %v8577_v8  ;;  %v414_v49 = vld [vmem:[%s5691_s23 + $0x98] sm:$0xff]  ;;  %v503_v52 = vmul.f32 %v471_v46, %v407_v31  ;;  %v504_v53 = vmul.f32 %v472_v47, %v408_v32  ;;  %v474_v54 = vsel %vm442_vm1, 0.0, %v8577_v8  ;;  %v415_v56 = vld [vmem:[%s5691_s23 + $0xa0] sm:$0xff] }
  0x1e   : > { %536 = vst.msk [vmem:[#allocation2 + $0x48] sm:$0xff] %vm8581_vm0, %v499_v38  ;;  %537 = vst.msk [vmem:[#allocation2 + $0x50] sm:$0xff] %vm8581_vm0, %v500_v39  ;;  %v626_v50 = vld [vmem:[#allocation2 + $0x16] sm:$0xff]  ;;  %v624_v51 = vld [vmem:[#allocation2 + $0x6] sm:$0xff]  ;;  %v505_v55 = vmul.f32 %v473_v48, %v409_v33  ;;  %v506_v57 = vmul.f32 %v474_v54, %v410_v37  ;;  %vm443_vm2 = vcmp.eq.f32.partialorder %v411_v43, 0.0  ;;  %vm444_vm3 = vcmp.eq.f32.partialorder %v412_v44, 0.0 }
  0x1f   : > { %538 = vst.msk [vmem:[#allocation2 + $0x58] sm:$0xff] %vm8581_vm0, %v501_v41  ;;  %539 = vst.msk [vmem:[#allocation2 + $0x60] sm:$0xff] %vm8581_vm0, %v502_v42  ;;  %669 = vperm.xlu1 %5431, %v626_v50   ;;  %659 = vperm.xlu0 %5430, %v624_v51   ;;  %vm445_vm4 = vcmp.eq.f32.partialorder %v413_v45, 0.0  ;;  %v416_v58 = vld [vmem:[%s5691_s23 + $0xa8] sm:$0xff]  ;;  %v417_v59 = vld [vmem:[%s5691_s23 + $0xb0] sm:$0xff]  ;;  %v475_v63 = vsel %vm443_vm2, 0.0, %v8577_v8 }
  0x20   : > { %604 = vst.msk [vmem:[#allocation4 + $0x68] sm:$0xff] %vm8581_vm0, %v471_v46  ;;  %605 = vst.msk [vmem:[#allocation4 + $0x70] sm:$0xff] %vm8581_vm0, %v472_v47  ;;  %v418_v60 = vld [vmem:[%s5691_s23 + $0xb8] sm:$0xff]  ;;  %v625_v62 = vld [vmem:[#allocation2 + $0xe] sm:$0xff]  ;;  %v476_v0 = vsel %vm444_vm3, 0.0, %v8577_v8  ;;  %vm446_vm5 = vcmp.eq.f32.partialorder %v414_v49, 0.0  ;;  %v507_v3 = vmul.f32 %v475_v63, %v411_v43 }
  0x21   : > { %606 = vst.msk [vmem:[#allocation4 + $0x78] sm:$0xff] %vm8581_vm0, %v473_v48  ;;  %607 = vst.msk [vmem:[#allocation4 + $0x80] sm:$0xff] %vm8581_vm0, %v474_v54  ;;  %v627_v61 = vld [vmem:[#allocation2 + $0x1e] sm:$0xff]  ;;  %v477_v2 = vsel %vm445_vm4, 0.0, %v8577_v8  ;;  %v508_v4 = vmul.f32 %v476_v0, %v412_v44  ;;  %v478_v5 = vsel %vm446_vm5, 0.0, %v8577_v8  ;;  %vm447_vm6 = vcmp.eq.f32.partialorder %v415_v56, 0.0 }
  0x22   : > { %540 = vst.msk [vmem:[#allocation2 + $0x68] sm:$0xff] %vm8581_vm0, %v503_v52  ;;  %541 = vst.msk [vmem:[#allocation2 + $0x70] sm:$0xff] %vm8581_vm0, %v504_v53  ;;  %v509_v6 = vmul.f32 %v477_v2, %v413_v45  ;;  %v510_v7 = vmul.f32 %v478_v5, %v414_v49  ;;  %vm448_vm7 = vcmp.eq.f32.partialorder %v416_v58, 0.0  ;;  %vm449_vm8 = vcmp.eq.f32.partialorder %v417_v59, 0.0  ;;  %v419_v9 = vld [vmem:[%s5691_s23 + $0xc0] sm:$0xff]  ;;  %v420_v10 = vld [vmem:[%s5691_s23 + $0xc8] sm:$0xff] }
  0x23   : > { %542 = vst.msk [vmem:[#allocation2 + $0x78] sm:$0xff] %vm8581_vm0, %v505_v55  ;;  %543 = vst.msk [vmem:[#allocation2 + $0x80] sm:$0xff] %vm8581_vm0, %v506_v57  ;;  %v421_v11 = vld [vmem:[%s5691_s23 + $0xd0] sm:$0xff]  ;;  %674 = vperm.xlu1 %5431, %v627_v61   ;;  %664 = vperm.xlu0 %5430, %v625_v62   ;;  %v479_v12 = vsel %vm447_vm6, 0.0, %v8577_v8  ;;  %v480_v13 = vsel %vm448_vm7, 0.0, %v8577_v8  ;;  %vm450_vm9 = vcmp.eq.f32.partialorder %v418_v60, 0.0 }
  0x24   : > { %608 = vst.msk [vmem:[#allocation4 + $0x90] sm:$0xff] %vm8581_vm0, %v475_v63  ;;  %609 = vst.msk [vmem:[#allocation4 + $0x98] sm:$0xff] %vm8581_vm0, %v476_v0  ;;  %v481_v14 = vsel %vm449_vm8, 0.0, %v8577_v8  ;;  %v422_v15 = vld [vmem:[%s5691_s23 + $0xd8] sm:$0xff]  ;;  %v629_v16 = vld [vmem:[#allocation2 + $0x2e] sm:$0xff]  ;;  %v511_v18 = vmul.f32 %v479_v12, %v415_v56  ;;  %v512_v19 = vmul.f32 %v480_v13, %v416_v58  ;;  %v482_v20 = vsel %vm450_vm9, 0.0, %v8577_v8 }
  0x25   : > { %610 = vst.msk [vmem:[#allocation4 + $0xa0] sm:$0xff] %vm8581_vm0, %v477_v2  ;;  %611 = vst.msk [vmem:[#allocation4 + $0xa8] sm:$0xff] %vm8581_vm0, %v478_v5  ;;  %v628_v17 = vld [vmem:[#allocation2 + $0x26] sm:$0xff]  ;;  %v513_v21 = vmul.f32 %v481_v14, %v417_v59  ;;  %v514_v22 = vmul.f32 %v482_v20, %v418_v60  ;;  %vm451_vm10 = vcmp.eq.f32.partialorder %v419_v9, 0.0  ;;  %vm452_vm11 = vcmp.eq.f32.partialorder %v420_v10, 0.0  ;;  %v425_v25 = vld [vmem:[%s5691_s23 + $0xf0] sm:$0xff] }
  0x26   : > { %544 = vst.msk [vmem:[#allocation2 + $0x90] sm:$0xff] %vm8581_vm0, %v507_v3  ;;  %545 = vst.msk [vmem:[#allocation2 + $0x98] sm:$0xff] %vm8581_vm0, %v508_v4  ;;  %vm453_vm12 = vcmp.eq.f32.partialorder %v421_v11, 0.0  ;;  %v423_v23 = vld [vmem:[%s5691_s23 + $0xe0] sm:$0xff]  ;;  %v424_v24 = vld [vmem:[%s5691_s23 + $0xe8] sm:$0xff]  ;;  %v483_v26 = vsel %vm451_vm10, 0.0, %v8577_v8 }
  0x27   : > { %546 = vst.msk [vmem:[#allocation2 + $0xa0] sm:$0xff] %vm8581_vm0, %v509_v6  ;;  %547 = vst.msk [vmem:[#allocation2 + $0xa8] sm:$0xff] %vm8581_vm0, %v510_v7  ;;  %v484_v27 = vsel %vm452_vm11, 0.0, %v8577_v8  ;;  %vm454_vm13 = vcmp.eq.f32.partialorder %v422_v15, 0.0  ;;  %v485_v28 = vsel %vm453_vm12, 0.0, %v8577_v8  ;;  %v426_v29 = vld [vmem:[%s5691_s23 + $0xf8] sm:$0xff]  ;;  %684 = vperm.xlu1 %5431, %v629_v16   ;;  %679 = vperm.xlu0 %5430, %v628_v17   ;;  %v515_v30 = vmul.f32 %v483_v26, %v419_v9 }
  0x28   : > { %612 = vst.msk [vmem:[#allocation4 + $0xb0] sm:$0xff] %vm8581_vm0, %v479_v12  ;;  %613 = vst.msk [vmem:[#allocation4 + $0xb8] sm:$0xff] %vm8581_vm0, %v480_v13  ;;  %v516_v31 = vmul.f32 %v484_v27, %v420_v10  ;;  %v486_v32 = vsel %vm454_vm13, 0.0, %v8577_v8  ;;  %v517_v33 = vmul.f32 %v485_v28, %v421_v11  ;;  %v631_v34 = vld [vmem:[#allocation2 + $0x3e] sm:$0xff]  ;;  %v630_v35 = vld [vmem:[#allocation2 + $0x36] sm:$0xff]  ;;  %vm455_vm14 = vcmp.eq.f32.partialorder %v423_v23, 0.0 }
  0x29   : > { %614 = vst.msk [vmem:[#allocation4 + $0xc0] sm:$0xff] %vm8581_vm0, %v481_v14  ;;  %615 = vst.msk [vmem:[#allocation4 + $0xc8] sm:$0xff] %vm8581_vm0, %v482_v20  ;;  %v518_v36 = vmul.f32 %v486_v32, %v422_v15  ;;  %vm456_vm15 = vcmp.eq.f32.partialorder %v424_v24, 0.0  ;;  %vm457_vm1 = vcmp.eq.f32.partialorder %v425_v25, 0.0  ;;  %v487_v37 = vsel %vm455_vm14, 0.0, %v8577_v8  ;;  %v633_v45 = vld [vmem:[#allocation2 + $0x4e] sm:$0xff] }
  0x2a   : > { %548 = vst.msk [vmem:[#allocation2 + $0xb0] sm:$0xff] %vm8581_vm0, %v511_v18  ;;  %549 = vst.msk [vmem:[#allocation2 + $0xb8] sm:$0xff] %vm8581_vm0, %v512_v19  ;;  %v488_v38 = vsel %vm456_vm15, 0.0, %v8577_v8  ;;  %vm458_vm2 = vcmp.eq.f32.partialorder %v426_v29, 0.0  ;;  %v489_v39 = vsel %vm457_vm1, 0.0, %v8577_v8  ;;  %v519_v40 = vmul.f32 %v487_v37, %v423_v23  ;;  %v632_v46 = vld [vmem:[#allocation2 + $0x46] sm:$0xff] }
  0x2b   : > { %550 = vst.msk [vmem:[#allocation2 + $0xc0] sm:$0xff] %vm8581_vm0, %v513_v21  ;;  %551 = vst.msk [vmem:[#allocation2 + $0xc8] sm:$0xff] %vm8581_vm0, %v514_v22  ;;  %v520_v41 = vmul.f32 %v488_v38, %v424_v24  ;;  %v490_v42 = vsel %vm458_vm2, 0.0, %v8577_v8  ;;  %v521_v43 = vmul.f32 %v489_v39, %v425_v25  ;;  %694 = vperm.xlu1 %5431, %v631_v34   ;;  %689 = vperm.xlu0 %5430, %v630_v35   ;;  %v635_v47 = vld [vmem:[#allocation2 + $0x5e] sm:$0xff]  ;;  %v634_v48 = vld [vmem:[#allocation2 + $0x56] sm:$0xff]  ;;  %vm2435_vm3 = vcmask 64512  }
  0x2c   : > { %616 = vst.msk [vmem:[#allocation4 + $0xd0] sm:$0xff] %vm8581_vm0, %v483_v26  ;;  %617 = vst.msk [vmem:[#allocation4 + $0xd8] sm:$0xff] %vm8581_vm0, %v484_v27  ;;  %v522_v44 = vmul.f32 %v490_v42, %v426_v29  ;;  %v637_v49 = vld [vmem:[#allocation2 + $0x6e] sm:$0xff]  ;;  %v636_v50 = vld [vmem:[#allocation2 + $0x66] sm:$0xff] }
  0x2d   : > { %618 = vst.msk [vmem:[#allocation4 + $0xe0] sm:$0xff] %vm8581_vm0, %v485_v28  ;;  %619 = vst.msk [vmem:[#allocation4 + $0xe8] sm:$0xff] %vm8581_vm0, %v486_v32  ;;  %v639_v51 = vld [vmem:[#allocation2 + $0x7e] sm:$0xff]  ;;  %v638_v52 = vld [vmem:[#allocation2 + $0x76] sm:$0xff] }
  0x2e   : > { %552 = vst.msk [vmem:[#allocation2 + $0xd0] sm:$0xff] %vm8581_vm0, %v515_v30  ;;  %553 = vst.msk [vmem:[#allocation2 + $0xd8] sm:$0xff] %vm8581_vm0, %v516_v31  ;;  %v641_v53 = vld [vmem:[#allocation2 + $0x96] sm:$0xff]  ;;  %v640_v54 = vld [vmem:[#allocation2 + $0x8e] sm:$0xff] }
  0x2f   : > { %554 = vst.msk [vmem:[#allocation2 + $0xe0] sm:$0xff] %vm8581_vm0, %v517_v33  ;;  %555 = vst.msk [vmem:[#allocation2 + $0xe8] sm:$0xff] %vm8581_vm0, %v518_v36  ;;  %704 = vperm.xlu1 %5431, %v633_v45   ;;  %699 = vperm.xlu0 %5430, %v632_v46   ;;  %v643_v55 = vld [vmem:[#allocation2 + $0xa6] sm:$0xff]  ;;  %v642_v56 = vld [vmem:[#allocation2 + $0x9e] sm:$0xff] }
  0x30   : > { %620 = vst.msk [vmem:[#allocation4 + $0xf0] sm:$0xff] %vm8581_vm0, %v487_v37  ;;  %621 = vst.msk [vmem:[#allocation4 + $0xf8] sm:$0xff] %vm8581_vm0, %v488_v38  ;;  %v5821_v6 = vld [vmem:[#allocation4 + $0x6] sm:$0xff]  ;;  %v952_v9 = vld [vmem:[#allocation2 + $0xf] sm:$0xff] }
  0x31   : > { %622 = vst.msk [vmem:[#allocation4 + $0x100] sm:$0xff] %vm8581_vm0, %v489_v39  ;;  %623 = vst.msk [vmem:[#allocation4 + $0x108] sm:$0xff] %vm8581_vm0, %v490_v42  ;;  %v645_v57 = vld [vmem:[#allocation2 + $0xb6] sm:$0xff]  ;;  %v644_v58 = vld [vmem:[#allocation2 + $0xae] sm:$0xff] }
  0x32   : > { %556 = vst.msk [vmem:[#allocation2 + $0xf0] sm:$0xff] %vm8581_vm0, %v519_v40  ;;  %557 = vst.msk [vmem:[#allocation2 + $0xf8] sm:$0xff] %vm8581_vm0, %v520_v41  ;;  %v647_v59 = vld [vmem:[#allocation2 + $0xc6] sm:$0xff]  ;;  %v646_v60 = vld [vmem:[#allocation2 + $0xbe] sm:$0xff] }
  0x33   : > { %558 = vst.msk [vmem:[#allocation2 + $0x100] sm:$0xff] %vm8581_vm0, %v521_v43  ;;  %559 = vst.msk [vmem:[#allocation2 + $0x108] sm:$0xff] %vm8581_vm0, %v522_v44  ;;  %714 = vperm.xlu1 %5431, %v635_v47   ;;  %709 = vperm.xlu0 %5430, %v634_v48   ;;  %v5823_v7 = vld [vmem:[#allocation4 + $0x7] sm:$0xff]  ;;  %v954_v11 = vld [vmem:[#allocation2 + $0x1f] sm:$0xff] }
  0x34   : > { %v951_v10 = vld [vmem:[#allocation2 + $0x7] sm:$0xff]  ;;  %2438 = vst.msk [vmem:[#allocation4] sm:$0xff] %vm8581_vm0, %v5605_v1  ;;  %v953_v12 = vld [vmem:[#allocation2 + $0x17] sm:$0xff]  ;;  %v956_v13 = vld [vmem:[#allocation2 + $0x2f] sm:$0xff] }
  0x35   : > { %v649_v61 = vld [vmem:[#allocation2 + $0xd6] sm:$0xff]  ;;  %v648_v62 = vld [vmem:[#allocation2 + $0xce] sm:$0xff]  ;;  %v958_v15 = vld [vmem:[#allocation2 + $0x3f] sm:$0xff]  ;;  %2436 = vst.msk [vmem:[#allocation3] sm:$0xff] %vm2435_vm3, %v5605_v1 }
  0x36   : > { %v651_v63 = vld [vmem:[#allocation2 + $0xe6] sm:$0xff]  ;;  %v650_v0 = vld [vmem:[#allocation2 + $0xde] sm:$0xff]  ;;  %v960_v17 = vld [vmem:[#allocation2 + $0x4f] sm:$0xff]  ;;  %2437 = vst.msk [vmem:[#allocation3 + $0x88] sm:$0xff] %vm2435_vm3, %v5605_v1 }
  0x37   : > { %724 = vperm.xlu1 %5431, %v637_v49   ;;  %719 = vperm.xlu0 %5430, %v636_v50   ;;  %v955_v14 = vld [vmem:[#allocation2 + $0x27] sm:$0xff]  ;;  %v957_v16 = vld [vmem:[#allocation2 + $0x37] sm:$0xff]  ;;  %v962_v19 = vld [vmem:[#allocation2 + $0x5f] sm:$0xff] }
  0x38   : > { %v959_v18 = vld [vmem:[#allocation2 + $0x47] sm:$0xff]  ;;  %v961_v20 = vld [vmem:[#allocation2 + $0x57] sm:$0xff]  ;;  %v964_v21 = vld [vmem:[#allocation2 + $0x6f] sm:$0xff] }
  0x39   : > { %v653_v2 = vld [vmem:[#allocation2 + $0xf6] sm:$0xff]  ;;  %v652_v3 = vld [vmem:[#allocation2 + $0xee] sm:$0xff]  ;;  %v966_v23 = vld [vmem:[#allocation2 + $0x7f] sm:$0xff] }
  0x3a   : > { %v655_v4 = vld [vmem:[#allocation2 + $0x106] sm:$0xff]  ;;  %v654_v5 = vld [vmem:[#allocation2 + $0xfe] sm:$0xff]  ;;  %v5827_v25 = vld [vmem:[#allocation4 + $0x8e] sm:$0xff] }
  0x3b   : > { %734 = vperm.xlu1 %5431, %v639_v51   ;;  %729 = vperm.xlu0 %5430, %v638_v52   ;;  %v963_v22 = vld [vmem:[#allocation2 + $0x67] sm:$0xff]  ;;  %v965_v24 = vld [vmem:[#allocation2 + $0x77] sm:$0xff]  ;;  %v5829_v26 = vld [vmem:[#allocation4 + $0x8f] sm:$0xff] }
  0x3c   : > { %2439 = vst.msk [vmem:[#allocation4 + $0x88] sm:$0xff] %vm8581_vm0, %v5605_v1  ;;  %v968_v27 = vld [vmem:[#allocation2 + $0x97] sm:$0xff]  ;;  %v967_v28 = vld [vmem:[#allocation2 + $0x8f] sm:$0xff]  ;;  %v970_v29 = vld [vmem:[#allocation2 + $0xa7] sm:$0xff] }
  0x3d   : > { %v969_v30 = vld [vmem:[#allocation2 + $0x9f] sm:$0xff]  ;;  %v972_v31 = vld [vmem:[#allocation2 + $0xb7] sm:$0xff]  ;;  %v971_v32 = vld [vmem:[#allocation2 + $0xaf] sm:$0xff] }
  0x3e   : > { %v974_v33 = vld [vmem:[#allocation2 + $0xc7] sm:$0xff]  ;;  %v973_v34 = vld [vmem:[#allocation2 + $0xbf] sm:$0xff]  ;;  %v976_v35 = vld [vmem:[#allocation2 + $0xd7] sm:$0xff] }
  0x3f   : > { %744 = vperm.xlu1 %5431, %v641_v53   ;;  %739 = vperm.xlu0 %5430, %v640_v54   ;;  %v975_v36 = vld [vmem:[#allocation2 + $0xcf] sm:$0xff]  ;;  %v978_v37 = vld [vmem:[#allocation2 + $0xe7] sm:$0xff]  ;;  %v977_v38 = vld [vmem:[#allocation2 + $0xdf] sm:$0xff] }
  0x40   : > { %v980_v39 = vld [vmem:[#allocation2 + $0xf7] sm:$0xff]  ;;  %v979_v40 = vld [vmem:[#allocation2 + $0xef] sm:$0xff]  ;;  %v982_v41 = vld [vmem:[#allocation2 + $0x107] sm:$0xff] }
  0x41   : > { %v981_v42 = vld [vmem:[#allocation2 + $0xff] sm:$0xff]  ;;  %v1280_v45 = vld [vmem:[#allocation2 + $0x10] sm:$0xff]  ;;  %v1279_v46 = vld [vmem:[#allocation2 + $0x8] sm:$0xff] }
  0x42   : > { %v1282_v49 = vld [vmem:[#allocation2 + $0x20] sm:$0xff]  ;;  %v1281_v50 = vld [vmem:[#allocation2 + $0x18] sm:$0xff]  ;;  %v1284_v53 = vld [vmem:[#allocation2 + $0x30] sm:$0xff] }
  0x43   : > { %754 = vperm.xlu1 %5431, %v643_v55   ;;  %749 = vperm.xlu0 %5430, %v642_v56   ;;  %v1283_v54 = vld [vmem:[#allocation2 + $0x28] sm:$0xff] }
  0x47   : > { %764 = vperm.xlu1 %5431, %v645_v57   ;;  %759 = vperm.xlu0 %5430, %v644_v58   ;;  %v1286_v57 = vld [vmem:[#allocation2 + $0x40] sm:$0xff]  ;;  %v1285_v58 = vld [vmem:[#allocation2 + $0x38] sm:$0xff] }
  0x4b   : > { %774 = vperm.xlu1 %5431, %v647_v59   ;;  %769 = vperm.xlu0 %5430, %v646_v60  }
  0x4f   : > { %784 = vperm.xlu1 %5431, %v649_v61   ;;  %779 = vperm.xlu0 %5430, %v648_v62   ;;  %v1288_v61 = vld [vmem:[#allocation2 + $0x50] sm:$0xff]  ;;  %v1287_v62 = vld [vmem:[#allocation2 + $0x48] sm:$0xff] }
  0x53   : > { %794 = vperm.xlu1 %5431, %v651_v63   ;;  %789 = vperm.xlu0 %5430, %v650_v0  }
  0x57   : > { %804 = vperm.xlu1 %5431, %v653_v2   ;;  %799 = vperm.xlu0 %5430, %v652_v3   ;;  %v1290_v2 = vld [vmem:[#allocation2 + $0x60] sm:$0xff]  ;;  %v1289_v3 = vld [vmem:[#allocation2 + $0x58] sm:$0xff] }
  0x5b   : > { %814 = vperm.xlu1 %5431, %v655_v4   ;;  %809 = vperm.xlu0 %5430, %v654_v5  }
  0x5f   : > { %992 = vperm.xlu1 %5431, %v952_v9   ;;  %987 = vperm.xlu0 %5430, %v951_v10   ;;  %v1292_v9 = vld [vmem:[#allocation2 + $0x70] sm:$0xff]  ;;  %v1291_v10 = vld [vmem:[#allocation2 + $0x68] sm:$0xff] }
  0x63   : > { %1002 = vperm.xlu1 %5431, %v954_v11   ;;  %997 = vperm.xlu0 %5430, %v953_v12  }
  0x67   : > { %1012 = vperm.xlu1 %5431, %v956_v13   ;;  %1007 = vperm.xlu0 %5430, %v955_v14   ;;  %v1294_v13 = vld [vmem:[#allocation2 + $0x80] sm:$0xff]  ;;  %v1293_v14 = vld [vmem:[#allocation2 + $0x78] sm:$0xff] }
  0x6b   : > { %1022 = vperm.xlu1 %5431, %v958_v15   ;;  %1017 = vperm.xlu0 %5430, %v957_v16  }
  0x6f   : > { %1032 = vperm.xlu1 %5431, %v960_v17   ;;  %1027 = vperm.xlu0 %5430, %v959_v18   ;;  %v1296_v17 = vld [vmem:[#allocation2 + $0x98] sm:$0xff]  ;;  %v1295_v18 = vld [vmem:[#allocation2 + $0x90] sm:$0xff] }
  0x73   : > { %1042 = vperm.xlu1 %5431, %v962_v19   ;;  %1037 = vperm.xlu0 %5430, %v961_v20  }
  0x77   : > { %1052 = vperm.xlu1 %5431, %v964_v21   ;;  %1047 = vperm.xlu0 %5430, %v963_v22   ;;  %v1298_v21 = vld [vmem:[#allocation2 + $0xa8] sm:$0xff]  ;;  %v1297_v22 = vld [vmem:[#allocation2 + $0xa0] sm:$0xff] }
  0x7b   : > { %1062 = vperm.xlu1 %5431, %v966_v23   ;;  %1057 = vperm.xlu0 %5430, %v965_v24  }
  0x7f   : > { %1072 = vperm.xlu1 %5431, %v968_v27   ;;  %1067 = vperm.xlu0 %5430, %v967_v28   ;;  %v1300_v27 = vld [vmem:[#allocation2 + $0xb8] sm:$0xff]  ;;  %v1299_v28 = vld [vmem:[#allocation2 + $0xb0] sm:$0xff] }
  0x83   : > { %1082 = vperm.xlu1 %5431, %v970_v29   ;;  %1077 = vperm.xlu0 %5430, %v969_v30  }
  0x87   : > { %1092 = vperm.xlu1 %5431, %v972_v31   ;;  %1087 = vperm.xlu0 %5430, %v971_v32   ;;  %v1302_v31 = vld [vmem:[#allocation2 + $0xc8] sm:$0xff]  ;;  %v1301_v32 = vld [vmem:[#allocation2 + $0xc0] sm:$0xff] }
  0x8b   : > { %1102 = vperm.xlu1 %5431, %v974_v33   ;;  %1097 = vperm.xlu0 %5430, %v973_v34  }
  0x8f   : > { %1112 = vperm.xlu1 %5431, %v976_v35   ;;  %1107 = vperm.xlu0 %5430, %v975_v36   ;;  %v1304_v35 = vld [vmem:[#allocation2 + $0xd8] sm:$0xff]  ;;  %v1303_v36 = vld [vmem:[#allocation2 + $0xd0] sm:$0xff] }
  0x93   : > { %1122 = vperm.xlu1 %5431, %v978_v37   ;;  %1117 = vperm.xlu0 %5430, %v977_v38  }
  0x97   : > { %1132 = vperm.xlu1 %5431, %v980_v39   ;;  %1127 = vperm.xlu0 %5430, %v979_v40   ;;  %v1306_v39 = vld [vmem:[#allocation2 + $0xe8] sm:$0xff]  ;;  %v1305_v40 = vld [vmem:[#allocation2 + $0xe0] sm:$0xff] }
  0x9a   : > { %v5833_v43 = vpop.permute.xlu1 %669  ;;  %v5835_v44 = vpop.permute.xlu0 %659 }
  0x9b   : > { %1142 = vperm.xlu1 %5431, %v982_v41   ;;  %1137 = vperm.xlu0 %5430, %v981_v42  }
  0x9e   : > { %v5837_v47 = vpop.permute.xlu1 %674  ;;  %v5839_v48 = vpop.permute.xlu0 %664 }
  0x9f   : > { %1320 = vperm.xlu1 %5431, %v1280_v45   ;;  %1315 = vperm.xlu0 %5430, %v1279_v46   ;;  %v888_v45 = vld [vmem:[#allocation4 + $0xe] sm:$0xff] }
  0xa0   : > { %v1216_v46 = vld [vmem:[#allocation4 + $0xf] sm:$0xff] }
  0xa2   : > { %v5841_v51 = vpop.permute.xlu1 %684  ;;  %v5843_v52 = vpop.permute.xlu0 %679 }
  0xa3   : > { %1330 = vperm.xlu1 %5431, %v1282_v49   ;;  %1325 = vperm.xlu0 %5430, %v1281_v50   ;;  %v1308_v49 = vld [vmem:[#allocation2 + $0xf8] sm:$0xff]  ;;  %v1307_v50 = vld [vmem:[#allocation2 + $0xf0] sm:$0xff] }
  0xa6   : > { %v5845_v55 = vpop.permute.xlu1 %694  ;;  %v5847_v56 = vpop.permute.xlu0 %689 }
  0xa7   : > { %1340 = vperm.xlu1 %5431, %v1284_v53   ;;  %1335 = vperm.xlu0 %5430, %v1283_v54  }
  0xaa   : > { %v5849_v59 = vpop.permute.xlu1 %704  ;;  %v5851_v60 = vpop.permute.xlu0 %699 }
  0xab   : > { %1350 = vperm.xlu1 %5431, %v1286_v57   ;;  %1345 = vperm.xlu0 %5430, %v1285_v58   ;;  %v1310_v57 = vld [vmem:[#allocation2 + $0x108] sm:$0xff]  ;;  %v1309_v58 = vld [vmem:[#allocation2 + $0x100] sm:$0xff] }
  0xae   : > { %v5853_v63 = vpop.permute.xlu1 %714  ;;  %v5855_v0 = vpop.permute.xlu0 %709 }
  0xaf   : > { %1360 = vperm.xlu1 %5431, %v1288_v61   ;;  %1355 = vperm.xlu0 %5430, %v1287_v62   ;;  %v1248_v61 = vadd.f32 %v1216_v46, %v888_v45  ;;  %v1544_v62 = vld [vmem:[#allocation4 + $0x10] sm:$0xff] }
  0xb2   : > { %v5857_v4 = vpop.permute.xlu1 %724  ;;  %v5859_v5 = vpop.permute.xlu0 %719 }
  0xb3   : > { %1370 = vperm.xlu1 %5431, %v1290_v2   ;;  %1365 = vperm.xlu0 %5430, %v1289_v3   ;;  %v1247_v2 = vadd.f32 %v5823_v7, %v5821_v6  ;;  %v1543_v3 = vld [vmem:[#allocation4 + $0x8] sm:$0xff] }
  0xb4   : > { %v891_v6 = vld [vmem:[#allocation4 + $0x26] sm:$0xff] }
  0xb5   : > { %v1219_v7 = vld [vmem:[#allocation4 + $0x27] sm:$0xff] }
  0xb6   : > { %v5861_v11 = vpop.permute.xlu1 %734  ;;  %v5863_v12 = vpop.permute.xlu0 %729 }
  0xb7   : > { %1380 = vperm.xlu1 %5431, %v1292_v9   ;;  %1375 = vperm.xlu0 %5430, %v1291_v10   ;;  %v890_v9 = vld [vmem:[#allocation4 + $0x1e] sm:$0xff] }
  0xb8   : > { %v1218_v10 = vld [vmem:[#allocation4 + $0x1f] sm:$0xff] }
  0xba   : > { %v5865_v15 = vpop.permute.xlu1 %744  ;;  %v5867_v16 = vpop.permute.xlu0 %739 }
  0xbb   : > { %1390 = vperm.xlu1 %5431, %v1294_v13   ;;  %1385 = vperm.xlu0 %5430, %v1293_v14   ;;  %v889_v13 = vld [vmem:[#allocation4 + $0x16] sm:$0xff] }
  0xbc   : > { %v1217_v14 = vld [vmem:[#allocation4 + $0x17] sm:$0xff] }
  0xbe   : > { %v5869_v19 = vpop.permute.xlu1 %754  ;;  %v5871_v20 = vpop.permute.xlu0 %749 }
  0xbf   : > { %8630 = vst [vmem:[#allocation5_spill] sm:$0xff] %v5871_v20  ;;  %1400 = vperm.xlu1 %5431, %v1296_v17   ;;  %1395 = vperm.xlu0 %5430, %v1295_v18  }
  0xc2   : > { %v5873_v23 = vpop.permute.xlu1 %764  ;;  %v5875_v24 = vpop.permute.xlu0 %759 }
  0xc3   : > { %1410 = vperm.xlu1 %5431, %v1298_v21   ;;  %1405 = vperm.xlu0 %5430, %v1297_v22   ;;  %v1576_v21 = vadd.f32 %v1544_v62, %v1248_v61  ;;  %v1575_v22 = vadd.f32 %v1543_v3, %v1247_v2  ;;  %v894_v61 = vld [vmem:[#allocation4 + $0x3e] sm:$0xff]  ;;  %v893_v2 = vld [vmem:[#allocation4 + $0x36] sm:$0xff] }
  0xc4   : > { %v1222_v62 = vld [vmem:[#allocation4 + $0x3f] sm:$0xff]  ;;  %v1221_v3 = vld [vmem:[#allocation4 + $0x37] sm:$0xff] }
  0xc6   : > { %v5877_v29 = vpop.permute.xlu1 %774  ;;  %v5879_v30 = vpop.permute.xlu0 %769 }
  0xc7   : > { %1420 = vperm.xlu1 %5431, %v1300_v27   ;;  %1415 = vperm.xlu0 %5430, %v1299_v28   ;;  %v1250_v27 = vadd.f32 %v1218_v10, %v890_v9  ;;  %v1546_v28 = vld [vmem:[#allocation4 + $0x20] sm:$0xff] }
  0xc9   : > { %v1578_v46 = vadd.f32 %v1546_v28, %v1250_v27  ;;  %v1253_v27 = vadd.f32 %v1221_v3, %v893_v2  ;;  %v896_v28 = vld [vmem:[#allocation4 + $0x4e] sm:$0xff] }
  0xca   : > { %v5881_v33 = vpop.permute.xlu1 %784  ;;  %v5883_v34 = vpop.permute.xlu0 %779 }
  0xcb   : > { %1430 = vperm.xlu1 %5431, %v1302_v31   ;;  %1425 = vperm.xlu0 %5430, %v1301_v32   ;;  %v1249_v31 = vadd.f32 %v1217_v14, %v889_v13  ;;  %v892_v32 = vld [vmem:[#allocation4 + $0x2e] sm:$0xff] }
  0xce   : > { %v5885_v37 = vpop.permute.xlu1 %794  ;;  %v5887_v38 = vpop.permute.xlu0 %789 }
  0xcf   : > { %1440 = vperm.xlu1 %5431, %v1304_v35   ;;  %1435 = vperm.xlu0 %5430, %v1303_v36   ;;  %v1220_v35 = vld [vmem:[#allocation4 + $0x2f] sm:$0xff]  ;;  %v1545_v36 = vld [vmem:[#allocation4 + $0x18] sm:$0xff] }
  0xd0   : > { %v1252_v45 = vadd.f32 %v1220_v35, %v892_v32  ;;  %v1549_v32 = vld [vmem:[#allocation4 + $0x38] sm:$0xff]  ;;  %v895_v35 = vld [vmem:[#allocation4 + $0x46] sm:$0xff] }
  0xd2   : > { %v5889_v41 = vpop.permute.xlu1 %804  ;;  %v5891_v42 = vpop.permute.xlu0 %799 }
  0xd3   : > { %1450 = vperm.xlu1 %5431, %v1306_v39   ;;  %1445 = vperm.xlu0 %5430, %v1305_v40  }
  0xd6   : > { %v5893_v53 = vpop.permute.xlu1 %814  ;;  %v5895_v54 = vpop.permute.xlu0 %809 }
  0xd7   : > { %1460 = vperm.xlu1 %5431, %v1308_v49   ;;  %1455 = vperm.xlu0 %5430, %v1307_v50   ;;  %v1577_v49 = vadd.f32 %v1545_v36, %v1249_v31  ;;  %v1548_v50 = vld [vmem:[#allocation4 + $0x30] sm:$0xff]  ;;  %v1223_v36 = vld [vmem:[#allocation4 + $0x47] sm:$0xff] }
  0xd8   : > { %v1580_v13 = vadd.f32 %v1548_v50, %v1252_v45  ;;  %v1224_v31 = vld [vmem:[#allocation4 + $0x4f] sm:$0xff]  ;;  %v1581_v45 = vadd.f32 %v1549_v32, %v1253_v27  ;;  %v1553_v27 = vld [vmem:[#allocation4 + $0x58] sm:$0xff]  ;;  %v1227_v32 = vld [vmem:[#allocation4 + $0x67] sm:$0xff] }
  0xd9   : > { %v1256_v1 = vadd.f32 %v1224_v31, %v896_v28  ;;  %v1551_v50 = vld [vmem:[#allocation4 + $0x48] sm:$0xff] }
  0xda   : > { %v5899_v17 = vpop.permute.xlu1 %992  ;;  %v5901_v18 = vpop.permute.xlu0 %987  ;;  %v899_v31 = vld [vmem:[#allocation4 + $0x66] sm:$0xff] }
  0xdb   : > { %1470 = vperm.xlu1 %5431, %v1310_v57   ;;  %1465 = vperm.xlu0 %5430, %v1309_v58   ;;  %v1251_v57 = vadd.f32 %v1219_v7, %v891_v6  ;;  %v1547_v58 = vld [vmem:[#allocation4 + $0x28] sm:$0xff] }
  0xdd   : > { %v1579_v14 = vadd.f32 %v1547_v58, %v1251_v57  ;;  %v898_v57 = vld [vmem:[#allocation4 + $0x5e] sm:$0xff] }
  0xde   : > { %v5903_v39 = vpop.permute.xlu1 %1002  ;;  %v5905_v40 = vpop.permute.xlu0 %997  ;;  %v1226_v58 = vld [vmem:[#allocation4 + $0x5f] sm:$0xff] }
  0xdf   : > { %1615 = vperm.xlu1 %5431, %v1576_v21   ;;  %1610 = vperm.xlu0 %5430, %v1575_v22   ;;  %v1254_v21 = vadd.f32 %v1222_v62, %v894_v61  ;;  %v1550_v22 = vld [vmem:[#allocation4 + $0x40] sm:$0xff]  ;;  %v897_v61 = vld [vmem:[#allocation4 + $0x56] sm:$0xff]  ;;  %v1258_v28 = vadd.f32 %v1226_v58, %v898_v57 }
  0xe0   : > { %v1225_v62 = vld [vmem:[#allocation4 + $0x57] sm:$0xff] }
  0xe1   : > { %v1582_v8 = vadd.f32 %v1550_v22, %v1254_v21  ;;  %v900_v21 = vld [vmem:[#allocation4 + $0x6e] sm:$0xff]  ;;  %v901_v57 = vld [vmem:[#allocation4 + $0x76] sm:$0xff] }
  0xe2   : > { %v5911_v9 = vpop.permute.xlu1 %1012  ;;  %v5913_v10 = vpop.permute.xlu0 %1007  ;;  %v1228_v22 = vld [vmem:[#allocation4 + $0x6f] sm:$0xff]  ;;  %v1229_v58 = vld [vmem:[#allocation4 + $0x77] sm:$0xff] }
  0xe3   : > { %1625 = vperm.xlu1 %5431, %v1578_v46   ;;  %1620 = vperm.xlu0 %5430, %v1577_v49   ;;  %v1552_v46 = vld [vmem:[#allocation4 + $0x50] sm:$0xff]  ;;  %v1255_v49 = vadd.f32 %v1223_v36, %v895_v35 }
  0xe4   : > { %v1584_v20 = vadd.f32 %v1552_v46, %v1256_v1  ;;  %v1555_v46 = vld [vmem:[#allocation4 + $0x68] sm:$0xff] }
  0xe6   : > { %v5915_v6 = vpop.permute.xlu1 %1022  ;;  %v5917_v7 = vpop.permute.xlu0 %1017 }
  0xe7   : > { %8631 = vst [vmem:[#allocation6_spill] sm:$0xff] %v5915_v6  ;;  %8632 = vst [vmem:[#allocation7_spill] sm:$0xff] %v5917_v7  ;;  %1635 = vperm.xlu1 %5431, %v1580_v13   ;;  %1630 = vperm.xlu0 %5430, %v1579_v14   ;;  %v1583_v7 = vadd.f32 %v1551_v50, %v1255_v49  ;;  %v1554_v13 = vld [vmem:[#allocation4 + $0x60] sm:$0xff]  ;;  %v1257_v14 = vadd.f32 %v1225_v62, %v897_v61 }
  0xe8   : > { %v1260_v6 = vadd.f32 %v1228_v22, %v900_v21  ;;  %v902_v49 = vld [vmem:[#allocation4 + $0x7e] sm:$0xff] }
  0xe9   : > { %v1585_v1 = vadd.f32 %v1553_v27, %v1257_v14  ;;  %v1230_v50 = vld [vmem:[#allocation4 + $0x7f] sm:$0xff] }
  0xea   : > { %v5919_v2 = vpop.permute.xlu1 %1032  ;;  %v5921_v3 = vpop.permute.xlu0 %1027  ;;  %v1262_v21 = vadd.f32 %v1230_v50, %v902_v49 }
  0xeb   : > { %8633 = vst [vmem:[#allocation8_spill] sm:$0xff] %v5919_v2  ;;  %8634 = vst [vmem:[#allocation9_spill] sm:$0xff] %v5921_v3  ;;  %1645 = vperm.xlu1 %5431, %v1582_v8   ;;  %1640 = vperm.xlu0 %5430, %v1581_v45   ;;  %v1586_v3 = vadd.f32 %v1554_v13, %v1258_v28  ;;  %v1556_v8 = vld [vmem:[#allocation4 + $0x70] sm:$0xff]  ;;  %v1259_v45 = vadd.f32 %v1227_v32, %v899_v31  ;;  %v1557_v28 = vld [vmem:[#allocation4 + $0x78] sm:$0xff] }
  0xec   : > { %v1588_v2 = vadd.f32 %v1556_v8, %v1260_v6  ;;  %v1263_v31 = vadd.f32 %v5829_v26, %v5827_v25  ;;  %v1559_v6 = vld [vmem:[#allocation4 + $0x90] sm:$0xff]  ;;  %v5944_v8 = vld [vmem:[%s8566_s1] ss:$0 sm:$0xff] }
  0xed   : > { %v844_v50 = vmul.f32 %v5944_v8, %v5873_v23 }
  0xee   : > { %v5923_v35 = vpop.permute.xlu1 %1042  ;;  %v5925_v36 = vpop.permute.xlu0 %1037 }
  0xef   : > { %8635 = vst [vmem:[#allocation10_spill] sm:$0xff] %v5925_v36  ;;  %1655 = vperm.xlu1 %5431, %v1584_v20   ;;  %1650 = vperm.xlu0 %5430, %v1583_v7   ;;  %v1587_v36 = vadd.f32 %v1555_v46, %v1259_v45  ;;  %v1261_v20 = vadd.f32 %v1229_v58, %v901_v57  ;;  %v1558_v7 = vld [vmem:[#allocation4 + $0x80] sm:$0xff] }
  0xf0   : > { %v1590_v22 = vadd.f32 %v1558_v7, %v1262_v21  ;;  %v5560_v46 = vld [vmem:[%s5691_s23] sm:$0xff]  ;;  %v843_v21 = vmul.f32 %v5944_v8, %v5875_v24 }
  0xf1   : > { %v1589_v27 = vadd.f32 %v1557_v28, %v1261_v20  ;;  %v5562_v28 = vld [vmem:[%s5691_s23 + $0x8] sm:$0xff] }
  0xf2   : > { %v5927_v61 = vpop.permute.xlu1 %1052  ;;  %v5929_v62 = vpop.permute.xlu0 %1047 }
  0xf3   : > { %1665 = vperm.xlu1 %5431, %v1586_v3   ;;  %1660 = vperm.xlu0 %5430, %v1585_v1   ;;  %v1591_v1 = vadd.f32 %v1559_v6, %v1263_v31  ;;  %v846_v6 = vmul.f32 %v5944_v8, %v5877_v29 }
  0xf6   : > { %v5931_v13 = vpop.permute.xlu1 %1062  ;;  %v5933_v14 = vpop.permute.xlu0 %1057 }
  0xf7   : > { %1675 = vperm.xlu1 %5431, %v1588_v2   ;;  %1670 = vperm.xlu0 %5430, %v1587_v36   ;;  %v5949_v2 = vld [vmem:[%s8566_s1 + $0x1] ss:$0 sm:$0xff]  ;;  %v842_v36 = vmul.f32 %v5944_v8, %v5869_v19  ;;  %v5561_v19 = vld [vmem:[%s5691_s23 + $0x10] sm:$0xff] }
  0xfa   : > { %v5937_v3 = vpop.permute.xlu1 %1072  ;;  %v5939_v32 = vpop.permute.xlu0 %1067 }
  0xfb   : > { %1685 = vperm.xlu1 %5431, %v1590_v22   ;;  %1680 = vperm.xlu0 %5430, %v1589_v27   ;;  %v904_v22 = vld [vmem:[#allocation4 + $0x96] sm:$0xff] }
  0xfc   : > { %v1232_v27 = vld [vmem:[#allocation4 + $0x97] sm:$0xff] }
  0xfe   : > { %v1083_v25 = vpop.permute.xlu1 %1082  ;;  %v5951_v26 = vpop.permute.xlu0 %1077 }
  0xff   : > { %8636 = vst [vmem:[#allocation11_spill] sm:$0xff] %v5951_v26  ;;  %v1170_v45 = vmul.f32 %v5949_v2, %v1083_v25  ;;  %2040 = vperm.xlu1 %5431, %v5560_v46   ;;  %1690 = vperm.xlu0 %5430, %v1591_v1   ;;  %v1264_v25 = vadd.f32 %v1232_v27, %v904_v22 }
 0x101   : > { %v5957_v49 = vadd.f32 %v1170_v45, %v842_v36  ;;  %v845_v36 = vmul.f32 %v5944_v8, %v5879_v30  ;;  %v848_v30 = vmul.f32 %v5944_v8, %v5881_v33 }
 0x102   : > { %v1093_v57 = vpop.permute.xlu1 %1092  ;;  %v1088_v58 = vpop.permute.xlu0 %1087 }
 0x103   : > { %v1172_v20 = vmul.f32 %v5949_v2, %v1093_v57  ;;  %v1171_v7 = vmul.f32 %v5949_v2, %v1088_v58  ;;  %2050 = vperm.xlu1 %5431, %v5561_v19   ;;  %2045 = vperm.xlu0 %5430, %v5562_v28   ;;  %v5563_v57 = vld [vmem:[%s5691_s23 + $0x20] sm:$0xff]  ;;  %v1560_v58 = vld [vmem:[#allocation4 + $0x98] sm:$0xff] }
 0x104   : > { %v1592_v22 = vadd.f32 %v1560_v58, %v1264_v25  ;;  %v850_v25 = vmul.f32 %v5944_v8, %v5885_v37 }
 0x105   : > { %v5967_v31 = vadd.f32 %v1172_v20, %v844_v50  ;;  %v5969_v23 = vadd.f32 %v1171_v7, %v843_v21  ;;  %v5564_v50 = vld [vmem:[%s5691_s23 + $0x18] sm:$0xff] }
 0x106   : > { %v1103_v24 = vpop.permute.xlu1 %1102  ;;  %v1098_v1 = vpop.permute.xlu0 %1097  ;;  %v905_v21 = vld [vmem:[#allocation4 + $0x9e] sm:$0xff] }
 0x107   : > { %v1174_v45 = vmul.f32 %v5949_v2, %v1103_v24  ;;  %v1173_v46 = vmul.f32 %v5949_v2, %v1098_v1  ;;  %2060 = vperm.xlu1 %5431, %v5563_v57   ;;  %2055 = vperm.xlu0 %5430, %v5564_v50   ;;  %v1233_v20 = vld [vmem:[#allocation4 + $0x9f] sm:$0xff]  ;;  %v847_v24 = vmul.f32 %v5944_v8, %v5883_v34  ;;  %v5565_v50 = vld [vmem:[%s5691_s23 + $0x30] sm:$0xff] }
 0x108   : > { %v1265_v27 = vadd.f32 %v1233_v20, %v905_v21 }
 0x109   : > { %v5979_v29 = vadd.f32 %v1174_v45, %v846_v6  ;;  %v5981_v7 = vadd.f32 %v1173_v46, %v845_v36  ;;  %v5566_v6 = vld [vmem:[%s5691_s23 + $0x28] sm:$0xff]  ;;  %v1561_v36 = vld [vmem:[#allocation4 + $0xa0] sm:$0xff] }
 0x10a   : > { %v1113_v19 = vpop.permute.xlu1 %1112  ;;  %v1108_v28 = vpop.permute.xlu0 %1107  ;;  %v906_v45 = vld [vmem:[#allocation4 + $0xa6] sm:$0xff]  ;;  %v1593_v21 = vadd.f32 %v1561_v36, %v1265_v27  ;;  %v852_v27 = vmul.f32 %v5944_v8, %v5889_v41 }
 0x10b   : > { %v1176_v1 = vmul.f32 %v5949_v2, %v1113_v19  ;;  %v1175_v57 = vmul.f32 %v5949_v2, %v1108_v28  ;;  %2070 = vperm.xlu1 %5431, %v5565_v50   ;;  %2065 = vperm.xlu0 %5430, %v5566_v6   ;;  %v1234_v46 = vld [vmem:[#allocation4 + $0xa7] sm:$0xff]  ;;  %v849_v19 = vmul.f32 %v5944_v8, %v5887_v38  ;;  %v5567_v6 = vld [vmem:[%s5691_s23 + $0x38] sm:$0xff] }
 0x10c   : > { %v1266_v20 = vadd.f32 %v1234_v46, %v906_v45 }
 0x10d   : > { %v5991_v33 = vadd.f32 %v1176_v1, %v848_v30  ;;  %v5993_v26 = vadd.f32 %v1175_v57, %v847_v24  ;;  %v1562_v30 = vld [vmem:[#allocation4 + $0xa8] sm:$0xff] }
 0x10e   : > { %v1123_v34 = vpop.permute.xlu1 %1122  ;;  %v1118_v58 = vpop.permute.xlu0 %1117  ;;  %v907_v24 = vld [vmem:[#allocation4 + $0xae] sm:$0xff]  ;;  %v1594_v45 = vadd.f32 %v1562_v30, %v1266_v20  ;;  %v854_v20 = vmul.f32 %v5944_v8, %v5893_v53 }
 0x10f   : > { %v1178_v28 = vmul.f32 %v5949_v2, %v1123_v34  ;;  %v1177_v50 = vmul.f32 %v5949_v2, %v1118_v58  ;;  %2075 = vperm.xlu1 %5431, %v5567_v6   ;;  %1695 = vperm.xlu0 %5430, %v1592_v22   ;;  %v1235_v1 = vld [vmem:[#allocation4 + $0xaf] sm:$0xff]  ;;  %v851_v34 = vmul.f32 %v5944_v8, %v5891_v42  ;;  %v5568_v6 = vld [vmem:[%s5691_s23 + $0x40] sm:$0xff] }
 0x110   : > { %v1267_v46 = vadd.f32 %v1235_v1, %v907_v24 }
 0x111   : > { %v6002_v57 = vadd.f32 %v1178_v28, %v850_v25  ;;  %v6004_v37 = vadd.f32 %v1177_v50, %v849_v19  ;;  %v1563_v25 = vld [vmem:[#allocation4 + $0xb0] sm:$0xff] }
 0x112   : > { %v1133_v36 = vpop.permute.xlu1 %1132  ;;  %v1128_v38 = vpop.permute.xlu0 %1127  ;;  %v908_v19 = vld [vmem:[#allocation4 + $0xb6] sm:$0xff]  ;;  %v1595_v24 = vadd.f32 %v1563_v25, %v1267_v46 }
 0x113   : > { %v1180_v58 = vmul.f32 %v5949_v2, %v1133_v36  ;;  %v1179_v22 = vmul.f32 %v5949_v2, %v1128_v38  ;;  %2080 = vperm.xlu1 %5431, %v5568_v6   ;;  %1700 = vperm.xlu0 %5430, %v1593_v21   ;;  %v1236_v28 = vld [vmem:[#allocation4 + $0xb7] sm:$0xff]  ;;  %v853_v36 = vmul.f32 %v5944_v8, %v5895_v54  ;;  %v5569_v6 = vld [vmem:[%s5691_s23 + $0x48] sm:$0xff]  ;;  %v2632_v54 = vld [vmem:[%s8571_s6] sm:$0xff] }
 0x114   : > { %v1268_v1 = vadd.f32 %v1236_v28, %v908_v19  ;;  %v5570_v19 = vld [vmem:[%s5691_s23 + $0x50] sm:$0xff]  ;;  %5219 = vmatprep.subr.mxu0 %v2632_v54 }
 0x115   : > { %v6013_v50 = vadd.f32 %v1180_v58, %v852_v27  ;;  %v6015_v41 = vadd.f32 %v1179_v22, %v851_v34  ;;  %v1564_v27 = vld [vmem:[#allocation4 + $0xb8] sm:$0xff]  ;;  %5220 = vmatpush3.msra.mxu0 %v2632_v54 }
 0x116   : > { %v1143_v30 = vpop.permute.xlu1 %1142  ;;  %v1138_v42 = vpop.permute.xlu0 %1137  ;;  %v909_v34 = vld [vmem:[#allocation4 + $0xbe] sm:$0xff]  ;;  %v1596_v28 = vadd.f32 %v1564_v27, %v1268_v1  ;;  %v911_v1 = vld [vmem:[#allocation4 + $0xce] sm:$0xff] }
 0x117   : > { %8637 = vst [vmem:[#allocation12_spill] sm:$0xff] %v6015_v41  ;;  %v1182_v21 = vmul.f32 %v5949_v2, %v1143_v30  ;;  %v1181_v38 = vmul.f32 %v5949_v2, %v1138_v42  ;;  %2085 = vperm.xlu1 %5431, %v5569_v6   ;;  %1705 = vperm.xlu0 %5430, %v1594_v45   ;;  %v1237_v58 = vld [vmem:[#allocation4 + $0xbf] sm:$0xff]  ;;  %v4982_v45 = vld [vmem:[%s8571_s6 + $0x8] sm:$0xff] }
 0x118   : > { %v1565_v30 = vld [vmem:[#allocation4 + $0xc0] sm:$0xff]  ;;  %5269 = vmatprep.subr.mxu1 %v4982_v45  ;;  %v5571_v6 = vld [vmem:[%s5691_s23 + $0x58] sm:$0xff]  ;;  %v1239_v27 = vld [vmem:[#allocation4 + $0xcf] sm:$0xff] }
 0x119   : > { %v6024_v22 = vadd.f32 %v1182_v21, %v854_v20  ;;  %v6026_v53 = vadd.f32 %v1181_v38, %v853_v36  ;;  %v1269_v20 = vadd.f32 %v1237_v58, %v909_v34  ;;  %v910_v42 = vld [vmem:[#allocation4 + $0xc6] sm:$0xff]  ;;  %5270 = vmatpush3.msra.mxu1 %v4982_v45  ;;  %v1271_v45 = vadd.f32 %v1239_v27, %v911_v1 }
 0x11a   : > { %v6028_v46 = vpop.permute.xlu1 %1320  ;;  %v6030_v25 = vpop.permute.xlu0 %1315  ;;  %v1238_v36 = vld [vmem:[#allocation4 + $0xc7] sm:$0xff] }
 0x11b   : > { %8638 = vst [vmem:[#allocation13_spill] sm:$0xff] %v6024_v22  ;;  %8639 = vst [vmem:[#allocation14_spill] sm:$0xff] %v6026_v53  ;;  %2090 = vperm.xlu1 %5431, %v5570_v19   ;;  %1710 = vperm.xlu0 %5430, %v1595_v24   ;;  %v1597_v53 = vadd.f32 %v1565_v30, %v1269_v20  ;;  %v1270_v19 = vadd.f32 %v1238_v36, %v910_v42  ;;  %v1566_v24 = vld [vmem:[#allocation4 + $0xc8] sm:$0xff]  ;;  %v5572_v22 = vld [vmem:[%s5691_s23 + $0x60] sm:$0xff] }
 0x11c   : > { %v5573_v30 = vld [vmem:[%s5691_s23 + $0x68] sm:$0xff] }
 0x11d   : > { %v1598_v54 = vadd.f32 %v1566_v24, %v1270_v19  ;;  %v5574_v24 = vld [vmem:[%s5691_s23 + $0x70] sm:$0xff]  ;;  %v1246_v41 = vld [vmem:[#allocation4 + $0x107] sm:$0xff] }
 0x11e   : > { %v6039_v21 = vpop.permute.xlu1 %1330  ;;  %v6041_v38 = vpop.permute.xlu0 %1325 }
 0x11f   : > { %8640 = vst [vmem:[#allocation15_spill] sm:$0xff] %v6039_v21  ;;  %8641 = vst [vmem:[#allocation16_spill] sm:$0xff] %v6041_v38  ;;  %2095 = vperm.xlu1 %5431, %v5571_v6   ;;  %1715 = vperm.xlu0 %5430, %v1596_v28   ;;  %v1567_v38 = vld [vmem:[#allocation4 + $0xd0] sm:$0xff] }
 0x120   : > { %v912_v21 = vld [vmem:[#allocation4 + $0xd6] sm:$0xff]  ;;  %v1599_v42 = vadd.f32 %v1567_v38, %v1271_v45 }
 0x121   : > { %v1240_v6 = vld [vmem:[#allocation4 + $0xd7] sm:$0xff] }
 0x122   : > { %v6044_v34 = vpop.permute.xlu1 %1340  ;;  %v6046_v58 = vpop.permute.xlu0 %1335  ;;  %v1272_v36 = vadd.f32 %v1240_v6, %v912_v21  ;;  %v5575_v38 = vld [vmem:[%s5691_s23 + $0x78] sm:$0xff] }
 0x123   : > { %8642 = vst [vmem:[#allocation17_spill] sm:$0xff] %v6044_v34  ;;  %8643 = vst [vmem:[#allocation18_spill] sm:$0xff] %v6046_v58  ;;  %2100 = vperm.xlu1 %5431, %v5572_v22   ;;  %1720 = vperm.xlu0 %5430, %v1597_v53   ;;  %v1568_v58 = vld [vmem:[#allocation4 + $0xd8] sm:$0xff] }
 0x124   : > { %v913_v34 = vld [vmem:[#allocation4 + $0xde] sm:$0xff]  ;;  %v1600_v1 = vadd.f32 %v1568_v58, %v1272_v36 }
 0x125   : > { %v1241_v22 = vld [vmem:[#allocation4 + $0xdf] sm:$0xff] }
 0x126   : > { %v6049_v28 = vpop.permute.xlu1 %1350  ;;  %v6051_v20 = vpop.permute.xlu0 %1345  ;;  %v1273_v27 = vadd.f32 %v1241_v22, %v913_v34  ;;  %v5576_v58 = vld [vmem:[%s5691_s23 + $0x80] sm:$0xff] }
 0x127   : > { %8644 = vst [vmem:[#allocation19_spill] sm:$0xff] %v6049_v28  ;;  %8645 = vst [vmem:[#allocation20_spill] sm:$0xff] %v6051_v20  ;;  %2105 = vperm.xlu1 %5431, %v5573_v30   ;;  %1725 = vperm.xlu0 %5430, %v1598_v54   ;;  %v1569_v20 = vld [vmem:[#allocation4 + $0xe0] sm:$0xff] }
 0x128   : > { %v914_v28 = vld [vmem:[#allocation4 + $0xe6] sm:$0xff]  ;;  %v1601_v45 = vadd.f32 %v1569_v20, %v1273_v27 }
 0x129   : > { %v1242_v30 = vld [vmem:[#allocation4 + $0xe7] sm:$0xff] }
 0x12a   : > { %v6054_v53 = vpop.permute.xlu1 %1360  ;;  %v6056_v19 = vpop.permute.xlu0 %1355  ;;  %v1274_v6 = vadd.f32 %v1242_v30, %v914_v28  ;;  %v5577_v20 = vld [vmem:[%s5691_s23 + $0x88] sm:$0xff] }
 0x12b   : > { %8646 = vst [vmem:[#allocation21_spill] sm:$0xff] %v6054_v53  ;;  %8647 = vst [vmem:[#allocation22_spill] sm:$0xff] %v6056_v19  ;;  %2110 = vperm.xlu1 %5431, %v5574_v24   ;;  %1730 = vperm.xlu0 %5430, %v1599_v42   ;;  %v1570_v19 = vld [vmem:[#allocation4 + $0xe8] sm:$0xff] }
 0x12c   : > { %v915_v53 = vld [vmem:[#allocation4 + $0xee] sm:$0xff]  ;;  %v1602_v36 = vadd.f32 %v1570_v19, %v1274_v6 }
 0x12d   : > { %v1243_v24 = vld [vmem:[#allocation4 + $0xef] sm:$0xff] }
 0x12e   : > { %v6059_v54 = vpop.permute.xlu1 %1370  ;;  %v6061_v21 = vpop.permute.xlu0 %1365  ;;  %v1275_v22 = vadd.f32 %v1243_v24, %v915_v53  ;;  %v5578_v19 = vld [vmem:[%s5691_s23 + $0x90] sm:$0xff] }
 0x12f   : > { %8648 = vst [vmem:[#allocation23_spill] sm:$0xff] %v6059_v54  ;;  %8649 = vst [vmem:[#allocation24_spill] sm:$0xff] %v6061_v21  ;;  %2115 = vperm.xlu1 %5431, %v5575_v38   ;;  %1735 = vperm.xlu0 %5430, %v1600_v1   ;;  %v1571_v21 = vld [vmem:[#allocation4 + $0xf0] sm:$0xff] }
 0x130   : > { %v916_v54 = vld [vmem:[#allocation4 + $0xf6] sm:$0xff]  ;;  %v1603_v27 = vadd.f32 %v1571_v21, %v1275_v22 }
 0x131   : > { %v1244_v38 = vld [vmem:[#allocation4 + $0xf7] sm:$0xff] }
 0x132   : > { %v6064_v42 = vpop.permute.xlu1 %1380  ;;  %v6066_v34 = vpop.permute.xlu0 %1375  ;;  %v1276_v30 = vadd.f32 %v1244_v38, %v916_v54  ;;  %v6082_v54 = vld [vmem:[%s8566_s1 + $0x2] ss:$0 sm:$0xff]  ;;  %v5579_v38 = vld [vmem:[%s5691_s23 + $0x98] sm:$0xff] }
 0x133   : > { %8650 = vst [vmem:[#allocation25_spill] sm:$0xff] %v6064_v42  ;;  %8651 = vst [vmem:[#allocation26_spill] sm:$0xff] %v6066_v34  ;;  %2120 = vperm.xlu1 %5431, %v5576_v58   ;;  %1740 = vperm.xlu0 %5430, %v1601_v45   ;;  %v1572_v42 = vld [vmem:[#allocation4 + $0xf8] sm:$0xff] }
 0x134   : > { %v917_v34 = vld [vmem:[#allocation4 + $0xfe] sm:$0xff]  ;;  %v1604_v6 = vadd.f32 %v1572_v42, %v1276_v30  ;;  %v823_v30 = vmul.f32 %v5944_v8, %v5835_v44 }
 0x135   : > { %v1245_v58 = vld [vmem:[#allocation4 + $0xff] sm:$0xff] }
 0x136   : > { %v6069_v1 = vpop.permute.xlu1 %1390  ;;  %v6071_v28 = vpop.permute.xlu0 %1385  ;;  %v1277_v24 = vadd.f32 %v1245_v58, %v917_v34  ;;  %v1574_v34 = vld [vmem:[#allocation4 + $0x108] sm:$0xff]  ;;  %v826_v58 = vmul.f32 %v5944_v8, %v5837_v47 }
 0x137   : > { %8652 = vst [vmem:[#allocation27_spill] sm:$0xff] %v6069_v1  ;;  %8653 = vst [vmem:[#allocation28_spill] sm:$0xff] %v6071_v28  ;;  %2125 = vperm.xlu1 %5431, %v5577_v20   ;;  %1745 = vperm.xlu0 %5430, %v1602_v36   ;;  %v1573_v1 = vld [vmem:[#allocation4 + $0x100] sm:$0xff] }
 0x138   : > { %v918_v28 = vld [vmem:[#allocation4 + $0x106] sm:$0xff]  ;;  %v1605_v20 = vadd.f32 %v1573_v1, %v1277_v24  ;;  %v828_v1 = vmul.f32 %v5944_v8, %v5841_v51  ;;  %v6112_v51 = vmul.f32 %v5944_v8, %v5849_v59  ;;  %v6133_v59 = vmul.f32 %v5944_v8, %v5857_v4 }
 0x139   : > { %v1278_v42 = vadd.f32 %v1246_v41, %v918_v28  ;;  %v827_v41 = vmul.f32 %v5944_v8, %v5843_v52  ;;  %v6116_v52 = vmul.f32 %v5944_v8, %v5851_v60  ;;  %v6152_v4 = vmul.f32 %v5944_v8, %v5863_v12 }
 0x13a   : > { %v6074_v45 = vpop.permute.xlu1 %1400  ;;  %v6076_v53 = vpop.permute.xlu0 %1395  ;;  %v1153_v12 = vmul.f32 %v5949_v2, %v5905_v40 }
 0x13b   : > { %2130 = vperm.xlu1 %5431, %v5578_v19   ;;  %1750 = vperm.xlu0 %5430, %v1603_v27   ;;  %v825_v27 = vmul.f32 %v5944_v8, %v5833_v43  ;;  %v830_v43 = vmul.f32 %v5944_v8, %v5845_v55  ;;  %v1606_v24 = vadd.f32 %v1574_v34, %v1278_v42 }
 0x13c   : > { %v6120_v55 = vmul.f32 %v5944_v8, %v5853_v63  ;;  %v1151_v42 = vmul.f32 %v5949_v2, %v5901_v18  ;;  %v1155_v18 = vmul.f32 %v5949_v2, %v5913_v10 }
 0x13e   : > { %v1411_v21 = vpop.permute.xlu1 %1410  ;;  %v6084_v36 = vpop.permute.xlu0 %1405 }
 0x13f   : > { %v1498_v22 = vmul.f32 %v6082_v54, %v1411_v21  ;;  %2135 = vperm.xlu1 %5431, %v5579_v38   ;;  %1755 = vperm.xlu0 %5430, %v1604_v6   ;;  %v824_v21 = vmul.f32 %v5944_v8, %v5839_v48  ;;  %v829_v48 = vmul.f32 %v5944_v8, %v5847_v56 }
 0x140   : > { %v6129_v56 = vmul.f32 %v5944_v8, %v5855_v0  ;;  %v6144_v38 = vmul.f32 %v5944_v8, %v5859_v5  ;;  %v6148_v0 = vmul.f32 %v5944_v8, %v5861_v11  ;;  %v1154_v11 = vmul.f32 %v5949_v2, %v5903_v39 }
 0x141   : > { %v6095_v19 = vadd.f32 %v1498_v22, %v5957_v49  ;;  %v5580_v49 = vld [vmem:[%s5691_s23 + $0xa0] sm:$0xff]  ;;  %v6125_v22 = vld [vmem:[%s8571_s6 + $0x10] sm:$0xff] }
 0x142   : > { %v1421_v28 = vpop.permute.xlu1 %1420  ;;  %v1416_v44 = vpop.permute.xlu0 %1415  ;;  %8655 = vst [vmem:[#allocation30_spill] sm:$0xff] %v6125_v22  ;;  %5319 = vmatprep.subr.mxu0 %v6125_v22 }
 0x143   : > { %8654 = vst [vmem:[#allocation29_spill] sm:$0xff] %v6095_v19  ;;  %v1500_v6 = vmul.f32 %v6082_v54, %v1421_v28  ;;  %v1499_v47 = vmul.f32 %v6082_v54, %v1416_v44  ;;  %2140 = vperm.xlu1 %5431, %v5580_v49   ;;  %1760 = vperm.xlu0 %5430, %v1605_v20   ;;  %v5581_v28 = vld [vmem:[%s5691_s23 + $0xa8] sm:$0xff]  ;;  %v8661_v49 = vld [vmem:[#allocation6_spill] sm:$0xff] }
 0x144   : > { %v6171_v44 = vmul.f32 %v5944_v8, %v5865_v15  ;;  %v1158_v15 = vmul.f32 %v5949_v2, %v8661_v49  ;;  %v8663_v49 = vld [vmem:[#allocation8_spill] sm:$0xff] }
 0x145   : > { %v6136_v60 = vadd.f32 %v1500_v6, %v5967_v31  ;;  %v6139_v63 = vadd.f32 %v1499_v47, %v5969_v23  ;;  %v1152_v31 = vmul.f32 %v5949_v2, %v5899_v17  ;;  %v1156_v17 = vmul.f32 %v5949_v2, %v5911_v9  ;;  %v8660_v47 = vld [vmem:[#allocation5_spill] sm:$0xff] }
 0x146   : > { %v1431_v20 = vpop.permute.xlu1 %1430  ;;  %v1426_v23 = vpop.permute.xlu0 %1425  ;;  %v6175_v6 = vmul.f32 %v5944_v8, %v5867_v16  ;;  %v6185_v9 = vmul.f32 %v5944_v8, %v8660_v47  ;;  %v5583_v8 = vld [vmem:[%s5691_s23 + $0xb0] sm:$0xff]  ;;  %v6205_v47 = vadd.f32 %v1155_v18, %v827_v41  ;;  %v1162_v41 = vmul.f32 %v5949_v2, %v5923_v35  ;;  %v5585_v35 = vld [vmem:[%s5691_s23 + $0xc0] sm:$0xff] }
 0x147   : > { %8656 = vst [vmem:[#allocation31_spill] sm:$0xff] %v6136_v60  ;;  %8657 = vst [vmem:[#allocation32_spill] sm:$0xff] %v6139_v63  ;;  %v1502_v34 = vmul.f32 %v6082_v54, %v1431_v20  ;;  %v1501_v5 = vmul.f32 %v6082_v54, %v1426_v23  ;;  %2145 = vperm.xlu1 %5431, %v5581_v28   ;;  %1765 = vperm.xlu0 %5430, %v1606_v24   ;;  %v8662_v24 = vld [vmem:[#allocation7_spill] sm:$0xff] }
 0x148   : > { %v6187_v10 = vadd.f32 %v1152_v31, %v824_v21  ;;  %v1157_v20 = vmul.f32 %v5949_v2, %v8662_v24  ;;  %v6193_v28 = vadd.f32 %v1151_v42, %v823_v30  ;;  %v6199_v21 = vadd.f32 %v1154_v11, %v826_v58  ;;  %v8664_v42 = vld [vmem:[#allocation9_spill] sm:$0xff]  ;;  %v8667_v11 = vld [vmem:[#allocation10_spill] sm:$0xff] }
 0x149   : > { %v6178_v39 = vadd.f32 %v1502_v34, %v5979_v29  ;;  %v6181_v40 = vadd.f32 %v1501_v5, %v5981_v7  ;;  %v5582_v34 = vld [vmem:[%s5691_s23 + $0xb8] sm:$0xff]  ;;  %v6201_v31 = vadd.f32 %v1153_v12, %v825_v27  ;;  %v6203_v5 = vadd.f32 %v1156_v17, %v828_v1 }
 0x14a   : > { %v1441_v16 = vpop.permute.xlu1 %1440  ;;  %v1436_v23 = vpop.permute.xlu0 %1435  ;;  %v1160_v30 = vmul.f32 %v5949_v2, %v8663_v49  ;;  %v1159_v24 = vmul.f32 %v5949_v2, %v8664_v42  ;;  %v6217_v27 = vadd.f32 %v1158_v15, %v830_v43  ;;  %v6219_v1 = vadd.f32 %v1157_v20, %v829_v48  ;;  %v5584_v15 = vld [vmem:[%s5691_s23 + $0xc8] sm:$0xff] }
 0x14b   : > { %8658 = vst [vmem:[#allocation33_spill] sm:$0xff] %v6178_v39  ;;  %8659 = vst [vmem:[#allocation34_spill] sm:$0xff] %v6181_v40  ;;  %v1504_v29 = vmul.f32 %v6082_v54, %v1441_v16  ;;  %v1503_v7 = vmul.f32 %v6082_v54, %v1436_v23  ;;  %2155 = vperm.xlu1 %5431, %v5582_v34   ;;  %2150 = vperm.xlu0 %5430, %v5583_v8  }
 0x14c   : > { %v1161_v12 = vmul.f32 %v5949_v2, %v8667_v11  ;;  %v1163_v20 = vmul.f32 %v5949_v2, %v5929_v62  ;;  %v1166_v23 = vmul.f32 %v5949_v2, %v5931_v13  ;;  %v6249_v34 = vadd.f32 %v1159_v24, %v6116_v52  ;;  %v5587_v24 = vld [vmem:[%s5691_s23 + $0xd0] sm:$0xff] }
 0x14d   : > { %v6212_v16 = vadd.f32 %v1504_v29, %v5991_v33  ;;  %v6215_v58 = vadd.f32 %v1503_v7, %v5993_v26  ;;  %v6228_v33 = vld [vmem:[%s8574_s9] sm:$0xff]  ;;  %v1164_v26 = vmul.f32 %v5949_v2, %v5927_v61  ;;  %v1165_v29 = vmul.f32 %v5949_v2, %v5933_v14 }
 0x14e   : > { %v1451_v17 = vpop.permute.xlu1 %1450  ;;  %v1446_v18 = vpop.permute.xlu0 %1445  ;;  %8668 = vst [vmem:[#allocation7_spill] sm:$0xff] %v6228_v33  ;;  %v1168_v61 = vmul.f32 %v5949_v2, %v5937_v3  ;;  %5369 = vmatprep.subr.mxu1 %v6228_v33  ;;  %v6246_v7 = vadd.f32 %v1160_v30, %v6112_v51  ;;  %v6258_v14 = vadd.f32 %v1162_v41, %v6120_v55  ;;  %v8671_v51 = vld [vmem:[#allocation11_spill] sm:$0xff]  ;;  %v5586_v55 = vld [vmem:[%s5691_s23 + $0xd8] sm:$0xff] }
 0x14f   : > { %8665 = vst [vmem:[#allocation5_spill] sm:$0xff] %v6212_v16  ;;  %8666 = vst [vmem:[#allocation6_spill] sm:$0xff] %v6215_v58  ;;  %v1506_v43 = vmul.f32 %v6082_v54, %v1451_v17  ;;  %v1505_v48 = vmul.f32 %v6082_v54, %v1446_v18  ;;  %2165 = vperm.xlu1 %5431, %v5584_v15   ;;  %2160 = vperm.xlu0 %5430, %v5585_v35  }
 0x150   : > { %v6261_v3 = vadd.f32 %v1161_v12, %v6129_v56  ;;  %v1167_v8 = vmul.f32 %v5949_v2, %v5939_v32  ;;  %v1169_v49 = vmul.f32 %v5949_v2, %v8671_v51  ;;  %v6275_v56 = vadd.f32 %v1163_v20, %v6144_v38  ;;  %v8673_v12 = vld [vmem:[#allocation12_spill] sm:$0xff]  ;;  %v5589_v20 = vld [vmem:[%s5691_s23 + $0xe0] sm:$0xff] }
 0x151   : > { %v6252_v62 = vadd.f32 %v1506_v43, %v6002_v57  ;;  %v6255_v13 = vadd.f32 %v1505_v48, %v6004_v37  ;;  %v6268_v57 = vadd.f32 %v1164_v26, %v6133_v59  ;;  %v6278_v32 = vadd.f32 %v1166_v23, %v6148_v0  ;;  %v8676_v26 = vld [vmem:[#allocation16_spill] sm:$0xff]  ;;  %v8677_v48 = vld [vmem:[#allocation17_spill] sm:$0xff] }
 0x152   : > { %v1461_v52 = vpop.permute.xlu1 %1460  ;;  %v1456_v30 = vpop.permute.xlu0 %1455  ;;  %v6281_v2 = vadd.f32 %v1165_v29, %v6152_v4  ;;  %v6284_v59 = vadd.f32 %v1168_v61, %v6171_v44  ;;  %v1480_v41 = vmul.f32 %v6082_v54, %v6028_v46  ;;  %v1479_v11 = vmul.f32 %v6082_v54, %v6030_v25  ;;  %v8675_v44 = vld [vmem:[#allocation15_spill] sm:$0xff] }
 0x153   : > { %8669 = vst [vmem:[#allocation8_spill] sm:$0xff] %v6252_v62  ;;  %8670 = vst [vmem:[#allocation9_spill] sm:$0xff] %v6255_v13  ;;  %v1508_v37 = vmul.f32 %v6082_v54, %v1461_v52  ;;  %v1507_v42 = vmul.f32 %v6082_v54, %v1456_v30  ;;  %2175 = vperm.xlu1 %5431, %v5586_v55   ;;  %2170 = vperm.xlu0 %5430, %v5587_v24   ;;  %v8679_v29 = vld [vmem:[#allocation19_spill] sm:$0xff]  ;;  %v8682_v55 = vld [vmem:[#allocation13_spill] sm:$0xff] }
 0x154   : > { %v6297_v17 = vadd.f32 %v1167_v8, %v6175_v6  ;;  %v6300_v4 = vadd.f32 %v1169_v49, %v6185_v9  ;;  %v1482_v18 = vmul.f32 %v6082_v54, %v8675_v44  ;;  %v1481_v46 = vmul.f32 %v6082_v54, %v8676_v26  ;;  %v5588_v6 = vld [vmem:[%s5691_s23 + $0xe8] sm:$0xff]  ;;  %v8678_v9 = vld [vmem:[#allocation18_spill] sm:$0xff]  ;;  %v8681_v49 = vld [vmem:[#allocation21_spill] sm:$0xff] }
 0x155   : > { %v6291_v38 = vadd.f32 %v1508_v37, %v6013_v50  ;;  %v6294_v0 = vadd.f32 %v1507_v42, %v8673_v12  ;;  %v1484_v50 = vmul.f32 %v6082_v54, %v8677_v48  ;;  %v1483_v23 = vmul.f32 %v6082_v54, %v8678_v9  ;;  %v8680_v8 = vld [vmem:[#allocation20_spill] sm:$0xff]  ;;  %v6323_v30 = vld [vmem:[%s8568_s3] ss:$0 sm:$0xff]  ;;  %v8684_v12 = vld [vmem:[#allocation14_spill] sm:$0xff] }
 0x156   : > { %v1471_v43 = vpop.permute.xlu1 %1470  ;;  %v1466_v25 = vpop.permute.xlu0 %1465  ;;  %v1486_v61 = vmul.f32 %v6082_v54, %v8679_v29  ;;  %v1485_v51 = vmul.f32 %v6082_v54, %v8680_v8  ;;  %v1488_v52 = vmul.f32 %v6082_v54, %v8681_v49  ;;  %v6326_v37 = vadd.f32 %v1480_v41, %v6187_v10  ;;  %v8687_v10 = vld [vmem:[#allocation23_spill] sm:$0xff]  ;;  %v8689_v29 = vld [vmem:[#allocation25_spill] sm:$0xff] }
 0x157   : > { %8672 = vst [vmem:[#allocation10_spill] sm:$0xff] %v6291_v38  ;;  %8674 = vst [vmem:[#allocation11_spill] sm:$0xff] %v6294_v0  ;;  %v1510_v15 = vmul.f32 %v6082_v54, %v1471_v43  ;;  %v1509_v35 = vmul.f32 %v6082_v54, %v1466_v25  ;;  %2185 = vperm.xlu1 %5431, %v5588_v6   ;;  %2180 = vperm.xlu0 %5430, %v5589_v20   ;;  %v8686_v25 = vld [vmem:[#allocation22_spill] sm:$0xff] }
 0x158   : > { %v6329_v42 = vadd.f32 %v1479_v11, %v6193_v28  ;;  %v6338_v26 = vadd.f32 %v1482_v18, %v6199_v21  ;;  %v6341_v43 = vadd.f32 %v1481_v46, %v6201_v31  ;;  %v1487_v48 = vmul.f32 %v6082_v54, %v8686_v25  ;;  %v5590_v18 = vld [vmem:[%s5691_s23 + $0xf8] sm:$0xff]  ;;  %v5591_v31 = vld [vmem:[%s5691_s23 + $0xf0] sm:$0xff] }
 0x159   : > { %v6332_v24 = vadd.f32 %v1510_v15, %v8682_v55  ;;  %v6335_v44 = vadd.f32 %v1509_v35, %v8684_v12  ;;  %v1490_v41 = vmul.f32 %v6082_v54, %v8687_v10  ;;  %v6348_v15 = vadd.f32 %v1484_v50, %v6203_v5  ;;  %v8688_v50 = vld [vmem:[#allocation24_spill] sm:$0xff] }
 0x15a   : > { %v1616_v28 = vpop.permute.xlu1 %1615  ;;  %v1611_v11 = vpop.permute.xlu0 %1610  ;;  %v6359_v46 = vadd.f32 %v1483_v23, %v6205_v47  ;;  %v6362_v6 = vadd.f32 %v1486_v61, %v6217_v27  ;;  %v6365_v20 = vadd.f32 %v1485_v51, %v6219_v1  ;;  %v6368_v5 = vadd.f32 %v1488_v52, %v6246_v7  ;;  %v8690_v51 = vld [vmem:[#allocation26_spill] sm:$0xff]  ;;  %v8691_v52 = vld [vmem:[#allocation27_spill] sm:$0xff]  ;;  %v8692_v12 = vld [vmem:[#allocation28_spill] sm:$0xff] }
 0x15b   : > { %8683 = vst [vmem:[#allocation12_spill] sm:$0xff] %v6332_v24  ;;  %8685 = vst [vmem:[#allocation15_spill] sm:$0xff] %v6335_v44  ;;  %v6351_v35 = vadd.f32 %v6323_v30, %v1616_v28  ;;  %v6354_v21 = vadd.f32 %v6323_v30, %v1611_v11  ;;  %2195 = vperm.xlu1 %5431, %v5590_v18   ;;  %2190 = vperm.xlu0 %5430, %v5591_v31  }
 0x15c   : > { %v1489_v9 = vmul.f32 %v6082_v54, %v8688_v50  ;;  %v1492_v8 = vmul.f32 %v6082_v54, %v8689_v29  ;;  %v6377_v47 = vadd.f32 %v1487_v48, %v6249_v34  ;;  %v6380_v27 = vadd.f32 %v1490_v41, %v6258_v14 }
 0x15d   : > { %vm1807_vm4 = vcmp.eq.f32.partialorder %v6351_v35, 0.0  ;;  %vm1806_vm5 = vcmp.eq.f32.partialorder %v6354_v21, 0.0  ;;  %v1491_v49 = vmul.f32 %v6082_v54, %v8690_v51  ;;  %v1494_v55 = vmul.f32 %v6082_v54, %v8691_v52 }
 0x15e   : > { %v1839_v1 = vsel %vm1807_vm4, 1.0, %v6351_v35  ;;  %v1838_v7 = vsel %vm1806_vm5, 1.0, %v6354_v21  ;;  %v1626_v23 = vpop.permute.xlu1 %1625  ;;  %v1621_v61 = vpop.permute.xlu0 %1620  ;;  %v1493_v25 = vmul.f32 %v6082_v54, %v8692_v12  ;;  %v1496_v48 = vmul.f32 %v6082_v54, %v6074_v45 }
 0x15f   : > { %5432 = vrcp.f32 %v1839_v1  ;;  %v6391_v34 = vadd.f32 %v6323_v30, %v1626_v23  ;;  %v6394_v14 = vadd.f32 %v6323_v30, %v1621_v61  ;;  %v6403_v10 = vadd.f32 %v1489_v9, %v6261_v3 }
 0x160   : > { %5434 = vrcp.f32 %v1838_v7  ;;  %v6406_v41 = vadd.f32 %v1492_v8, %v6268_v57  ;;  %v1495_v28 = vmul.f32 %v6082_v54, %v6076_v53  ;;  %v1497_v11 = vmul.f32 %v6082_v54, %v6084_v36 }
 0x161   : > { %vm1809_vm6 = vcmp.eq.f32.partialorder %v6391_v34, 0.0  ;;  %vm1808_vm7 = vcmp.eq.f32.partialorder %v6394_v14, 0.0  ;;  %v6421_v31 = vadd.f32 %v1491_v49, %v6275_v56  ;;  %v6430_v54 = vadd.f32 %v1494_v55, %v6278_v32 }
 0x162   : > { %8693 = vst [vmem:[#allocation16_spill] sm:$0xff] %v6406_v41  ;;  %v1841_v45 = vsel %vm1809_vm6, 1.0, %v6391_v34  ;;  %v1840_v3 = vsel %vm1808_vm7, 1.0, %v6394_v14  ;;  %v1636_v57 = vpop.permute.xlu1 %1635  ;;  %v1631_v18 = vpop.permute.xlu0 %1630  ;;  %v6433_v36 = vadd.f32 %v1493_v25, %v6281_v2  ;;  %v6436_v9 = vadd.f32 %v1496_v48, %v6284_v59 }
 0x163   : > { %8694 = vst [vmem:[#allocation17_spill] sm:$0xff] %v6421_v31  ;;  %5436 = vrcp.f32 %v1841_v45  ;;  %v6424_v50 = vadd.f32 %v6323_v30, %v1636_v57  ;;  %v6427_v53 = vadd.f32 %v6323_v30, %v1631_v18  ;;  %8695 = vst [vmem:[#allocation18_spill] sm:$0xff] %v6430_v54  ;;  %v8698_v56 = vmov 1.0  }
 0x164   : > { %8696 = vst [vmem:[#allocation19_spill] sm:$0xff] %v6433_v36  ;;  %8697 = vst [vmem:[#allocation20_spill] sm:$0xff] %v6436_v9  ;;  %5438 = vrcp.f32 %v1840_v3  ;;  %v6443_v29 = vsel %vm1806_vm5, 0.0, %v8698_v56  ;;  %v6448_v32 = vsel %vm1807_vm4, 0.0, %v8698_v56  ;;  %v6451_v2 = vadd.f32 %v1495_v28, %v6297_v17 }
 0x165   : > { %vm1811_vm8 = vcmp.eq.f32.partialorder %v6424_v50, 0.0  ;;  %vm1810_vm9 = vcmp.eq.f32.partialorder %v6427_v53, 0.0  ;;  %v6454_v59 = vadd.f32 %v1497_v11, %v6300_v4  ;;  %v6471_v4 = vsel %vm1808_vm7, 0.0, %v8698_v56 }
 0x166   : > { %8699 = vst [vmem:[#allocation21_spill] sm:$0xff] %v6451_v2  ;;  %v1843_v8 = vsel %vm1811_vm8, 1.0, %v6424_v50  ;;  %v1842_v1 = vsel %vm1810_vm9, 1.0, %v6427_v53  ;;  %v1646_v7 = vpop.permute.xlu1 %1645  ;;  %v1641_v23 = vpop.permute.xlu0 %1640  ;;  %v6475_v51 = vsel %vm2435_vm3, %v6443_v29, 0.0  ;;  %v6479_v49 = vsel %vm2435_vm3, %v6448_v32, 0.0 }
 0x167   : > { %8700 = vst [vmem:[#allocation13_spill] sm:$0xff] %v6454_v59  ;;  %5440 = vrcp.f32 %v1843_v8  ;;  %v6463_v61 = vadd.f32 %v6323_v30, %v1646_v7  ;;  %v6466_v17 = vadd.f32 %v6323_v30, %v1641_v23  ;;  %v6484_v52 = vsel %vm1809_vm6, 0.0, %v8698_v56  ;;  %v6526_v7 = vld [vmem:[%s8567_s2] ss:$0 sm:$0xff] }
 0x168   : > { %5442 = vrcp.f32 %v1842_v1  ;;  %v6491_v55 = vsel %vm1810_vm9, 0.0, %v8698_v56  ;;  %v6496_v12 = vsel %vm1811_vm8, 0.0, %v8698_v56  ;;  %v6506_v45 = vsel %vm2435_vm3, %v6471_v4, 0.0 }
 0x169   : > { %vm1813_vm10 = vcmp.eq.f32.partialorder %v6463_v61, 0.0  ;;  %vm1812_vm11 = vcmp.eq.f32.partialorder %v6466_v17, 0.0  ;;  %v6521_v8 = vsel %vm2435_vm3, %v6484_v52, 0.0  ;;  %v6530_v23 = vsel %vm2435_vm3, %v6491_v55, 0.0 }
 0x16a   : > { %v1845_v25 = vsel %vm1813_vm10, 1.0, %v6463_v61  ;;  %v1844_v48 = vsel %vm1812_vm11, 1.0, %v6466_v17  ;;  %v1656_v28 = vpop.permute.xlu1 %1655  ;;  %v1651_v11 = vpop.permute.xlu0 %1650  ;;  %v6511_v3 = vsel %vm1812_vm11, 0.0, %v8698_v56 }
 0x16b   : > { %5444 = vrcp.f32 %v1845_v25  ;;  %v6514_v57 = vadd.f32 %v6323_v30, %v1656_v28  ;;  %v6517_v18 = vadd.f32 %v6323_v30, %v1651_v11  ;;  %v6534_v25 = vsel %vm2435_vm3, %v6496_v12, 0.0 }
 0x16c   : > { %v5433_v1 = vpop.eup %5432  ;;  %5446 = vrcp.f32 %v1844_v48  ;;  %v6539_v28 = vsel %vm1813_vm10, 0.0, %v8698_v56  ;;  %v6546_v48 = vsel %vm2435_vm3, %v6511_v3, 0.0 }
 0x16d   : > { %8701 = vst [vmem:[#allocation14_spill] sm:$0xff] %v6539_v28  ;;  %v5435_v11 = vpop.eup %5434  ;;  %v1903_v24 = vmul.f32 %v5433_v1, %v6326_v37  ;;  %vm1815_vm12 = vcmp.eq.f32.partialorder %v6514_v57, 0.0  ;;  %vm1814_vm13 = vcmp.eq.f32.partialorder %v6517_v18, 0.0  ;;  %v6570_v58 = vsel %vm2435_vm3, %v6539_v28, 0.0 }
 0x16e   : > { %v1902_v44 = vmul.f32 %v5435_v11, %v6329_v42  ;;  %v1847_v38 = vsel %vm1815_vm12, 1.0, %v6514_v57  ;;  %v1846_v0 = vsel %vm1814_vm13, 1.0, %v6517_v18  ;;  %v1666_v62 = vpop.permute.xlu1 %1665  ;;  %v1661_v37 = vpop.permute.xlu0 %1660  ;;  %v6558_v1 = vsel %vm1814_vm13, 0.0, %v8698_v56 }
 0x16f   : > { %8702 = vst [vmem:[#allocation22_spill] sm:$0xff] %v6558_v1  ;;  %v1942_v13 = vadd.f32 %v6526_v7, %v1903_v24  ;;  %5448 = vrcp.f32 %v1847_v38  ;;  %v6562_v42 = vadd.f32 %v6323_v30, %v1666_v62  ;;  %v6565_v11 = vadd.f32 %v6323_v30, %v1661_v37 }
 0x170   : > { %v5437_v16 = vpop.eup %5436  ;;  %v1941_v19 = vadd.f32 %v6526_v7, %v1902_v44  ;;  %5450 = vrcp.f32 %v1846_v0  ;;  %v6574_v59 = vsel %vm2435_vm3, %v6558_v1, 0.0 }
 0x171   : > { %v5439_v24 = vpop.eup %5438  ;;  %v6578_v62 = vsel %vm1807_vm4, 0.0, %v1942_v13  ;;  %v1905_v38 = vmul.f32 %v5437_v16, %v6338_v26  ;;  %vm1817_vm14 = vcmp.eq.f32.partialorder %v6562_v42, 0.0  ;;  %vm8582_vm15 = vcmp.eq.f32.partialorder %v6565_v11, 0.0 }
 0x172   : > { %v6585_v0 = vsel %vm1806_vm5, 0.0, %v1941_v19  ;;  %v1904_v44 = vmul.f32 %v5439_v24, %v6341_v43  ;;  %v1849_v37 = vsel %vm1817_vm14, 1.0, %v6562_v42  ;;  %v1676_v39 = vpop.permute.xlu1 %1675  ;;  %v1671_v40 = vpop.permute.xlu0 %1670  ;;  %v6594_v16 = vsel %vm1815_vm12, 0.0, %v8698_v56 }
 0x173   : > { %8703 = vst [vmem:[#allocation23_spill] sm:$0xff] %v6594_v16  ;;  %v1944_v19 = vadd.f32 %v6526_v7, %v1905_v38  ;;  %v1848_v43 = vsel %vm8582_vm15, 1.0, %v6565_v11  ;;  %5452 = vrcp.f32 %v1849_v37  ;;  %v6604_v9 = vadd.f32 %v6323_v30, %v1676_v39 }
 0x174   : > { %v5441_v24 = vpop.eup %5440  ;;  %v1943_v60 = vadd.f32 %v6526_v7, %v1904_v44  ;;  %v6607_v2 = vadd.f32 %v6323_v30, %v1671_v40  ;;  %5454 = vrcp.f32 %v1848_v43  ;;  %v6616_v26 = vsel %vm2435_vm3, %v6594_v16, 0.0 }
 0x175   : > { %v5443_v63 = vpop.eup %5442  ;;  %v6611_v13 = vsel %vm1809_vm6, 0.0, %v1944_v19  ;;  %v1907_v38 = vmul.f32 %v5441_v24, %v6348_v15  ;;  %vm1819_vm1 = vcmp.eq.f32.partialorder %v6604_v9, 0.0  ;;  %v6627_v19 = vsel %vm8582_vm15, 0.0, %v8698_v56 }
 0x176   : > { %v6620_v44 = vsel %vm1808_vm7, 0.0, %v1943_v60  ;;  %v1906_v39 = vmul.f32 %v5443_v63, %v6359_v46  ;;  %v1686_v40 = vpop.permute.xlu1 %1685  ;;  %v1681_v37 = vpop.permute.xlu0 %1680  ;;  %v1851_v60 = vsel %vm1819_vm1, 1.0, %v6604_v9  ;;  %vm1818_vm2 = vcmp.eq.f32.partialorder %v6607_v2, 0.0 }
 0x177   : > { %v1946_v43 = vadd.f32 %v6526_v7, %v1907_v38  ;;  %v1850_v54 = vsel %vm1818_vm2, 1.0, %v6607_v2  ;;  %v6641_v36 = vadd.f32 %v6323_v30, %v1686_v40  ;;  %5456 = vrcp.f32 %v1851_v60 }
 0x178   : > { %v5445_v63 = vpop.eup %5444  ;;  %v1945_v24 = vadd.f32 %v6526_v7, %v1906_v39  ;;  %v6649_v1 = vadd.f32 %v6323_v30, %v1681_v37  ;;  %v6654_v39 = vld [vmem:[%s8569_s4] ss:$0 sm:$0xff]  ;;  %5458 = vrcp.f32 %v1850_v54 }
 0x179   : > { %v5447_v15 = vpop.eup %5446  ;;  %v6645_v38 = vsel %vm1811_vm8, 0.0, %v1946_v43  ;;  %v1909_v16 = vmul.f32 %v5445_v63, %v6362_v6  ;;  %vm8586_vm0 = vcmp.eq.f32.partialorder %v6641_v36, 0.0 }
 0x17a   : > { %v6658_v40 = vsel %vm1810_vm9, 0.0, %v1945_v24  ;;  %v1908_v46 = vmul.f32 %v5447_v15, %v6365_v20  ;;  %v2041_v43 = vpop.permute.xlu1 %2040  ;;  %2473 = vadd.xlane.f32.xlu0 %v6475_v51  ;;  %v1691_v6 = vpop.permute.xlu0 %1690  ;;  %v1853_v63 = vsel %vm8586_vm0, 1.0, %v6641_v36  ;;  %vm1820_vm15 = vcmp.eq.f32.partialorder %v6649_v1, 0.0  ;;  %v6672_v20 = vld [vmem:[%s8570_s5] ss:$0 sm:$0xff] }
 0x17b   : > { %v1948_v60 = vadd.f32 %v6526_v7, %v1909_v16  ;;  %v1852_v16 = vsel %vm1820_vm15, 1.0, %v6649_v1  ;;  %v2204_v24 = vmul.f32 %v6654_v39, %v2041_v43  ;;  %5460 = vrcp.f32 %v1853_v63  ;;  %v8730_v1 = vld [vmem:[#allocation31_spill] sm:$0xff] }
 0x17c   : > { %v5449_v54 = vpop.eup %5448  ;;  %v1947_v51 = vadd.f32 %v6526_v7, %v1908_v46  ;;  %v6686_v22 = vadd.f32 %v6323_v30, %v1691_v6  ;;  %5462 = vrcp.f32 %v1852_v16 }
 0x17d   : > { %v5451_v37 = vpop.eup %5450  ;;  %v6682_v41 = vsel %vm1813_vm10, 0.0, %v1948_v60  ;;  %v1911_v33 = vmul.f32 %v5449_v54, %v6368_v5  ;;  %v2243_v43 = vadd.f32 %v6672_v20, %v2204_v24 }
 0x17e   : > { %v6690_v46 = vsel %vm1812_vm11, 0.0, %v1947_v51  ;;  %v1910_v15 = vmul.f32 %v5451_v37, %v6377_v47  ;;  %v2051_v28 = vpop.permute.xlu1 %2050  ;;  %2479 = vadd.xlane.f32.xlu0 %v6506_v45  ;;  %v2046_v60 = vpop.permute.xlu0 %2045  ;;  %v2012_v31 = vmax.f32 %v6682_v41, 0.0  ;;  %vm1822_vm0 = vcmp.eq.f32.partialorder %v6686_v22, 0.0 }
 0x17f   : > { %v1950_v5 = vadd.f32 %v6526_v7, %v1911_v33  ;;  %v2206_v6 = vmul.f32 %v6654_v39, %v2051_v28  ;;  %2476 = vadd.xlane.f32.xlu1 %v6479_v49  ;;  %v2275_v47 = vsel %vm1806_vm5, 0.0, %v2243_v43  ;;  %v1854_v45 = vsel %vm1822_vm0, 1.0, %v6686_v22 }
 0x180   : > { %v1949_v63 = vadd.f32 %v6526_v7, %v1910_v15  ;;  %v2205_v37 = vmul.f32 %v6654_v39, %v2046_v60  ;;  %v6707_v54 = vpop.eup %5452  ;;  %v2011_v33 = vmax.f32 %v6690_v46, 0.0  ;;  %v8704_v49 = vmax.f32 %v6585_v0, 0.0 }
 0x181   : > { %v6712_v28 = vsel %vm1815_vm12, 0.0, %v1950_v5  ;;  %v2245_v21 = vadd.f32 %v6672_v20, %v2206_v6  ;;  %v5455_v51 = vpop.eup %5454  ;;  %5464 = vrcp.f32 %v1854_v45 }
 0x182   : > { %v6716_v15 = vadd.f32 %v2275_v47, %v8704_v49  ;;  %v6722_v24 = vsel %vm1814_vm13, 0.0, %v1949_v63  ;;  %v2244_v43 = vadd.f32 %v6672_v20, %v2205_v37  ;;  %v2061_v60 = vpop.permute.xlu1 %2060  ;;  %2482 = vadd.xlane.f32.xlu0 %v6521_v8  ;;  %v2056_v5 = vpop.permute.xlu0 %2055  ;;  %v6733_v63 = vsel %vm2435_vm3, %v6627_v19, 0.0 }
 0x183   : > { %v2277_v47 = vsel %vm1808_vm7, 0.0, %v2245_v21  ;;  %v2208_v6 = vmul.f32 %v6654_v39, %v2061_v60  ;;  %2485 = vadd.xlane.f32.xlu1 %v6530_v23  ;;  %v2013_v45 = vmax.f32 %v6722_v24, 0.0  ;;  %v8705_v37 = vmax.f32 %v6620_v44, 0.0 }
 0x184   : > { %v8587_v0 = vmax.f32 %v6716_v15, 0.0  ;;  %v2276_v8 = vsel %vm1807_vm4, 0.0, %v2244_v43  ;;  %v2207_v14 = vmul.f32 %v6654_v39, %v2056_v5  ;;  %v8706_v23 = vmax.f32 %v6578_v62, 0.0 }
 0x185   : > { %v6738_v49 = vadd.f32 %v2277_v47, %v8705_v37  ;;  %v2247_v16 = vadd.f32 %v6672_v20, %v2208_v6  ;;  %v6754_v44 = vsel %vm1817_vm14, 0.0, %v8698_v56  ;;  %v6756_v47 = vpop.eup %5456  ;;  %v6764_v62 = vsel %vm1818_vm2, 0.0, %v8698_v56 }
 0x186   : > { %v2403_v21 = vmul.f32 %v6443_v29, %v8587_v0  ;;  %v6748_v60 = vadd.f32 %v2276_v8, %v8706_v23  ;;  %v2246_v43 = vadd.f32 %v6672_v20, %v2207_v14  ;;  %v2071_v5 = vpop.permute.xlu1 %2070  ;;  %2488 = vadd.xlane.f32.xlu0 %v6534_v25  ;;  %v2066_v29 = vpop.permute.xlu0 %2065  ;;  %v1912_v6 = vmul.f32 %v5455_v51, %v6403_v10 }
 0x187   : > { %v8588_v35 = vmax.f32 %v6738_v49, 0.0  ;;  %v6767_v37 = vpop.eup %5458  ;;  %v2279_v14 = vsel %vm1810_vm9, 0.0, %v2247_v16  ;;  %v2210_v23 = vmul.f32 %v6654_v39, %v2071_v5  ;;  %v2209_v25 = vmul.f32 %v6654_v39, %v2066_v29  ;;  %2491 = vadd.xlane.f32.xlu1 %v6546_v48 }
 0x188   : > { %2440 = vst.msk [vmem:[#allocation3 + $0x8] sm:$0xff] %vm2435_vm3, %v2403_v21  ;;  %v8598_v8 = vmax.f32 %v6748_v60, 0.0  ;;  %v2278_v10 = vsel %vm1809_vm6, 0.0, %v2246_v43  ;;  %v8707_v51 = vmax.f32 %v6658_v40, 0.0  ;;  %v2505_v53 = vsel %vm2435_vm3, %v6754_v44, 0.0  ;;  %v6796_v43 = vpop.eup %5460 }
 0x189   : > { %v2405_v0 = vmul.f32 %v6471_v4, %v8588_v35  ;;  %v8708_v48 = vmax.f32 %v6611_v13, 0.0  ;;  %v2249_v4 = vadd.f32 %v6672_v20, %v2210_v23  ;;  %v2248_v34 = vadd.f32 %v6672_v20, %v2209_v25  ;;  %v6811_v25 = vpop.eup %5462 }
 0x18a   : > { %v6783_v21 = vadd.f32 %v2279_v14, %v8707_v51  ;;  %v2404_v16 = vmul.f32 %v6448_v32, %v8598_v8  ;;  %v2076_v29 = vpop.permute.xlu1 %2075  ;;  %2494 = vadd.xlane.f32.xlu0 %v6570_v58  ;;  %v1696_v14 = vpop.permute.xlu0 %1695  ;;  %v6803_v32 = vsel %vm2435_vm3, %v6764_v62, 0.0  ;;  %v1951_v13 = vadd.f32 %v6526_v7, %v1912_v6 }
 0x18b   : > { %v6792_v5 = vadd.f32 %v2278_v10, %v8708_v48  ;;  %2442 = vst.msk [vmem:[#allocation3 + $0x18] sm:$0xff] %vm2435_vm3, %v2405_v0  ;;  %v6809_v23 = vsel %vm1819_vm1, 0.0, %v8698_v56  ;;  %v2281_v58 = vsel %vm1812_vm11, 0.0, %v2249_v4  ;;  %v2280_v10 = vsel %vm1811_vm8, 0.0, %v2248_v34  ;;  %2497 = vadd.xlane.f32.xlu1 %v6574_v59 }
 0x18c   : > { %v8596_v40 = vmax.f32 %v6783_v21, 0.0  ;;  %2441 = vst.msk [vmem:[#allocation3 + $0x10] sm:$0xff] %vm2435_vm3, %v2404_v16  ;;  %v2211_v51 = vmul.f32 %v6654_v39, %v2076_v29  ;;  %v8709_v48 = vmax.f32 %v6645_v38, 0.0  ;;  %v6830_v16 = vadd.f32 %v2281_v58, %v2011_v33 }
 0x18d   : > { %v8597_v0 = vmax.f32 %v6792_v5, 0.0  ;;  %v6833_v17 = vadd.f32 %v6323_v30, %v1696_v14  ;;  %vm8710_vm4 = vcmp.eq.f32.partialorder %v6565_v11, 0.0  ;;  %v6846_v38 = vsel %vm1820_vm15, 0.0, %v8698_v56 }
 0x18e   : > { %v2407_v6 = vmul.f32 %v6491_v55, %v8596_v40  ;;  %v6826_v35 = vadd.f32 %v2280_v10, %v8709_v48  ;;  %v2250_v59 = vadd.f32 %v6672_v20, %v2211_v51  ;;  %v6841_v55 = vsel %vm8710_vm4, 0.0, %v1951_v13  ;;  %2500 = vadd.xlane.f32.xlu0 %v6616_v26  ;;  %v1701_v29 = vpop.permute.xlu0 %1700  ;;  %v6855_v13 = vpop.eup %5464 }
 0x18f   : > { %v2406_v50 = vmul.f32 %v6484_v52, %v8597_v0  ;;  %v8593_v33 = vmax.f32 %v6830_v16, 0.0  ;;  %vm1823_vm5 = vcmp.eq.f32.partialorder %v6833_v17, 0.0  ;;  %v2081_v52 = vpop.permute.xlu1 %2080  ;;  %v2600_v4 = vld [vmem:[#allocation3 + $0x6] sm:$0xff]  ;;  %v2511_v14 = vsel %vm2435_vm3, %v6809_v23, 0.0  ;;  %2503 = vadd.xlane.f32.xlu1 %v6733_v63 }
 0x190   : > { %2444 = vst.msk [vmem:[#allocation3 + $0x28] sm:$0xff] %vm2435_vm3, %v2407_v6  ;;  %v8595_v46 = vmax.f32 %v6826_v35, 0.0  ;;  %v3050_v34 = vld [vmem:[#allocation3 + $0x7] sm:$0xff]  ;;  %v2282_v58 = vsel %vm1813_vm10, 0.0, %v2250_v59  ;;  %v1855_v10 = vsel %vm1823_vm5, 1.0, %v6833_v17  ;;  %v2212_v51 = vmul.f32 %v6654_v39, %v2081_v52  ;;  %5221 = vmatprep.mubr.msk.f32.mxu0 %vm2435_vm3, %v2600_v4  ;;  %vm8719_vm10 = vmmov %vm8710_vm4 }
 0x191   : > { %2443 = vst.msk [vmem:[#allocation3 + $0x20] sm:$0xff] %vm2435_vm3, %v2406_v50  ;;  %5271 = vmatprep.mubr.msk.f32.mxu1 %vm2435_vm3, %v3050_v34  ;;  %v6867_v26 = vadd.f32 %v6323_v30, %v1701_v29  ;;  %v2409_v61 = vmul.f32 %v6511_v3, %v8593_v33  ;;  %v6877_v48 = vadd.f32 %v2282_v58, %v2012_v31  ;;  %v2015_v50 = vmax.f32 %v6841_v55, 0.0 }
 0x192   : > { %v2408_v6 = vmul.f32 %v6496_v12, %v8595_v46  ;;  %5466 = vrcp.f32 %v1855_v10  ;;  %v2251_v59 = vadd.f32 %v6672_v20, %v2212_v51  ;;  %v1913_v12 = vmul.f32 %v6707_v54, %v6380_v27  ;;  %2506 = vadd.xlane.f32.xlu0 %v2505_v53  ;;  %v1706_v52 = vpop.permute.xlu0 %1705  ;;  %v8712_v27 = vld [vmem:[#allocation17_spill] sm:$0xff] }
 0x193   : > { %vm1824_vm6 = vcmp.eq.f32.partialorder %v6867_v26, 0.0  ;;  %2446 = vst.msk [vmem:[#allocation3 + $0x38] sm:$0xff] %vm2435_vm3, %v2409_v61  ;;  %v8589_v41 = vmax.f32 %v6877_v48, 0.0  ;;  %v2086_v31 = vpop.permute.xlu1 %2085  ;;  %v2601_v3 = vld [vmem:[#allocation3 + $0xe] sm:$0xff]  ;;  %v2602_v4 = vld [vmem:[#allocation3 + $0x16] sm:$0xff]  ;;  %v2514_v34 = vsel %vm2435_vm3, %v6846_v38, 0.0  ;;  %v1914_v54 = vmul.f32 %v6767_v37, %v8712_v27  ;;  %2509 = vadd.xlane.f32.xlu1 %v6803_v32 }
 0x194   : > { %2445 = vst.msk [vmem:[#allocation3 + $0x30] sm:$0xff] %vm2435_vm3, %v2408_v6  ;;  %v3051_v63 = vld [vmem:[#allocation3 + $0xf] sm:$0xff]  ;;  %vm8711_vm7 = vcmp.eq.f32.partialorder %v6641_v36, 0.0  ;;  %v2283_v58 = vsel %vm1814_vm13, 0.0, %v2251_v59  ;;  %v1856_v53 = vsel %vm1824_vm6, 1.0, %v6867_v26  ;;  %v2213_v10 = vmul.f32 %v6654_v39, %v2086_v31  ;;  %5222 = vmatmul.mubr.msk.f32.vlgmr.msra.gmra.mxu0 %vm2435_vm3, %v2601_v3  ;;  %v3052_v6 = vld [vmem:[#allocation3 + $0x17] sm:$0xff] }
 0x195   : > { %v6893_v29 = vsel %vm8711_vm7, 0.0, %v8698_v56  ;;  %5272 = vmatmul.mubr.msk.f32.vlgmr.msra.gmra.mxu1 %vm2435_vm3, %v3051_v63  ;;  %v6906_v51 = vadd.f32 %v6323_v30, %v1706_v52  ;;  %v8713_v37 = vld [vmem:[#allocation14_spill] sm:$0xff]  ;;  %v6913_v18 = vadd.f32 %v2283_v58, %v2013_v45  ;;  %5224 = vmatprep.mubr.msk.f32.mxu0 %vm2435_vm3, %v2602_v4  ;;  %v1952_v59 = vadd.f32 %v6526_v7, %v1913_v12 }
 0x196   : > { %v2410_v61 = vmul.f32 %v8713_v37, %v8589_v41  ;;  %v2517_v31 = vsel %vm2435_vm3, %v6893_v29, 0.0  ;;  %v2252_v3 = vadd.f32 %v6672_v20, %v2213_v10  ;;  %5274 = vmatprep.mubr.msk.f32.mxu1 %vm2435_vm3, %v3052_v6  ;;  %v6926_v24 = vsel %vm1822_vm0, 0.0, %v8698_v56  ;;  %v8714_v32 = vld [vmem:[#allocation30_spill] sm:$0xff]  ;;  %2512 = vadd.xlane.f32.xlu0 %v2511_v14  ;;  %v1711_v58 = vpop.permute.xlu0 %1710  ;;  %v8715_v6 = vld [vmem:[#allocation7_spill] sm:$0xff] }
 0x197   : > { %vm1825_vm8 = vcmp.eq.f32.partialorder %v6906_v51, 0.0  ;;  %v1953_v45 = vadd.f32 %v6526_v7, %v1914_v54  ;;  %5320 = vmatpush3.msra.mxu0 %v8714_v32  ;;  %v8590_v12 = vmax.f32 %v6913_v18, 0.0  ;;  %5468 = vrcp.f32 %v1856_v53  ;;  %v2091_v52 = vpop.permute.xlu1 %2090  ;;  %5370 = vmatpush3.msra.mxu1 %v8715_v6  ;;  %v8716_v32 = vld [vmem:[#allocation16_spill] sm:$0xff] }
 0x198   : > { %2447 = vst.msk [vmem:[#allocation3 + $0x40] sm:$0xff] %vm2435_vm3, %v2410_v61  ;;  %v1857_v63 = vsel %vm1825_vm8, 1.0, %v6906_v51  ;;  %v2603_v4 = vld [vmem:[#allocation3 + $0x1e] sm:$0xff]  ;;  %v2604_v10 = vld [vmem:[#allocation3 + $0x26] sm:$0xff]  ;;  %v6937_v54 = vsel %vm1817_vm14, 0.0, %v1952_v59  ;;  %v2284_v37 = vsel %vm1815_vm12, 0.0, %v2252_v3  ;;  %v2214_v53 = vmul.f32 %v6654_v39, %v2091_v52  ;;  %2515 = vadd.xlane.f32.xlu1 %v2514_v34 }
 0x199   : > { %v3053_v27 = vld [vmem:[#allocation3 + $0x1f] sm:$0xff]  ;;  %5225 = vmatmul.mubr.msk.f32.gmra.mxu0 %vm2435_vm3, %v2603_v4  ;;  %v6946_v14 = vadd.f32 %v6323_v30, %v1711_v58  ;;  %v3054_v61 = vld [vmem:[#allocation3 + $0x27] sm:$0xff]  ;;  %v1915_v41 = vmul.f32 %v6756_v47, %v8716_v32  ;;  %v8718_v57 = vmax.f32 %v6712_v28, 0.0  ;;  %5470 = vrcp.f32 %v1857_v63 }
 0x19a   : > { %5275 = vmatmul.mubr.msk.f32.gmra.mxu1 %vm2435_vm3, %v3053_v27  ;;  %v8717_v59 = vld [vmem:[#allocation22_spill] sm:$0xff]  ;;  %5227 = vmatprep.mubr.msk.f32.mxu0 %vm2435_vm3, %v2604_v10  ;;  %v2016_v52 = vmax.f32 %v6937_v54, 0.0  ;;  %v2253_v4 = vadd.f32 %v6672_v20, %v2214_v53  ;;  %v2520_v58 = vsel %vm2435_vm3, %v6926_v24, 0.0  ;;  %v6966_v63 = vsel %vm1818_vm2, 0.0, %v1953_v45 }
 0x19b   : > { %v2411_v6 = vmul.f32 %v8717_v59, %v8590_v12  ;;  %v6955_v3 = vadd.f32 %v2284_v37, %v8718_v57  ;;  %vm1826_vm9 = vcmp.eq.f32.partialorder %v6946_v14, 0.0  ;;  %5277 = vmatprep.mubr.msk.f32.mxu1 %vm2435_vm3, %v3054_v61  ;;  %v2605_v47 = vld [vmem:[#allocation3 + $0x2e] sm:$0xff]  ;;  %v2606_v28 = vld [vmem:[#allocation3 + $0x36] sm:$0xff]  ;;  %v2096_v54 = vpop.permute.xlu1 %2095  ;;  %2518 = vadd.xlane.f32.xlu0 %v2517_v31  ;;  %v1716_v37 = vpop.permute.xlu0 %1715  ;;  %v2017_v61 = vmax.f32 %v6966_v63, 0.0 }
 0x19c   : > { %v3055_v27 = vld [vmem:[#allocation3 + $0x2f] sm:$0xff]  ;;  %v1858_v10 = vsel %vm1826_vm9, 1.0, %v6946_v14  ;;  %v3056_v53 = vld [vmem:[#allocation3 + $0x37] sm:$0xff]  ;;  %v6977_v32 = vsel %vm1823_vm5, 0.0, %v8698_v56  ;;  %v2285_v45 = vsel %vm8719_vm10, 0.0, %v2253_v4  ;;  %v2215_v59 = vmul.f32 %v6654_v39, %v2096_v54  ;;  %2521 = vadd.xlane.f32.xlu1 %v2520_v58 }
 0x19d   : > { %2448 = vst.msk [vmem:[#allocation3 + $0x48] sm:$0xff] %vm2435_vm3, %v2411_v6  ;;  %v8591_v34 = vmax.f32 %v6955_v3, 0.0  ;;  %5472 = vrcp.f32 %v1858_v10  ;;  %5228 = vmatmul.mubr.msk.f32.gmra.mxu0 %vm2435_vm3, %v2605_v47  ;;  %v6985_v31 = vadd.f32 %v6323_v30, %v1716_v37  ;;  %v8720_v6 = vld [vmem:[#allocation23_spill] sm:$0xff]  ;;  %v6992_v12 = vadd.f32 %v2285_v45, %v2015_v50 }
 0x19e   : > { %5278 = vmatmul.mubr.msk.f32.gmra.mxu1 %vm2435_vm3, %v3055_v27  ;;  %5230 = vmatprep.mubr.msk.f32.mxu0 %vm2435_vm3, %v2606_v28  ;;  %v6998_v11 = vsel %vm1824_vm6, 0.0, %v8698_v56  ;;  %v1954_v4 = vadd.f32 %v6526_v7, %v1915_v41  ;;  %v2254_v47 = vadd.f32 %v6672_v20, %v2215_v59  ;;  %v2523_v50 = vsel %vm2435_vm3, %v6977_v32, 0.0 }
 0x19f   : > { %v2412_v57 = vmul.f32 %v8720_v6, %v8591_v34  ;;  %vm1827_vm11 = vcmp.eq.f32.partialorder %v6985_v31, 0.0  ;;  %5280 = vmatprep.mubr.msk.f32.mxu1 %vm2435_vm3, %v3056_v53  ;;  %v2607_v27 = vld [vmem:[#allocation3 + $0x3e] sm:$0xff]  ;;  %v7009_v58 = vsel %vm1825_vm8, 0.0, %v8698_v56  ;;  %v7011_v28 = vpop.eup %5466  ;;  %v8592_v41 = vmax.f32 %v6992_v12, 0.0  ;;  %v2101_v54 = vpop.permute.xlu1 %2100  ;;  %2524 = vadd.xlane.f32.xlu0 %v2523_v50 }
 0x1a0   : > { %v3057_v55 = vld [vmem:[#allocation3 + $0x3f] sm:$0xff]  ;;  %v1859_v10 = vsel %vm1827_vm11, 1.0, %v6985_v31  ;;  %v1721_v37 = vpop.permute.xlu0 %1720  ;;  %v2526_v53 = vsel %vm2435_vm3, %v6998_v11, 0.0  ;;  %v1986_v45 = vsel %vm1819_vm1, 0.0, %v1954_v4  ;;  %v2286_v59 = vsel %vm1817_vm14, 0.0, %v2254_v47 }
 0x1a1   : > { %2449 = vst.msk [vmem:[#allocation3 + $0x50] sm:$0xff] %vm2435_vm3, %v2412_v57  ;;  %5474 = vrcp.f32 %v1859_v10  ;;  %v2216_v6 = vmul.f32 %v6654_v39, %v2101_v54  ;;  %5231 = vmatmul.mubr.msk.f32.gmra.mxu0 %vm2435_vm3, %v2607_v27  ;;  %v7028_v57 = vadd.f32 %v6323_v30, %v1721_v37  ;;  %v2413_v50 = vmul.f32 %v6627_v19, %v8592_v41  ;;  %v8721_v54 = vld [vmem:[#allocation19_spill] sm:$0xff] }
 0x1a2   : > { %5281 = vmatmul.mubr.msk.f32.gmra.mxu1 %vm2435_vm3, %v3057_v55  ;;  %v7033_v34 = vadd.f32 %v2286_v59, %v2016_v52  ;;  %2527 = vadd.xlane.f32.xlu1 %v2526_v53  ;;  %v2529_v42 = vsel %vm2435_vm3, %v7009_v58, 0.0  ;;  %v7040_v4 = vsel %vm1826_vm9, 0.0, %v8698_v56  ;;  %v2018_v27 = vmax.f32 %v1986_v45, 0.0  ;;  %v7429_v31 = vld [vmem:[%s8570_s5] ss:$0 sm:$0xff] }
 0x1a3   : > { %v2255_v47 = vadd.f32 %v6672_v20, %v2216_v6  ;;  %vm1828_vm12 = vcmp.eq.f32.partialorder %v7028_v57, 0.0  ;;  %v1916_v19 = vmul.f32 %v6811_v25, %v8721_v54  ;;  %2450 = vst.msk [vmem:[#allocation3 + $0x58] sm:$0xff] %vm2435_vm3, %v2413_v50  ;;  %v2106_v53 = vpop.permute.xlu1 %2105  ;;  %v2532_v45 = vsel %vm2435_vm3, %v7040_v4, 0.0  ;;  %2530 = vadd.xlane.f32.xlu0 %v2529_v42 }
 0x1a4   : > { %v2608_v55 = vld [vmem:[#allocation3 + $0x46] sm:$0xff]  ;;  %v8594_v52 = vmax.f32 %v7033_v34, 0.0  ;;  %v1860_v37 = vsel %vm1828_vm12, 1.0, %v7028_v57  ;;  %v1726_v59 = vpop.permute.xlu0 %1725  ;;  %v7058_v25 = vsel %vm1827_vm11, 0.0, %v8698_v56  ;;  %v7060_v6 = vpop.eup %5468  ;;  %v2217_v54 = vmul.f32 %v6654_v39, %v2106_v53 }
 0x1a5   : > { %v3058_v10 = vld [vmem:[#allocation3 + $0x47] sm:$0xff]  ;;  %5233 = vmatprep.mubr.msk.f32.mxu0 %vm2435_vm3, %v2608_v55  ;;  %v2287_v50 = vsel %vm1818_vm2, 0.0, %v2255_v47  ;;  %5476 = vrcp.f32 %v1860_v37  ;;  %v7066_v55 = vadd.f32 %v6323_v30, %v1726_v59  ;;  %v1955_v33 = vadd.f32 %v6526_v7, %v1916_v19 }
 0x1a6   : > { %5283 = vmatprep.mubr.msk.f32.mxu1 %vm2435_vm3, %v3058_v10  ;;  %v2414_v10 = vmul.f32 %v6754_v44, %v8594_v52  ;;  %v7073_v41 = vadd.f32 %v2287_v50, %v2017_v61  ;;  %2533 = vadd.xlane.f32.xlu1 %v2532_v45  ;;  %v7079_v2 = vsel %vm1828_vm12, 0.0, %v8698_v56  ;;  %v7081_v42 = vpop.eup %5470  ;;  %v2256_v47 = vadd.f32 %v6672_v20, %v2217_v54  ;;  %v8723_v61 = vld [vmem:[#allocation18_spill] sm:$0xff] }
 0x1a7   : > { %vm1829_vm13 = vcmp.eq.f32.partialorder %v7066_v55, 0.0  ;;  %v2535_v63 = vsel %vm2435_vm3, %v7058_v25, 0.0  ;;  %v1917_v53 = vmul.f32 %v6796_v43, %v8723_v61  ;;  %v2111_v45 = vpop.permute.xlu1 %2110  ;;  %v1987_v50 = vsel %vm1820_vm15, 0.0, %v1955_v33 }
 0x1a8   : > { %8722 = vst [vmem:[#allocation24_spill] sm:$0xff] %v7073_v41  ;;  %v2609_v37 = vld [vmem:[#allocation3 + $0x4e] sm:$0xff]  ;;  %2451 = vst.msk [vmem:[#allocation3 + $0x60] sm:$0xff] %vm2435_vm3, %v2414_v10  ;;  %v8601_v19 = vmax.f32 %v7073_v41, 0.0  ;;  %v1861_v59 = vsel %vm1829_vm13, 1.0, %v7066_v55  ;;  %v1731_v54 = vpop.permute.xlu0 %1730  ;;  %v7101_v43 = vsel %vm1829_vm13, 0.0, %v8698_v56  ;;  %v2218_v61 = vmul.f32 %v6654_v39, %v2111_v45  ;;  %2536 = vadd.xlane.f32.xlu0 %v2535_v63 }
 0x1a9   : > { %v3059_v44 = vld [vmem:[#allocation3 + $0x4f] sm:$0xff]  ;;  %5234 = vmatmul.mubr.msk.f32.gmra.mxu0 %vm2435_vm3, %v2609_v37  ;;  %v2288_v10 = vsel %vm1819_vm1, 0.0, %v2256_v47  ;;  %5478 = vrcp.f32 %v1861_v59  ;;  %v2538_v33 = vsel %vm2435_vm3, %v7079_v2, 0.0  ;;  %v7114_v46 = vadd.f32 %v6323_v30, %v1731_v54  ;;  %v8725_v47 = vld [vmem:[#allocation32_spill] sm:$0xff]  ;;  %vm8726_vm1 = vmmov %vm8711_vm7 }
 0x1aa   : > { %5284 = vmatmul.mubr.msk.f32.gmra.mxu1 %vm2435_vm3, %v3059_v44  ;;  %v5473_v52 = vpop.eup %5472  ;;  %v2415_v37 = vmul.f32 %v6764_v62, %v8601_v19  ;;  %v7111_v44 = vadd.f32 %v2288_v10, %v2018_v27  ;;  %2539 = vadd.xlane.f32.xlu1 %v2538_v33  ;;  %v1956_v9 = vadd.f32 %v6526_v7, %v1917_v53  ;;  %v2019_v45 = vmax.f32 %v1987_v50, 0.0  ;;  %v2610_v40 = vld [vmem:[#allocation3 + $0x56] sm:$0xff]  ;;  %v8727_v50 = vld [vmem:[#allocation21_spill] sm:$0xff]  ;;  %vm8731_vm2 = vmmov %vm8726_vm1 }
 0x1ab   : > { %v1922_v59 = vmul.f32 %v5473_v52, %v8725_v47  ;;  %v2257_v63 = vadd.f32 %v6672_v20, %v2218_v61  ;;  %v3060_v0 = vld [vmem:[#allocation3 + $0x57] sm:$0xff]  ;;  %v2541_v8 = vsel %vm2435_vm3, %v7101_v43, 0.0  ;;  %vm1830_vm14 = vcmp.eq.f32.partialorder %v7114_v46, 0.0  ;;  %v2116_v53 = vpop.permute.xlu1 %2115  ;;  %5236 = vmatprep.mubr.msk.f32.mxu0 %vm2435_vm3, %v2610_v40 }
 0x1ac   : > { %8724 = vst [vmem:[#allocation25_spill] sm:$0xff] %v7111_v44  ;;  %2452 = vst.msk [vmem:[#allocation3 + $0x68] sm:$0xff] %vm2435_vm3, %v2415_v37  ;;  %v8600_v62 = vmax.f32 %v7111_v44, 0.0  ;;  %v1988_v27 = vsel %vm8726_vm1, 0.0, %v1956_v9  ;;  %5286 = vmatprep.mubr.msk.f32.mxu1 %vm2435_vm3, %v3060_v0  ;;  %v1736_v52 = vpop.permute.xlu0 %1735  ;;  %v1918_v54 = vmul.f32 %v6855_v13, %v8727_v50  ;;  %v1862_v33 = vsel %vm1830_vm14, 1.0, %v7114_v46  ;;  %2542 = vadd.xlane.f32.xlu0 %v2541_v8  ;;  %v8728_v37 = vld [vmem:[#allocation20_spill] sm:$0xff] }
 0x1ad   : > { %v1961_v10 = vadd.f32 %v6526_v7, %v1922_v59  ;;  %v2289_v61 = vsel %vm1820_vm15, 0.0, %v2257_v63  ;;  %v1919_v9 = vmul.f32 %v7011_v28, %v8728_v37  ;;  %5480 = vrcp.f32 %v1862_v33 }
 0x1ae   : > { %v5475_v40 = vpop.eup %5474  ;;  %v2416_v0 = vmul.f32 %v6809_v23, %v8600_v62  ;;  %v7141_v47 = vadd.f32 %v2289_v61, %v2019_v45  ;;  %v2219_v13 = vmul.f32 %v6654_v39, %v2116_v53  ;;  %v2020_v63 = vmax.f32 %v1988_v27, 0.0 }
 0x1af   : > { %v1923_v59 = vmul.f32 %v5475_v40, %v8730_v1  ;;  %v7146_v50 = vadd.f32 %v6323_v30, %v1736_v52  ;;  %v7151_v8 = vsel %vm1830_vm14, 0.0, %v8698_v56  ;;  %v2611_v28 = vld [vmem:[#allocation3 + $0x5e] sm:$0xff]  ;;  %v7155_v23 = vsel %vm1826_vm9, 0.0, %v1961_v10  ;;  %v2121_v53 = vpop.permute.xlu1 %2120 }
 0x1b0   : > { %8729 = vst [vmem:[#allocation26_spill] sm:$0xff] %v7141_v47  ;;  %v3061_v37 = vld [vmem:[#allocation3 + $0x5f] sm:$0xff]  ;;  %2453 = vst.msk [vmem:[#allocation3 + $0x70] sm:$0xff] %vm2435_vm3, %v2416_v0  ;;  %v8599_v45 = vmax.f32 %v7141_v47, 0.0  ;;  %v2258_v27 = vadd.f32 %v6672_v20, %v2219_v13  ;;  %v2544_v30 = vsel %vm2435_vm3, %v7151_v8, 0.0  ;;  %5237 = vmatmul.mubr.msk.f32.gmra.mxu0 %vm2435_vm3, %v2611_v28  ;;  %v1741_v52 = vpop.permute.xlu0 %1740  ;;  %v1957_v10 = vadd.f32 %v6526_v7, %v1918_v54 }
 0x1b1   : > { %5287 = vmatmul.mubr.msk.f32.gmra.mxu1 %vm2435_vm3, %v3061_v37  ;;  %v1962_v61 = vadd.f32 %v6526_v7, %v1923_v59  ;;  %vm1831_vm15 = vcmp.eq.f32.partialorder %v7146_v50, 0.0  ;;  %2545 = vadd.xlane.f32.xlu1 %v2544_v30  ;;  %v2220_v33 = vmul.f32 %v6654_v39, %v2121_v53  ;;  %v7179_v59 = vld [vmem:[%s8568_s3] ss:$0 sm:$0xff]  ;;  %v8732_v37 = vld [vmem:[#allocation34_spill] sm:$0xff] }
 0x1b2   : > { %v5477_v40 = vpop.eup %5476  ;;  %v2417_v0 = vmul.f32 %v6846_v38, %v8599_v45  ;;  %v2290_v13 = vsel %vm8731_vm2, 0.0, %v2258_v27  ;;  %v1863_v1 = vsel %vm1831_vm15, 1.0, %v7146_v50  ;;  %v7182_v54 = vadd.f32 %v7179_v59, %v1741_v52 }
 0x1b3   : > { %v1924_v30 = vmul.f32 %v5477_v40, %v8732_v37  ;;  %v7186_v38 = vadd.f32 %v2290_v13, %v2020_v63  ;;  %5482 = vrcp.f32 %v1863_v1  ;;  %v2612_v36 = vld [vmem:[#allocation3 + $0x66] sm:$0xff]  ;;  %v7190_v53 = vsel %vm1827_vm11, 0.0, %v1962_v61  ;;  %v2126_v62 = vpop.permute.xlu1 %2125 }
 0x1b4   : > { %v3062_v27 = vld [vmem:[#allocation3 + $0x67] sm:$0xff]  ;;  %2454 = vst.msk [vmem:[#allocation3 + $0x78] sm:$0xff] %vm2435_vm3, %v2417_v0  ;;  %v1989_v45 = vsel %vm1822_vm0, 0.0, %v1957_v10  ;;  %v2259_v52 = vadd.f32 %v6672_v20, %v2220_v33  ;;  %vm1832_vm4 = vcmp.eq.f32.partialorder %v7182_v54, 0.0  ;;  %5239 = vmatprep.mubr.msk.f32.mxu0 %vm2435_vm3, %v2612_v36  ;;  %v1746_v63 = vpop.permute.xlu0 %1745  ;;  %v7209_v1 = vsel %vm1831_vm15, 0.0, %v8698_v56 }
 0x1b5   : > { %8733 = vst [vmem:[#allocation27_spill] sm:$0xff] %v7186_v38  ;;  %5289 = vmatprep.mubr.msk.f32.mxu1 %vm2435_vm3, %v3062_v27  ;;  %v1963_v40 = vadd.f32 %v6526_v7, %v1924_v30  ;;  %v8603_v61 = vmax.f32 %v7186_v38, 0.0  ;;  %v2021_v13 = vmax.f32 %v1989_v45, 0.0  ;;  %v1864_v0 = vsel %vm1832_vm4, 1.0, %v7182_v54  ;;  %v8734_v45 = vld [vmem:[#allocation33_spill] sm:$0xff] }
 0x1b6   : > { %v5479_v10 = vpop.eup %5478  ;;  %v2291_v33 = vsel %vm1822_vm0, 0.0, %v2259_v52  ;;  %5484 = vrcp.f32 %v1864_v0  ;;  %v1958_v37 = vadd.f32 %v6526_v7, %v1919_v9  ;;  %v2547_v28 = vsel %vm2435_vm3, %v7209_v1, 0.0 }
 0x1b7   : > { %v7214_v30 = vsel %vm1828_vm12, 0.0, %v1963_v40  ;;  %v1925_v36 = vmul.f32 %v5479_v10, %v8734_v45  ;;  %v2418_v27 = vmul.f32 %v6893_v29, %v8603_v61  ;;  %v7220_v22 = vadd.f32 %v2291_v33, %v2021_v13  ;;  %v2613_v52 = vld [vmem:[#allocation3 + $0x6e] sm:$0xff]  ;;  %v2131_v47 = vpop.permute.xlu1 %2130  ;;  %2548 = vadd.xlane.f32.xlu0 %v2547_v28 }
 0x1b8   : > { %v3063_v0 = vld [vmem:[#allocation3 + $0x6f] sm:$0xff]  ;;  %v1990_v9 = vsel %vm1823_vm5, 0.0, %v1958_v37  ;;  %v2221_v40 = vmul.f32 %v6654_v39, %v2126_v62  ;;  %5240 = vmatmul.mubr.msk.f32.gmra.mxu0 %vm2435_vm3, %v2613_v52  ;;  %v1751_v29 = vpop.permute.xlu0 %1750  ;;  %v7235_v45 = vadd.f32 %v7179_v59, %v1746_v63  ;;  %v7241_v37 = vsel %vm1832_vm4, 0.0, %v8698_v56  ;;  %v8736_v52 = vld [vmem:[#allocation13_spill] sm:$0xff] }
 0x1b9   : > { %8735 = vst [vmem:[#allocation28_spill] sm:$0xff] %v7220_v22  ;;  %5290 = vmatmul.mubr.msk.f32.gmra.mxu1 %vm2435_vm3, %v3063_v0  ;;  %v1964_v10 = vadd.f32 %v6526_v7, %v1925_v36  ;;  %2455 = vst.msk [vmem:[#allocation3 + $0x80] sm:$0xff] %vm2435_vm3, %v2418_v27  ;;  %v8604_v33 = vmax.f32 %v7220_v22, 0.0  ;;  %v1920_v0 = vmul.f32 %v7060_v6, %v8736_v52  ;;  %v2022_v27 = vmax.f32 %v1990_v9, 0.0  ;;  %v8737_v6 = vld [vmem:[#allocation6_spill] sm:$0xff] }
 0x1ba   : > { %v2260_v62 = vadd.f32 %v6672_v20, %v2221_v40  ;;  %v2222_v36 = vmul.f32 %v6654_v39, %v2131_v47  ;;  %v5481_v61 = vpop.eup %5480  ;;  %vm1833_vm0 = vcmp.eq.f32.partialorder %v7235_v45, 0.0  ;;  %v2550_v63 = vsel %vm2435_vm3, %v7241_v37, 0.0 }
 0x1bb   : > { %v2419_v28 = vmul.f32 %v6926_v24, %v8604_v33  ;;  %v2614_v40 = vld [vmem:[#allocation3 + $0x76] sm:$0xff]  ;;  %v7254_v19 = vsel %vm1829_vm13, 0.0, %v1964_v10  ;;  %v1926_v52 = vmul.f32 %v5481_v61, %v8737_v6  ;;  %v1865_v24 = vsel %vm1833_vm0, 1.0, %v7235_v45  ;;  %2551 = vadd.xlane.f32.xlu1 %v2550_v63  ;;  %v2136_v9 = vpop.permute.xlu1 %2135 }
 0x1bc   : > { %v3064_v13 = vld [vmem:[#allocation3 + $0x77] sm:$0xff]  ;;  %v2292_v47 = vsel %vm1823_vm5, 0.0, %v2260_v62  ;;  %5242 = vmatprep.mubr.msk.f32.mxu0 %vm2435_vm3, %v2614_v40  ;;  %v1756_v33 = vpop.permute.xlu0 %1755  ;;  %5486 = vrcp.f32 %v1865_v24  ;;  %v1959_v10 = vadd.f32 %v6526_v7, %v1920_v0  ;;  %v2261_v61 = vadd.f32 %v6672_v20, %v2222_v36 }
 0x1bd   : > { %2456 = vst.msk [vmem:[#allocation3 + $0x90] sm:$0xff] %vm2435_vm3, %v2419_v28  ;;  %v7264_v22 = vadd.f32 %v2292_v47, %v2022_v27  ;;  %5292 = vmatprep.mubr.msk.f32.mxu1 %vm2435_vm3, %v3064_v13  ;;  %v1965_v17 = vadd.f32 %v6526_v7, %v1926_v52  ;;  %v7271_v62 = vadd.f32 %v7179_v59, %v1751_v29  ;;  %v7276_v63 = vsel %vm1833_vm0, 0.0, %v8698_v56  ;;  %v8739_v28 = vld [vmem:[#allocation29_spill] sm:$0xff] }
 0x1be   : > { %v1921_v27 = vmul.f32 %v7081_v42, %v8739_v28  ;;  %v1991_v0 = vsel %vm1824_vm6, 0.0, %v1959_v10  ;;  %v2293_v13 = vsel %vm1824_vm6, 0.0, %v2261_v61  ;;  %v2553_v29 = vsel %vm2435_vm3, %v7276_v63, 0.0  ;;  %v8740_v10 = vld [vmem:[#allocation5_spill] sm:$0xff] }
 0x1bf   : > { %8738 = vst [vmem:[#allocation17_spill] sm:$0xff] %v7264_v22  ;;  %v2023_v52 = vmax.f32 %v1991_v0, 0.0  ;;  %vm1834_vm5 = vcmp.eq.f32.partialorder %v7271_v62, 0.0  ;;  %2554 = vadd.xlane.f32.xlu0 %v2553_v29  ;;  %v2141_v47 = vpop.permute.xlu1 %2140  ;;  %v7292_v26 = vsel %vm1830_vm14, 0.0, %v1965_v17  ;;  %v8741_v38 = vmax.f32 %v7264_v22, 0.0 }
 0x1c0   : > { %v5483_v36 = vpop.eup %5482  ;;  %v1960_v42 = vadd.f32 %v6526_v7, %v1921_v27  ;;  %v2615_v24 = vld [vmem:[#allocation3 + $0x7e] sm:$0xff]  ;;  %v1761_v40 = vpop.permute.xlu0 %1760  ;;  %v1866_v0 = vsel %vm1834_vm5, 1.0, %v7271_v62  ;;  %v2223_v27 = vmul.f32 %v6654_v39, %v2136_v9 }
 0x1c1   : > { %v3065_v28 = vld [vmem:[#allocation3 + $0x7f] sm:$0xff]  ;;  %v1927_v61 = vmul.f32 %v5483_v36, %v8740_v10  ;;  %v2420_v6 = vmul.f32 %v6977_v32, %v8741_v38  ;;  %5243 = vmatmul.mubr.msk.f32.gmra.mxu0 %vm2435_vm3, %v2615_v24  ;;  %v7303_v7 = vadd.f32 %v2293_v13, %v2023_v52  ;;  %5488 = vrcp.f32 %v1866_v0  ;;  %v7311_v32 = vld [vmem:[%s8567_s2] ss:$0 sm:$0xff] }
 0x1c2   : > { %5293 = vmatmul.mubr.msk.f32.gmra.mxu1 %vm2435_vm3, %v3065_v28  ;;  %v1992_v17 = vsel %vm1825_vm8, 0.0, %v1960_v42  ;;  %v7316_v13 = vadd.f32 %v7179_v59, %v1756_v33  ;;  %v7321_v52 = vsel %vm1834_vm5, 0.0, %v8698_v56  ;;  %v8743_v9 = vld [vmem:[#allocation9_spill] sm:$0xff]  ;;  %v2262_v28 = vadd.f32 %v6672_v20, %v2223_v27 }
 0x1c3   : > { %8742 = vst [vmem:[#allocation14_spill] sm:$0xff] %v7303_v7  ;;  %v5485_v29 = vpop.eup %5484  ;;  %v1966_v38 = vadd.f32 %v7311_v32, %v1927_v61  ;;  %2457 = vst.msk [vmem:[#allocation3 + $0x98] sm:$0xff] %vm2435_vm3, %v2420_v6  ;;  %v2024_v36 = vmax.f32 %v1992_v17, 0.0  ;;  %v2556_v10 = vsel %vm2435_vm3, %v7321_v52, 0.0  ;;  %v2146_v61 = vpop.permute.xlu1 %2145  ;;  %v8744_v22 = vmax.f32 %v7303_v7, 0.0 }
 0x1c4   : > { %v1928_v42 = vmul.f32 %v5485_v29, %v8743_v9  ;;  %v2616_v6 = vld [vmem:[#allocation3 + $0x8e] sm:$0xff]  ;;  %v1766_v17 = vpop.permute.xlu0 %1765  ;;  %vm1835_vm6 = vcmp.eq.f32.partialorder %v7316_v13, 0.0  ;;  %2557 = vadd.xlane.f32.xlu1 %v2556_v10  ;;  %v2224_v29 = vmul.f32 %v6654_v39, %v2141_v47  ;;  %v7335_v9 = vadd.f32 %v7179_v59, %v1761_v40 }
 0x1c5   : > { %v3066_v0 = vld [vmem:[#allocation3 + $0x8f] sm:$0xff]  ;;  %v7330_v33 = vsel %vm1831_vm15, 0.0, %v1966_v38  ;;  %5245 = vmatprep.mubr.msk.f32.mxu0 %vm2435_vm3, %v2616_v6  ;;  %v2421_v44 = vmul.f32 %v6998_v11, %v8744_v22  ;;  %v2294_v38 = vsel %vm1825_vm8, 0.0, %v2262_v28  ;;  %v1867_v40 = vsel %vm1835_vm6, 1.0, %v7316_v13  ;;  %v8746_v6 = vld [vmem:[#allocation8_spill] sm:$0xff] }
 0x1c6   : > { %v1967_v24 = vadd.f32 %v7311_v32, %v1928_v42  ;;  %5295 = vmatprep.mubr.msk.f32.mxu1 %vm2435_vm3, %v3066_v0  ;;  %v7346_v10 = vadd.f32 %v2294_v38, %v2024_v36  ;;  %v2263_v47 = vadd.f32 %v6672_v20, %v2224_v29  ;;  %vm1836_vm7 = vcmp.eq.f32.partialorder %v7335_v9, 0.0 }
 0x1c7   : > { %2458 = vst.msk [vmem:[#allocation3 + $0xa0] sm:$0xff] %vm2435_vm3, %v2421_v44  ;;  %5490 = vrcp.f32 %v1867_v40  ;;  %v1868_v51 = vsel %vm1836_vm7, 1.0, %v7335_v9  ;;  %v7361_v11 = vsel %vm1835_vm6, 0.0, %v8698_v56  ;;  %v2156_v22 = vpop.permute.xlu1 %2155  ;;  %v8745_v29 = vmax.f32 %v7155_v23, 0.0 }
 0x1c8   : > { %v2151_v36 = vpop.permute.xlu0 %2150  ;;  %v7365_v28 = vsel %vm1832_vm4, 0.0, %v1967_v24  ;;  %v2295_v44 = vsel %vm1826_vm9, 0.0, %v2263_v47  ;;  %5492 = vrcp.f32 %v1868_v51  ;;  %v2559_v40 = vsel %vm2435_vm3, %v7361_v11, 0.0 }
 0x1c9   : > { %v5487_v0 = vpop.eup %5486  ;;  %v7372_v38 = vadd.f32 %v2295_v44, %v8745_v29  ;;  %v2225_v27 = vmul.f32 %v6654_v39, %v2146_v61  ;;  %v7378_v42 = vadd.f32 %v7179_v59, %v1766_v17  ;;  %v8747_v14 = vmax.f32 %v7346_v10, 0.0  ;;  %2560 = vadd.xlane.f32.xlu0 %v2559_v40 }
 0x1ca   : > { %v2617_v24 = vld [vmem:[#allocation3 + $0x96] sm:$0xff]  ;;  %v1929_v41 = vmul.f32 %v5487_v0, %v8746_v6  ;;  %v7387_v23 = vsel %vm1836_vm7, 0.0, %v8698_v56  ;;  %v2227_v51 = vmul.f32 %v6654_v39, %v2156_v22  ;;  %v7406_v22 = vld [vmem:[%s8569_s4] ss:$0 sm:$0xff]  ;;  %v2031_v40 = vmax.f32 %v7365_v28, 0.0 }
 0x1cb   : > { %v3067_v7 = vld [vmem:[#allocation3 + $0x97] sm:$0xff]  ;;  %v2422_v47 = vmul.f32 %v7009_v58, %v8747_v14  ;;  %5246 = vmatmul.mubr.msk.f32.gmra.mxu0 %vm2435_vm3, %v2617_v24  ;;  %v2359_v59 = vmax.f32 %v7372_v38, 0.0  ;;  %v2264_v61 = vadd.f32 %v6672_v20, %v2225_v27  ;;  %vm1837_vm8 = vcmp.eq.f32.partialorder %v7378_v42, 0.0  ;;  %v2166_v58 = vpop.permute.xlu1 %2165 }
 0x1cc   : > { %v2562_v17 = vsel %vm2435_vm3, %v7387_v23, 0.0  ;;  %5296 = vmatmul.mubr.msk.f32.gmra.mxu1 %vm2435_vm3, %v3067_v7  ;;  %v2161_v6 = vpop.permute.xlu0 %2160  ;;  %v1968_v44 = vadd.f32 %v7311_v32, %v1929_v41  ;;  %v1869_v39 = vsel %vm1837_vm8, 1.0, %v7378_v42  ;;  %v2266_v27 = vadd.f32 %v6672_v20, %v2227_v51 }
 0x1cd   : > { %2459 = vst.msk [vmem:[#allocation3 + $0xa8] sm:$0xff] %vm2435_vm3, %v2422_v47  ;;  %2563 = vadd.xlane.f32.xlu1 %v2562_v17  ;;  %v2226_v7 = vmul.f32 %v7406_v22, %v2151_v36  ;;  %v2423_v41 = vmul.f32 %v7040_v4, %v2359_v59  ;;  %v2296_v0 = vsel %vm1827_vm11, 0.0, %v2264_v61  ;;  %5494 = vrcp.f32 %v1869_v39  ;;  %v8749_v61 = vld [vmem:[#allocation11_spill] sm:$0xff] }
 0x1ce   : > { %v7417_v29 = vsel %vm1837_vm8, 0.0, %v8698_v56  ;;  %v5489_v20 = vpop.eup %5488  ;;  %v8748_v24 = vmax.f32 %v7190_v53, 0.0  ;;  %v2298_v36 = vsel %vm1829_vm13, 0.0, %v2266_v27  ;;  %v2618_v47 = vld [vmem:[#allocation3 + $0x9e] sm:$0xff]  ;;  %v2000_v51 = vsel %vm1833_vm0, 0.0, %v1968_v44 }
 0x1cf   : > { %v2265_v4 = vadd.f32 %v7429_v31, %v2226_v7  ;;  %v3068_v56 = vld [vmem:[#allocation3 + $0x9f] sm:$0xff]  ;;  %v1930_v17 = vmul.f32 %v5489_v20, %v8749_v61  ;;  %2460 = vst.msk [vmem:[#allocation3 + $0xb0] sm:$0xff] %vm2435_vm3, %v2423_v41  ;;  %v8750_v53 = vmax.f32 %v7254_v19, 0.0  ;;  %v2565_v39 = vsel %vm2435_vm3, %v7417_v29, 0.0  ;;  %5248 = vmatprep.mubr.msk.f32.mxu0 %vm2435_vm3, %v2618_v47  ;;  %v2176_v27 = vpop.permute.xlu1 %2175 }
 0x1d0   : > { %v7422_v14 = vadd.f32 %v2296_v0, %v8748_v24  ;;  %5298 = vmatprep.mubr.msk.f32.mxu1 %vm2435_vm3, %v3068_v56  ;;  %v2171_v7 = vpop.permute.xlu0 %2170  ;;  %2566 = vadd.xlane.f32.xlu0 %v2565_v39  ;;  %v2229_v41 = vmul.f32 %v7406_v22, %v2166_v58  ;;  %v2228_v19 = vmul.f32 %v7406_v22, %v2161_v6  ;;  %v2032_v61 = vmax.f32 %v2000_v51, 0.0 }
 0x1d1   : > { %v7438_v55 = vadd.f32 %v2298_v36, %v8750_v53  ;;  %v2297_v44 = vsel %vm1828_vm12, 0.0, %v2265_v4  ;;  %v1969_v20 = vadd.f32 %v7311_v32, %v1930_v17  ;;  %v8751_v36 = vmax.f32 %v7214_v30, 0.0 }
 0x1d2   : > { %v2360_v0 = vmax.f32 %v7422_v14, 0.0  ;;  %v2231_v56 = vmul.f32 %v7406_v22, %v2176_v27  ;;  %v2268_v4 = vadd.f32 %v7429_v31, %v2229_v41  ;;  %v2267_v58 = vadd.f32 %v7429_v31, %v2228_v19 }
 0x1d3   : > { %v8611_v24 = vmax.f32 %v7438_v55, 0.0  ;;  %v7453_v47 = vadd.f32 %v2297_v44, %v8751_v36  ;;  %v2230_v6 = vmul.f32 %v7406_v22, %v2171_v7  ;;  %v2186_v44 = vpop.permute.xlu1 %2185  ;;  %vm8767_vm9 = vcmask 7168  }
 0x1d4   : > { %v2424_v57 = vmul.f32 %v7058_v25, %v2360_v0  ;;  %v2270_v53 = vadd.f32 %v7429_v31, %v2231_v56  ;;  %v2619_v39 = vld [vmem:[#allocation3 + $0xa6] sm:$0xff]  ;;  %v5491_v36 = vpop.eup %5490  ;;  %v2001_v25 = vsel %vm1834_vm5, 0.0, %v1969_v20  ;;  %v2300_v51 = vsel %vm1831_vm15, 0.0, %v2268_v4  ;;  %v2181_v41 = vpop.permute.xlu0 %2180  ;;  %vm8770_vm10 = vmmov %vm8767_vm9 }
 0x1d5   : > { %v2426_v17 = vmul.f32 %v7101_v43, %v8611_v24  ;;  %v2361_v30 = vmax.f32 %v7453_v47, 0.0  ;;  %v3069_v27 = vld [vmem:[#allocation3 + $0xa7] sm:$0xff]  ;;  %v2299_v7 = vsel %vm1830_vm14, 0.0, %v2267_v58  ;;  %5249 = vmatmul.mubr.msk.f32.gmra.mxu0 %vm2435_vm3, %v2619_v39  ;;  %v2269_v43 = vadd.f32 %v7429_v31, %v2230_v6  ;;  %v5493_v19 = vpop.eup %5492  ;;  %v8755_v58 = vld [vmem:[#allocation15_spill] sm:$0xff]  ;;  %vm8773_vm11 = vmmov %vm8767_vm9 }
 0x1d6   : > { %2461 = vst.msk [vmem:[#allocation3 + $0xb8] sm:$0xff] %vm2435_vm3, %v2424_v57  ;;  %5299 = vmatmul.mubr.msk.f32.gmra.mxu1 %vm2435_vm3, %v3069_v27  ;;  %v8752_v56 = vld [vmem:[#allocation10_spill] sm:$0xff]  ;;  %v8753_v20 = vmax.f32 %v7330_v33, 0.0  ;;  %v8754_v57 = vmax.f32 %v7292_v26, 0.0  ;;  %v1932_v6 = vmul.f32 %v5493_v19, %v8755_v58  ;;  %v2302_v39 = vsel %vm1833_vm0, 0.0, %v2270_v53  ;;  %v8756_v58 = vld [vmem:[#allocation12_spill] sm:$0xff]  ;;  %vm8776_vm12 = vmmov %vm8767_vm9 }
 0x1d7   : > { %v1931_v24 = vmul.f32 %v5491_v36, %v8752_v56  ;;  %2463 = vst.msk [vmem:[#allocation3 + $0xc8] sm:$0xff] %vm2435_vm3, %v2426_v17  ;;  %v2425_v50 = vmul.f32 %v7079_v2, %v2361_v30  ;;  %v2301_v17 = vsel %vm1832_vm4, 0.0, %v2269_v43  ;;  %v2233_v27 = vmul.f32 %v7406_v22, %v2186_v44  ;;  %v2620_v36 = vld [vmem:[#allocation3 + $0xae] sm:$0xff]  ;;  %v2196_v28 = vpop.permute.xlu1 %2195  ;;  %vm8779_vm13 = vmmov %vm8767_vm9 }
 0x1d8   : > { %v7484_v46 = vadd.f32 %v2300_v51, %v8753_v20  ;;  %v7488_v4 = vadd.f32 %v2299_v7, %v8754_v57  ;;  %v3070_v2 = vld [vmem:[#allocation3 + $0xaf] sm:$0xff]  ;;  %v7500_v7 = vadd.f32 %v2302_v39, %v2032_v61  ;;  %5251 = vmatprep.mubr.msk.f32.mxu0 %vm2435_vm3, %v2620_v36  ;;  %v1971_v54 = vadd.f32 %v7311_v32, %v1932_v6  ;;  %v2191_v20 = vpop.permute.xlu0 %2190  ;;  %vm8782_vm14 = vmmov %vm8767_vm9 }
 0x1d9   : > { %v1970_v33 = vadd.f32 %v7311_v32, %v1931_v24  ;;  %2462 = vst.msk [vmem:[#allocation3 + $0xc0] sm:$0xff] %vm2435_vm3, %v2425_v50  ;;  %5301 = vmatprep.mubr.msk.f32.mxu1 %vm2435_vm3, %v3070_v2  ;;  %v7507_v45 = vadd.f32 %v2301_v17, %v2031_v40  ;;  %v2272_v24 = vadd.f32 %v7429_v31, %v2233_v27  ;;  %v2033_v57 = vmax.f32 %v2001_v25, 0.0  ;;  %vm8785_vm1 = vmmov %vm8767_vm9 }
 0x1da   : > { %v2364_v26 = vmax.f32 %v7484_v46, 0.0  ;;  %v2363_v51 = vmax.f32 %v7488_v4, 0.0  ;;  %v2232_v53 = vmul.f32 %v7406_v22, %v2181_v41  ;;  %v2366_v19 = vmax.f32 %v7500_v7, 0.0  ;;  %v5495_v40 = vpop.eup %5494  ;;  %vm8788_vm15 = vmmov %vm8785_vm1 }
 0x1db   : > { %v2002_v44 = vsel %vm1835_vm6, 0.0, %v1970_v33  ;;  %v2365_v50 = vmax.f32 %v7507_v45, 0.0  ;;  %v2304_v41 = vsel %vm1835_vm6, 0.0, %v2272_v24  ;;  %v1933_v6 = vmul.f32 %v5495_v40, %v8756_v58  ;;  %vm8791_vm2 = vmmov %vm8785_vm1 }
 0x1dc   : > { %v2428_v61 = vmul.f32 %v7209_v1, %v2364_v26  ;;  %v2427_v43 = vmul.f32 %v7151_v8, %v2363_v51  ;;  %v2034_v56 = vmax.f32 %v2002_v44, 0.0  ;;  %v2430_v8 = vmul.f32 %v7276_v63, %v2366_v19  ;;  %vm8793_vm4 = vmmov %vm8785_vm1 }
 0x1dd   : > { %v2271_v1 = vadd.f32 %v7429_v31, %v2232_v53  ;;  %v2621_v39 = vld [vmem:[#allocation3 + $0xb6] sm:$0xff]  ;;  %v2003_v13 = vsel %vm1836_vm7, 0.0, %v1971_v54  ;;  %v2429_v25 = vmul.f32 %v7241_v37, %v2365_v50  ;;  %v2235_v36 = vmul.f32 %v7406_v22, %v2196_v28  ;;  %vm8794_vm0 = vmmov %vm8785_vm1 }
 0x1de   : > { %2465 = vst.msk [vmem:[#allocation3 + $0xd8] sm:$0xff] %vm2435_vm3, %v2428_v61  ;;  %2464 = vst.msk [vmem:[#allocation3 + $0xd0] sm:$0xff] %vm2435_vm3, %v2427_v43  ;;  %v3071_v17 = vld [vmem:[#allocation3 + $0xb7] sm:$0xff]  ;;  %v7535_v27 = vadd.f32 %v2304_v41, %v2034_v56  ;;  %5252 = vmatmul.mubr.msk.f32.gmra.mxu0 %vm2435_vm3, %v2621_v39  ;;  %v1972_v63 = vadd.f32 %v7311_v32, %v1933_v6  ;;  %v2234_v33 = vmul.f32 %v7406_v22, %v2191_v20 }
 0x1df   : > { %5302 = vmatmul.mubr.msk.f32.gmra.mxu1 %vm2435_vm3, %v3071_v17  ;;  %2467 = vst.msk [vmem:[#allocation3 + $0xe8] sm:$0xff] %vm2435_vm3, %v2430_v8  ;;  %v2303_v2 = vsel %vm1834_vm5, 0.0, %v2271_v1  ;;  %2466 = vst.msk [vmem:[#allocation3 + $0xe0] sm:$0xff] %vm2435_vm3, %v2429_v25  ;;  %v2274_v24 = vadd.f32 %v7429_v31, %v2235_v36  ;;  %v2035_v43 = vmax.f32 %v2003_v13, 0.0  ;;  %v8797_v47 = vmax.f32 %v7438_v55, 0.0 }
 0x1e0   : > { %v2368_v37 = vmax.f32 %v7535_v27, 0.0  ;;  %v7547_v54 = vadd.f32 %v2303_v2, %v2033_v57  ;;  %v2622_v53 = vld [vmem:[#allocation3 + $0xbe] sm:$0xff]  ;;  %v2623_v61 = vld [vmem:[#allocation3 + $0xc6] sm:$0xff]  ;;  %v2004_v32 = vsel %vm1837_vm8, 0.0, %v1972_v63  ;;  %v2273_v62 = vadd.f32 %v7429_v31, %v2234_v33  ;;  %vm8795_vm5 = vmmov %vm8794_vm0 }
 0x1e1   : > { %v3072_v44 = vld [vmem:[#allocation3 + $0xbf] sm:$0xff]  ;;  %5254 = vmatprep.mubr.msk.f32.mxu0 %vm2435_vm3, %v2622_v53  ;;  %v3073_v22 = vld [vmem:[#allocation3 + $0xc7] sm:$0xff]  ;;  %v2036_v28 = vmax.f32 %v2004_v32, 0.0  ;;  %v2306_v41 = vsel %vm1837_vm8, 0.0, %v2274_v24  ;;  %v3502_v32 = vld [vmem:[#allocation3 + $0x10] sm:$0xff] }
 0x1e2   : > { %5304 = vmatprep.mubr.msk.f32.mxu1 %vm2435_vm3, %v3072_v44  ;;  %v2432_v40 = vmul.f32 %v7361_v11, %v2368_v37  ;;  %v2367_v56 = vmax.f32 %v7547_v54, 0.0  ;;  %5255 = vmatmul.mubr.msk.f32.gmra.mxu0 %vm2435_vm3, %v2623_v61  ;;  %v2305_v31 = vsel %vm1836_vm7, 0.0, %v2273_v62  ;;  %v3501_v61 = vld [vmem:[#allocation3 + $0x8] sm:$0xff]  ;;  %v8758_v62 = vmax.f32 %v6748_v60, 0.0  ;;  %v3523_v38 = vld [vmem:[#allocation3 + $0xc0] sm:$0xff]  ;;  %vm8796_vm6 = vmmov %vm8794_vm0 }
 0x1e3   : > { %5305 = vmatmul.mubr.msk.f32.gmra.mxu1 %vm2435_vm3, %v3073_v22  ;;  %v7569_v57 = vadd.f32 %v2306_v41, %v2036_v28  ;;  %v7571_v11 = vadd.f32 %v2305_v31, %v2035_v43  ;;  %v8757_v43 = vmax.f32 %v6716_v15, 0.0  ;;  %v3503_v22 = vld [vmem:[#allocation3 + $0x18] sm:$0xff]  ;;  %v8759_v28 = vmax.f32 %v6738_v49, 0.0  ;;  %v3505_v41 = vld [vmem:[#allocation3 + $0x28] sm:$0xff]  ;;  %v3506_v31 = vld [vmem:[#allocation3 + $0x30] sm:$0xff] }
 0x1e4   : > { %2469 = vst.msk [vmem:[#allocation3 + $0xf8] sm:$0xff] %vm2435_vm3, %v2432_v40  ;;  %v2431_v20 = vmul.f32 %v7321_v52, %v2367_v56  ;;  %v3504_v40 = vld [vmem:[#allocation3 + $0x20] sm:$0xff]  ;;  %v8760_v15 = vmax.f32 %v6792_v5, 0.0  ;;  %v8761_v60 = vmax.f32 %v6783_v21, 0.0  ;;  %v8762_v49 = vmax.f32 %v6826_v35, 0.0  ;;  %vm8798_vm7 = vmmov %vm8794_vm0 }
 0x1e5   : > { %v2624_v58 = vld [vmem:[#allocation3 + $0xce] sm:$0xff]  ;;  %v2625_v6 = vld [vmem:[#allocation3 + $0xd6] sm:$0xff]  ;;  %v2370_v9 = vmax.f32 %v7569_v57, 0.0  ;;  %v2369_v1 = vmax.f32 %v7571_v11, 0.0  ;;  %v8763_v5 = vmax.f32 %v6830_v16, 0.0  ;;  %v8764_v21 = vmax.f32 %v6877_v48, 0.0  ;;  %vm8799_vm8 = vmmov %vm8794_vm0 }
 0x1e6   : > { %v3074_v42 = vld [vmem:[#allocation3 + $0xcf] sm:$0xff]  ;;  %5257 = vmatprep.mubr.msk.f32.mxu0 %vm2435_vm3, %v2624_v58  ;;  %v3075_v8 = vld [vmem:[#allocation3 + $0xd7] sm:$0xff]  ;;  %2468 = vst.msk [vmem:[#allocation3 + $0xf0] sm:$0xff] %vm2435_vm3, %v2431_v20  ;;  %v3076_v39 = vld [vmem:[#allocation3 + $0xdf] sm:$0xff]  ;;  %v8765_v35 = vmax.f32 %v6913_v18, 0.0  ;;  %v8766_v16 = vmax.f32 %v6955_v3, 0.0 }
 0x1e7   : > { %5307 = vmatprep.mubr.msk.f32.mxu1 %vm2435_vm3, %v3074_v42  ;;  %5258 = vmatmul.mubr.msk.f32.gmra.mxu0 %vm2435_vm3, %v2625_v6  ;;  %v2626_v52 = vld [vmem:[#allocation3 + $0xde] sm:$0xff]  ;;  %v2627_v17 = vld [vmem:[#allocation3 + $0xe6] sm:$0xff]  ;;  %v2434_v13 = vmul.f32 %v7417_v29, %v2370_v9  ;;  %v2433_v25 = vmul.f32 %v7387_v23, %v2369_v1  ;;  %v3510_v6 = vld [vmem:[#allocation3 + $0x50] sm:$0xff]  ;;  %v8768_v48 = vmax.f32 %v6992_v12, 0.0 }
 0x1e8   : > { %5308 = vmatmul.mubr.msk.f32.gmra.mxu1 %vm2435_vm3, %v3075_v8  ;;  %5260 = vmatprep.mubr.msk.f32.mxu0 %vm2435_vm3, %v2626_v52  ;;  %v3077_v36 = vld [vmem:[#allocation3 + $0xe7] sm:$0xff]  ;;  %v3507_v20 = vld [vmem:[#allocation3 + $0x38] sm:$0xff]  ;;  %v3514_v12 = vld [vmem:[#allocation3 + $0x70] sm:$0xff] }
 0x1e9   : > { %5310 = vmatprep.mubr.msk.f32.mxu1 %vm2435_vm3, %v3076_v39  ;;  %2471 = vst.msk [vmem:[#allocation3 + $0x108] sm:$0xff] %vm2435_vm3, %v2434_v13  ;;  %2470 = vst.msk [vmem:[#allocation3 + $0x100] sm:$0xff] %vm2435_vm3, %v2433_v25  ;;  %v3508_v58 = vld [vmem:[#allocation3 + $0x40] sm:$0xff]  ;;  %v3509_v42 = vld [vmem:[#allocation3 + $0x48] sm:$0xff] }
 0x1ea   : > { %v3511_v52 = vld [vmem:[#allocation3 + $0x58] sm:$0xff]  ;;  %v3512_v18 = vld [vmem:[#allocation3 + $0x60] sm:$0xff]  ;;  %v3513_v3 = vld [vmem:[#allocation3 + $0x68] sm:$0xff] }
 0x1eb   : > { %5261 = vmatmul.mubr.msk.f32.gmra.mxu0 %vm2435_vm3, %v2627_v17  ;;  %v8769_v17 = vmax.f32 %v7033_v34, 0.0  ;;  %v8771_v25 = vld [vmem:[#allocation24_spill] sm:$0xff]  ;;  %v8774_v34 = vld [vmem:[#allocation25_spill] sm:$0xff] }
 0x1ec   : > { %5311 = vmatmul.mubr.msk.f32.gmra.mxu1 %vm2435_vm3, %v3077_v36  ;;  %v8772_v36 = vmax.f32 %v8771_v25, 0.0  ;;  %v3527_v4 = vld [vmem:[#allocation3 + $0xe0] sm:$0xff] }
 0x1ed   : > { %v2628_v63 = vld [vmem:[#allocation3 + $0xee] sm:$0xff]  ;;  %v2629_v29 = vld [vmem:[#allocation3 + $0xf6] sm:$0xff] }
 0x1ee   : > { %v3078_v2 = vld [vmem:[#allocation3 + $0xef] sm:$0xff]  ;;  %5263 = vmatprep.mubr.msk.f32.mxu0 %vm2435_vm3, %v2628_v63  ;;  %v3079_v23 = vld [vmem:[#allocation3 + $0xf7] sm:$0xff] }
 0x1ef   : > { %5313 = vmatprep.mubr.msk.f32.mxu1 %vm2435_vm3, %v3078_v2  ;;  %5264 = vmatmul.mubr.msk.f32.gmra.mxu0 %vm2435_vm3, %v2629_v29  ;;  %v3529_v45 = vld [vmem:[#allocation3 + $0xf0] sm:$0xff] }
 0x1f0   : > { %5314 = vmatmul.mubr.msk.f32.gmra.mxu1 %vm2435_vm3, %v3079_v23  ;;  %v2630_v33 = vld [vmem:[#allocation3 + $0xfe] sm:$0xff]  ;;  %v2631_v53 = vld [vmem:[#allocation3 + $0x106] sm:$0xff]  ;;  %v8775_v23 = vmax.f32 %v8774_v34, 0.0 }
 0x1f1   : > { %v3080_v24 = vld [vmem:[#allocation3 + $0xff] sm:$0xff]  ;;  %5266 = vmatprep.mubr.msk.f32.mxu0 %vm2435_vm3, %v2630_v33  ;;  %v3081_v44 = vld [vmem:[#allocation3 + $0x107] sm:$0xff] }
 0x1f2   : > { %5316 = vmatprep.mubr.msk.f32.mxu1 %vm2435_vm3, %v3080_v24  ;;  %v3515_v33 = vld [vmem:[#allocation3 + $0x78] sm:$0xff]  ;;  %v3531_v54 = vld [vmem:[#allocation3 + $0x100] sm:$0xff] }
 0x1f3   : > { %5267 = vmatmul.mubr.msk.f32.gmra.mxu0 %vm2435_vm3, %v2631_v53 }
 0x1f4   : > { %5317 = vmatmul.mubr.msk.f32.gmra.mxu1 %vm2435_vm3, %v3081_v44  ;;  %5321 = vmatprep.mubr.msk.f32.mxu0 %vm2435_vm3, %v3501_v61  ;;  %v8777_v44 = vld [vmem:[#allocation26_spill] sm:$0xff] }
 0x1f5   : > { %5371 = vmatprep.mubr.msk.f32.mxu1 %vm2435_vm3, %v8757_v43  ;;  %v8778_v61 = vmax.f32 %v8777_v44, 0.0 }
 0x1f7   : > { %5322 = vmatmul.mubr.msk.f32.vlgmr.msra.gmra.mxu0 %vm2435_vm3, %v3502_v32 }
 0x1f8   : > { %5372 = vmatmul.mubr.msk.f32.vlgmr.msra.gmra.mxu1 %vm2435_vm3, %v8758_v62  ;;  %5324 = vmatprep.mubr.msk.f32.mxu0 %vm2435_vm3, %v3503_v22  ;;  %v3516_v62 = vld [vmem:[#allocation3 + $0x80] sm:$0xff] }
 0x1f9   : > { %5374 = vmatprep.mubr.msk.f32.mxu1 %vm2435_vm3, %v8759_v28  ;;  %v8780_v28 = vld [vmem:[#allocation27_spill] sm:$0xff] }
 0x1fb   : > { %5325 = vmatmul.mubr.msk.f32.gmra.mxu0 %vm2435_vm3, %v3504_v40  ;;  %v8781_v40 = vmax.f32 %v8780_v28, 0.0 }
 0x1fc   : > { %5375 = vmatmul.mubr.msk.f32.gmra.mxu1 %vm2435_vm3, %v8760_v15  ;;  %5327 = vmatprep.mubr.msk.f32.mxu0 %vm2435_vm3, %v3505_v41  ;;  %v3517_v15 = vld [vmem:[#allocation3 + $0x90] sm:$0xff] }
 0x1fd   : > { %5377 = vmatprep.mubr.msk.f32.mxu1 %vm2435_vm3, %v8761_v60 }
 0x1ff   : > { %5328 = vmatmul.mubr.msk.f32.gmra.mxu0 %vm2435_vm3, %v3506_v31 }
 0x200   : > { %5378 = vmatmul.mubr.msk.f32.gmra.mxu1 %vm2435_vm3, %v8762_v49  ;;  %5330 = vmatprep.mubr.msk.f32.mxu0 %vm2435_vm3, %v3507_v20  ;;  %v8783_v49 = vld [vmem:[#allocation28_spill] sm:$0xff] }
 0x201   : > { %5380 = vmatprep.mubr.msk.f32.mxu1 %vm2435_vm3, %v8763_v5  ;;  %v8784_v20 = vmax.f32 %v8783_v49, 0.0 }
 0x203   : > { %5331 = vmatmul.mubr.msk.f32.gmra.mxu0 %vm2435_vm3, %v3508_v58  ;;  %v2474_v8 = vpop.xlane.xlu0 %2473 }
 0x204   : > { %5381 = vmatmul.mubr.msk.f32.gmra.mxu1 %vm2435_vm3, %v8764_v21  ;;  %5333 = vmatprep.mubr.msk.f32.mxu0 %vm2435_vm3, %v3509_v42  ;;  %2568 = vst.msk [vmem:[#allocation4 + $0x8] sm:$0xff] %vm8767_vm9, %v2474_v8  ;;  %v3518_v42 = vld [vmem:[#allocation3 + $0x98] sm:$0xff]  ;;  %vm8800_vm9 = vmmov %vm8794_vm0 }
 0x205   : > { %5383 = vmatprep.mubr.msk.f32.mxu1 %vm2435_vm3, %v8765_v35 }
 0x207   : > { %5334 = vmatmul.mubr.msk.f32.gmra.mxu0 %vm2435_vm3, %v3510_v6  ;;  %v2480_v39 = vpop.xlane.xlu0 %2479 }
 0x208   : > { %5384 = vmatmul.mubr.msk.f32.gmra.mxu1 %vm2435_vm3, %v8766_v16  ;;  %5336 = vmatprep.mubr.msk.f32.mxu0 %vm2435_vm3, %v3511_v52  ;;  %2570 = vst.msk [vmem:[#allocation4 + $0x18] sm:$0xff] %vm8770_vm10, %v2480_v39  ;;  %v2477_v13 = vpop.xlane.xlu1 %2476  ;;  %v8786_v39 = vld [vmem:[#allocation17_spill] sm:$0xff]  ;;  %vm8801_vm10 = vmmov %vm8794_vm0 }
 0x209   : > { %5386 = vmatprep.mubr.msk.f32.mxu1 %vm2435_vm3, %v8768_v48  ;;  %2569 = vst.msk [vmem:[#allocation4 + $0x10] sm:$0xff] %vm8773_vm11, %v2477_v13  ;;  %vm8802_vm11 = vmmov %vm8794_vm0 }
 0x20b   : > { %5337 = vmatmul.mubr.msk.f32.gmra.mxu0 %vm2435_vm3, %v3512_v18  ;;  %v2483_v63 = vpop.xlane.xlu0 %2482  ;;  %v2986_v2 = vld [vmem:[#allocation4 + $0x6] sm:$0xff] }
 0x20c   : > { %5387 = vmatmul.mubr.msk.f32.gmra.mxu1 %vm2435_vm3, %v8769_v17  ;;  %5339 = vmatprep.mubr.msk.f32.mxu0 %vm2435_vm3, %v3513_v3  ;;  %v3437_v29 = vld [vmem:[#allocation4 + $0x7] sm:$0xff]  ;;  %2571 = vst.msk [vmem:[#allocation4 + $0x20] sm:$0xff] %vm8776_vm12, %v2483_v63  ;;  %v2486_v24 = vpop.xlane.xlu1 %2485  ;;  %v8787_v17 = vmax.f32 %v8786_v39, 0.0  ;;  %v3519_v3 = vld [vmem:[#allocation3 + $0xa0] sm:$0xff]  ;;  %vm8803_vm12 = vmmov %vm8794_vm0 }
 0x20d   : > { %5389 = vmatprep.mubr.msk.f32.mxu1 %vm2435_vm3, %v8772_v36  ;;  %v3469_v53 = vadd.f32 %v3437_v29, %v2986_v2  ;;  %2572 = vst.msk [vmem:[#allocation4 + $0x28] sm:$0xff] %vm8779_vm13, %v2486_v24  ;;  %v3888_v43 = vld [vmem:[#allocation4 + $0x8] sm:$0xff]  ;;  %v8789_v2 = vld [vmem:[#allocation14_spill] sm:$0xff]  ;;  %vm8804_vm13 = vmmov %vm8794_vm0 }
 0x20e   : > { %v8790_v29 = vmax.f32 %v8789_v2, 0.0  ;;  %v3526_v2 = vld [vmem:[#allocation3 + $0xd8] sm:$0xff] }
 0x20f   : > { %5340 = vmatmul.mubr.msk.f32.gmra.mxu0 %vm2435_vm3, %v3514_v12  ;;  %v3920_v32 = vadd.f32 %v3888_v43, %v3469_v53  ;;  %v2489_v22 = vpop.xlane.xlu0 %2488  ;;  %v3890_v52 = vld [vmem:[#allocation4 + $0x18] sm:$0xff] }
 0x210   : > { %5390 = vmatmul.mubr.msk.f32.gmra.mxu1 %vm2435_vm3, %v8775_v23  ;;  %5342 = vmatprep.mubr.msk.f32.mxu0 %vm2435_vm3, %v3515_v33  ;;  %2573 = vst.msk [vmem:[#allocation4 + $0x30] sm:$0xff] %vm8782_vm14, %v2489_v22  ;;  %v2492_v41 = vpop.xlane.xlu1 %2491  ;;  %v2987_v60 = vld [vmem:[#allocation4 + $0xe] sm:$0xff]  ;;  %v2988_v58 = vld [vmem:[#allocation4 + $0x16] sm:$0xff]  ;;  %v3521_v22 = vld [vmem:[#allocation3 + $0xb0] sm:$0xff] }
 0x211   : > { %5392 = vmatprep.mubr.msk.f32.mxu1 %vm2435_vm3, %v8778_v61  ;;  %v3438_v31 = vld [vmem:[#allocation4 + $0xf] sm:$0xff]  ;;  %2574 = vst.msk [vmem:[#allocation4 + $0x38] sm:$0xff] %vm8785_vm1, %v2492_v41  ;;  %v3439_v21 = vld [vmem:[#allocation4 + $0x17] sm:$0xff]  ;;  %3955 = vperm.xlu1 %5431, %v3920_v32   ;;  %vm8805_vm14 = vmmov %vm8794_vm0 }
 0x212   : > { %v3470_v5 = vadd.f32 %v3438_v31, %v2987_v60  ;;  %v3889_v35 = vld [vmem:[#allocation4 + $0x10] sm:$0xff]  ;;  %v3471_v6 = vadd.f32 %v3439_v21, %v2988_v58  ;;  %v3520_v53 = vld [vmem:[#allocation3 + $0xa8] sm:$0xff]  ;;  %vm8806_vm1 = vmmov %vm8794_vm0 }
 0x213   : > { %5343 = vmatmul.mubr.msk.f32.gmra.mxu0 %vm2435_vm3, %v3516_v62  ;;  %v2495_v8 = vpop.xlane.xlu0 %2494  ;;  %v2989_v48 = vld [vmem:[#allocation4 + $0x1e] sm:$0xff]  ;;  %v8792_v62 = vmax.f32 %v7346_v10, 0.0 }
 0x214   : > { %5393 = vmatmul.mubr.msk.f32.gmra.mxu1 %vm2435_vm3, %v8781_v40  ;;  %5345 = vmatprep.mubr.msk.f32.mxu0 %vm2435_vm3, %v3517_v15  ;;  %v3921_v16 = vadd.f32 %v3889_v35, %v3470_v5  ;;  %v3440_v18 = vld [vmem:[#allocation4 + $0x1f] sm:$0xff]  ;;  %2575 = vst.msk [vmem:[#allocation4 + $0x40] sm:$0xff] %vm8788_vm15, %v2495_v8  ;;  %v2498_v13 = vpop.xlane.xlu1 %2497  ;;  %v3922_v25 = vadd.f32 %v3890_v52, %v3471_v6  ;;  %v3441_v12 = vld [vmem:[#allocation4 + $0x27] sm:$0xff]  ;;  %vm8807_vm15 = vmmov %vm8794_vm0 }
 0x215   : > { %5395 = vmatprep.mubr.msk.f32.mxu1 %vm2435_vm3, %v8784_v20  ;;  %v2990_v36 = vld [vmem:[#allocation4 + $0x26] sm:$0xff]  ;;  %v3472_v63 = vadd.f32 %v3440_v18, %v2989_v48  ;;  %2576 = vst.msk [vmem:[#allocation4 + $0x48] sm:$0xff] %vm8791_vm2, %v2498_v13  ;;  %v3524_v48 = vld [vmem:[#allocation3 + $0xc8] sm:$0xff]  ;;  %vm8809_vm2 = vmmov %vm8794_vm0 }
 0x216   : > { %v3473_v34 = vadd.f32 %v3441_v12, %v2990_v36  ;;  %v3891_v23 = vld [vmem:[#allocation4 + $0x20] sm:$0xff]  ;;  %3960 = vperm.xlu0 %5430, %v3921_v16   ;;  %3965 = vperm.xlu1 %5431, %v3922_v25   ;;  %v3892_v33 = vld [vmem:[#allocation4 + $0x28] sm:$0xff] }
 0x217   : > { %5346 = vmatmul.mubr.msk.f32.gmra.mxu0 %vm2435_vm3, %v3518_v42  ;;  %v3923_v24 = vadd.f32 %v3891_v23, %v3472_v63  ;;  %v2501_v44 = vpop.xlane.xlu0 %2500  ;;  %v2991_v43 = vld [vmem:[#allocation4 + $0x2e] sm:$0xff] }
 0x218   : > { %5396 = vmatmul.mubr.msk.f32.gmra.mxu1 %vm2435_vm3, %v8787_v17  ;;  %5348 = vmatprep.mubr.msk.f32.mxu0 %vm2435_vm3, %v3519_v3  ;;  %v3924_v61 = vadd.f32 %v3892_v33, %v3473_v34  ;;  %v3442_v32 = vld [vmem:[#allocation4 + $0x2f] sm:$0xff]  ;;  %2577 = vst.msk [vmem:[#allocation4 + $0x50] sm:$0xff] %vm8793_vm4, %v2501_v44  ;;  %v3443_v40 = vld [vmem:[#allocation4 + $0x37] sm:$0xff]  ;;  %v2504_v41 = vpop.xlane.xlu1 %2503  ;;  %vm8810_vm4 = vmmov %vm8794_vm0 }
 0x219   : > { %5398 = vmatprep.mubr.msk.f32.mxu1 %vm2435_vm3, %v8790_v29  ;;  %v2992_v28 = vld [vmem:[#allocation4 + $0x36] sm:$0xff]  ;;  %v3474_v15 = vadd.f32 %v3442_v32, %v2991_v43  ;;  %2578 = vst.msk [vmem:[#allocation4 + $0x58] sm:$0xff] %vm8794_vm0, %v2504_v41  ;;  %v3522_v20 = vld [vmem:[#allocation3 + $0xb8] sm:$0xff] }
 0x21a   : > { %v3475_v60 = vadd.f32 %v3443_v40, %v2992_v28  ;;  %v3893_v31 = vld [vmem:[#allocation4 + $0x30] sm:$0xff]  ;;  %3975 = vperm.xlu0 %5430, %v3924_v61   ;;  %3970 = vperm.xlu1 %5431, %v3923_v24   ;;  %v3894_v10 = vld [vmem:[#allocation4 + $0x38] sm:$0xff] }
 0x21b   : > { %5349 = vmatmul.mubr.msk.f32.gmra.mxu0 %vm2435_vm3, %v3520_v53  ;;  %v3925_v49 = vadd.f32 %v3893_v31, %v3474_v15  ;;  %v2507_v5 = vpop.xlane.xlu0 %2506  ;;  %v2993_v21 = vld [vmem:[#allocation4 + $0x3e] sm:$0xff] }
 0x21c   : > { %5399 = vmatmul.mubr.msk.f32.gmra.mxu1 %vm2435_vm3, %v8792_v62  ;;  %5351 = vmatprep.mubr.msk.f32.mxu0 %vm2435_vm3, %v3521_v22  ;;  %v3926_v58 = vadd.f32 %v3894_v10, %v3475_v60  ;;  %v3444_v42 = vld [vmem:[#allocation4 + $0x3f] sm:$0xff]  ;;  %2579 = vst.msk [vmem:[#allocation4 + $0x60] sm:$0xff] %vm8795_vm5, %v2507_v5  ;;  %v3445_v35 = vld [vmem:[#allocation4 + $0x47] sm:$0xff]  ;;  %v2510_v8 = vpop.xlane.xlu1 %2509  ;;  %vm8811_vm5 = vmmov %vm8794_vm0 }
 0x21d   : > { %5401 = vmatprep.mubr.msk.f32.mxu1 %vm2435_vm3, %v2359_v59  ;;  %v2994_v59 = vld [vmem:[#allocation4 + $0x46] sm:$0xff]  ;;  %v3476_v6 = vadd.f32 %v3444_v42, %v2993_v21  ;;  %2580 = vst.msk [vmem:[#allocation4 + $0x68] sm:$0xff] %vm8796_vm6, %v2510_v8  ;;  %v3528_v62 = vld [vmem:[#allocation3 + $0xe8] sm:$0xff]  ;;  %vm8812_vm6 = vmmov %vm8794_vm0 }
 0x21e   : > { %v3477_v16 = vadd.f32 %v3445_v35, %v2994_v59  ;;  %v3895_v52 = vld [vmem:[#allocation4 + $0x40] sm:$0xff]  ;;  %3985 = vperm.xlu0 %5430, %v3926_v58   ;;  %3980 = vperm.xlu1 %5431, %v3925_v49   ;;  %v3896_v14 = vld [vmem:[#allocation4 + $0x48] sm:$0xff] }
 0x21f   : > { %5352 = vmatmul.mubr.msk.f32.gmra.mxu0 %vm2435_vm3, %v3522_v20  ;;  %v2513_v18 = vpop.xlane.xlu0 %2512  ;;  %v2995_v17 = vld [vmem:[#allocation4 + $0x4e] sm:$0xff] }
 0x220   : > { %5402 = vmatmul.mubr.msk.f32.gmra.mxu1 %vm2435_vm3, %v2360_v0  ;;  %5354 = vmatprep.mubr.msk.f32.mxu0 %vm2435_vm3, %v3523_v38  ;;  %v3927_v0 = vadd.f32 %v3895_v52, %v3476_v6  ;;  %v3928_v39 = vadd.f32 %v3896_v14, %v3477_v16  ;;  %v3446_v3 = vld [vmem:[#allocation4 + $0x4f] sm:$0xff]  ;;  %2581 = vst.msk [vmem:[#allocation4 + $0x70] sm:$0xff] %vm8798_vm7, %v2513_v18  ;;  %v3447_v12 = vld [vmem:[#allocation4 + $0x57] sm:$0xff]  ;;  %vm8813_vm7 = vmmov %vm8794_vm0 }
 0x221   : > { %5404 = vmatprep.mubr.msk.f32.mxu1 %vm2435_vm3, %v2361_v30  ;;  %v3525_v30 = vld [vmem:[#allocation3 + $0xd0] sm:$0xff]  ;;  %v3478_v13 = vadd.f32 %v3446_v3, %v2995_v17  ;;  %v2516_v25 = vpop.xlane.xlu1 %2515  ;;  %v2996_v36 = vld [vmem:[#allocation4 + $0x56] sm:$0xff]  ;;  %v3530_v20 = vld [vmem:[#allocation3 + $0xf8] sm:$0xff] }
 0x222   : > { %v3897_v63 = vld [vmem:[#allocation4 + $0x50] sm:$0xff]  ;;  %2582 = vst.msk [vmem:[#allocation4 + $0x78] sm:$0xff] %vm8799_vm8, %v2516_v25  ;;  %3995 = vperm.xlu0 %5430, %v3928_v39   ;;  %3990 = vperm.xlu1 %5431, %v3927_v0   ;;  %v3479_v55 = vadd.f32 %v3447_v12, %v2996_v36  ;;  %v3898_v23 = vld [vmem:[#allocation4 + $0x58] sm:$0xff]  ;;  %vm8814_vm8 = vmmov %vm8794_vm0 }
 0x223   : > { %5355 = vmatmul.mubr.msk.f32.gmra.mxu0 %vm2435_vm3, %v3524_v48  ;;  %v3929_v29 = vadd.f32 %v3897_v63, %v3478_v13  ;;  %v2997_v33 = vld [vmem:[#allocation4 + $0x5e] sm:$0xff] }
 0x224   : > { %5405 = vmatmul.mubr.msk.f32.gmra.mxu1 %vm2435_vm3, %v8797_v47  ;;  %5357 = vmatprep.mubr.msk.f32.mxu0 %vm2435_vm3, %v3525_v30  ;;  %v2519_v34 = vpop.xlane.xlu0 %2518  ;;  %v3448_v24 = vld [vmem:[#allocation4 + $0x5f] sm:$0xff]  ;;  %v3449_v43 = vld [vmem:[#allocation4 + $0x67] sm:$0xff] }
 0x225   : > { %5407 = vmatprep.mubr.msk.f32.mxu1 %vm2435_vm3, %v2363_v51  ;;  %2583 = vst.msk [vmem:[#allocation4 + $0x80] sm:$0xff] %vm8800_vm9, %v2519_v34  ;;  %v3930_v51 = vadd.f32 %v3898_v23, %v3479_v55  ;;  %v3480_v53 = vadd.f32 %v3448_v24, %v2997_v33  ;;  %v2522_v44 = vpop.xlane.xlu1 %2521  ;;  %v2998_v61 = vld [vmem:[#allocation4 + $0x66] sm:$0xff]  ;;  %v3532_v16 = vld [vmem:[#allocation3 + $0x108] sm:$0xff]  ;;  %vm8815_vm9 = vmmov %vm8794_vm0 }
 0x226   : > { %v3899_v32 = vld [vmem:[#allocation4 + $0x60] sm:$0xff]  ;;  %2584 = vst.msk [vmem:[#allocation4 + $0x90] sm:$0xff] %vm8801_vm10, %v2522_v44  ;;  %4000 = vperm.xlu1 %5431, %v3929_v29   ;;  %v3481_v46 = vadd.f32 %v3449_v43, %v2998_v61  ;;  %v3900_v28 = vld [vmem:[#allocation4 + $0x68] sm:$0xff] }
 0x227   : > { %5358 = vmatmul.mubr.msk.f32.gmra.mxu0 %vm2435_vm3, %v3526_v2  ;;  %4005 = vperm.xlu0 %5430, %v3930_v51   ;;  %v2999_v40 = vld [vmem:[#allocation4 + $0x6e] sm:$0xff] }
 0x228   : > { %5408 = vmatmul.mubr.msk.f32.gmra.mxu1 %vm2435_vm3, %v2364_v26  ;;  %5360 = vmatprep.mubr.msk.f32.mxu0 %vm2435_vm3, %v3527_v4  ;;  %v3931_v26 = vadd.f32 %v3899_v32, %v3480_v53  ;;  %v2525_v22 = vpop.xlane.xlu0 %2524  ;;  %v3450_v15 = vld [vmem:[#allocation4 + $0x6f] sm:$0xff] }
 0x229   : > { %5410 = vmatprep.mubr.msk.f32.mxu1 %vm2435_vm3, %v2365_v50  ;;  %2585 = vst.msk [vmem:[#allocation4 + $0x98] sm:$0xff] %vm8802_vm11, %v2525_v22  ;;  %v3932_v50 = vadd.f32 %v3900_v28, %v3481_v46  ;;  %v3482_v41 = vadd.f32 %v3450_v15, %v2999_v40  ;;  %v3000_v31 = vld [vmem:[#allocation4 + $0x76] sm:$0xff] }
 0x22a   : > { %v3451_v10 = vld [vmem:[#allocation4 + $0x77] sm:$0xff]  ;;  %4010 = vperm.xlu1 %5431, %v3931_v26  }
 0x22b   : > { %5361 = vmatmul.mubr.msk.f32.gmra.mxu0 %vm2435_vm3, %v3528_v62  ;;  %v2528_v60 = vpop.xlane.xlu1 %2527  ;;  %v3901_v49 = vld [vmem:[#allocation4 + $0x70] sm:$0xff]  ;;  %4015 = vperm.xlu0 %5430, %v3932_v50   ;;  %v3483_v7 = vadd.f32 %v3451_v10, %v3000_v31  ;;  %v3902_v5 = vld [vmem:[#allocation4 + $0x78] sm:$0xff] }
 0x22c   : > { %5411 = vmatmul.mubr.msk.f32.gmra.mxu1 %vm2435_vm3, %v2366_v19  ;;  %5363 = vmatprep.mubr.msk.f32.mxu0 %vm2435_vm3, %v3529_v45  ;;  %2586 = vst.msk [vmem:[#allocation4 + $0xa0] sm:$0xff] %vm8803_vm12, %v2528_v60  ;;  %v3933_v19 = vadd.f32 %v3901_v49, %v3482_v41  ;;  %v3001_v58 = vld [vmem:[#allocation4 + $0x7e] sm:$0xff] }
 0x22d   : > { %5413 = vmatprep.mubr.msk.f32.mxu1 %vm2435_vm3, %v2367_v56  ;;  %v3452_v21 = vld [vmem:[#allocation4 + $0x7f] sm:$0xff]  ;;  %v2531_v56 = vpop.xlane.xlu0 %2530  ;;  %v3934_v42 = vadd.f32 %v3902_v5, %v3483_v7  ;;  %v3002_v35 = vld [vmem:[#allocation4 + $0x8e] sm:$0xff] }
 0x22e   : > { %v3484_v38 = vadd.f32 %v3452_v21, %v3001_v58  ;;  %2587 = vst.msk [vmem:[#allocation4 + $0xa8] sm:$0xff] %vm8804_vm13, %v2531_v56  ;;  %v3453_v6 = vld [vmem:[#allocation4 + $0x8f] sm:$0xff]  ;;  %v3903_v8 = vld [vmem:[#allocation4 + $0x80] sm:$0xff]  ;;  %4020 = vperm.xlu1 %5431, %v3933_v19  }
 0x22f   : > { %5364 = vmatmul.mubr.msk.f32.gmra.mxu0 %vm2435_vm3, %v3530_v20  ;;  %v2534_v59 = vpop.xlane.xlu1 %2533  ;;  %4025 = vperm.xlu0 %5430, %v3934_v42   ;;  %v3485_v27 = vadd.f32 %v3453_v6, %v3002_v35  ;;  %v3904_v52 = vld [vmem:[#allocation4 + $0x90] sm:$0xff] }
 0x230   : > { %5414 = vmatmul.mubr.msk.f32.gmra.mxu1 %vm2435_vm3, %v2368_v37  ;;  %5366 = vmatprep.mubr.msk.f32.mxu0 %vm2435_vm3, %v3531_v54  ;;  %2588 = vst.msk [vmem:[#allocation4 + $0xb0] sm:$0xff] %vm8805_vm14, %v2534_v59  ;;  %v3935_v37 = vadd.f32 %v3903_v8, %v3484_v38  ;;  %v3003_v14 = vld [vmem:[#allocation4 + $0x96] sm:$0xff] }
 0x231   : > { %5416 = vmatprep.mubr.msk.f32.mxu1 %vm2435_vm3, %v2369_v1  ;;  %v3454_v0 = vld [vmem:[#allocation4 + $0x97] sm:$0xff]  ;;  %v2537_v11 = vpop.xlane.xlu0 %2536  ;;  %v3936_v1 = vadd.f32 %v3904_v52, %v3485_v27 }
 0x232   : > { %v3486_v48 = vadd.f32 %v3454_v0, %v3003_v14  ;;  %2589 = vst.msk [vmem:[#allocation4 + $0xb8] sm:$0xff] %vm8806_vm1, %v2537_v11  ;;  %v3905_v3 = vld [vmem:[#allocation4 + $0x98] sm:$0xff]  ;;  %4030 = vperm.xlu1 %5431, %v3935_v37  }
 0x233   : > { %5367 = vmatmul.mubr.msk.f32.gmra.mxu0 %vm2435_vm3, %v3532_v16  ;;  %v2540_v18 = vpop.xlane.xlu1 %2539  ;;  %v3004_v39 = vld [vmem:[#allocation4 + $0x9e] sm:$0xff]  ;;  %4035 = vperm.xlu0 %5430, %v3936_v1  }
 0x234   : > { %5417 = vmatmul.mubr.msk.f32.gmra.mxu1 %vm2435_vm3, %v2370_v9  ;;  %v3455_v17 = vld [vmem:[#allocation4 + $0x9f] sm:$0xff]  ;;  %2590 = vst.msk [vmem:[#allocation4 + $0xc0] sm:$0xff] %vm8807_vm15, %v2540_v18  ;;  %v3937_v30 = vadd.f32 %v3905_v3, %v3486_v48  ;;  %vm8808_vm3 = vmmov %vm8794_vm0 }
 0x235   : > { %v3487_v47 = vadd.f32 %v3455_v17, %v3004_v39  ;;  %v3906_v13 = vld [vmem:[#allocation4 + $0xa0] sm:$0xff]  ;;  %v2543_v25 = vpop.xlane.xlu0 %2542  ;;  %v3907_v29 = vld [vmem:[#allocation4 + $0xa8] sm:$0xff] }
 0x236   : > { %v3005_v36 = vld [vmem:[#allocation4 + $0xa6] sm:$0xff]  ;;  %2591 = vst.msk [vmem:[#allocation4 + $0xc8] sm:$0xff] %vm8808_vm3, %v2543_v25  ;;  %4040 = vperm.xlu1 %5431, %v3937_v30  }
 0x237   : > { %v3938_v57 = vadd.f32 %v3906_v13, %v3487_v47  ;;  %v3456_v9 = vld [vmem:[#allocation4 + $0xa7] sm:$0xff]  ;;  %v3457_v63 = vld [vmem:[#allocation4 + $0xaf] sm:$0xff] }
 0x238   : > { %v3006_v12 = vld [vmem:[#allocation4 + $0xae] sm:$0xff]  ;;  %v3488_v2 = vadd.f32 %v3456_v9, %v3005_v36 }
 0x239   : > { %4045 = vperm.xlu0 %5430, %v3938_v57   ;;  %v3489_v55 = vadd.f32 %v3457_v63, %v3006_v12  ;;  %v3908_v34 = vld [vmem:[#allocation4 + $0xb0] sm:$0xff]  ;;  %v3909_v32 = vld [vmem:[#allocation4 + $0xb8] sm:$0xff] }
 0x23a   : > { %v3939_v23 = vadd.f32 %v3907_v29, %v3488_v2  ;;  %v2546_v33 = vpop.xlane.xlu1 %2545  ;;  %v3007_v4 = vld [vmem:[#allocation4 + $0xb6] sm:$0xff] }
 0x23b   : > { %v3940_v24 = vadd.f32 %v3908_v34, %v3489_v55  ;;  %v3458_v51 = vld [vmem:[#allocation4 + $0xb7] sm:$0xff]  ;;  %2592 = vst.msk [vmem:[#allocation4 + $0xd0] sm:$0xff] %vm8809_vm2, %v2546_v33  ;;  %v3459_v44 = vld [vmem:[#allocation4 + $0xbf] sm:$0xff] }
 0x23c   : > { %v3008_v53 = vld [vmem:[#allocation4 + $0xbe] sm:$0xff]  ;;  %v3490_v61 = vadd.f32 %v3458_v51, %v3007_v4  ;;  %4050 = vperm.xlu1 %5431, %v3939_v23  }
 0x23d   : > { %4055 = vperm.xlu0 %5430, %v3940_v24   ;;  %v3491_v43 = vadd.f32 %v3459_v44, %v3008_v53  ;;  %v3910_v62 = vld [vmem:[#allocation4 + $0xc0] sm:$0xff]  ;;  %v3911_v15 = vld [vmem:[#allocation4 + $0xc8] sm:$0xff] }
 0x23e   : > { %v3941_v46 = vadd.f32 %v3909_v32, %v3490_v61  ;;  %v3009_v22 = vld [vmem:[#allocation4 + $0xc6] sm:$0xff] }
 0x23f   : > { %v3942_v26 = vadd.f32 %v3910_v62, %v3491_v43  ;;  %v3460_v28 = vld [vmem:[#allocation4 + $0xc7] sm:$0xff] }
 0x240   : > { %v3492_v40 = vadd.f32 %v3460_v28, %v3009_v22  ;;  %4060 = vperm.xlu1 %5431, %v3941_v46   ;;  %v2549_v50 = vpop.xlane.xlu0 %2548 }
 0x241   : > { %4065 = vperm.xlu0 %5430, %v3942_v26   ;;  %2593 = vst.msk [vmem:[#allocation4 + $0xd8] sm:$0xff] %vm8810_vm4, %v2549_v50 }
 0x242   : > { %v3943_v45 = vadd.f32 %v3911_v15, %v3492_v40  ;;  %v3010_v41 = vld [vmem:[#allocation4 + $0xce] sm:$0xff] }
 0x243   : > { %v3461_v60 = vld [vmem:[#allocation4 + $0xcf] sm:$0xff] }
 0x244   : > { %v3493_v31 = vadd.f32 %v3461_v60, %v3010_v41  ;;  %4070 = vperm.xlu1 %5431, %v3943_v45   ;;  %v3912_v10 = vld [vmem:[#allocation4 + $0xd0] sm:$0xff]  ;;  %v2552_v49 = vpop.xlane.xlu1 %2551 }
 0x245   : > { %2594 = vst.msk [vmem:[#allocation4 + $0xe0] sm:$0xff] %vm8794_vm0, %v2552_v49 }
 0x246   : > { %v3944_v20 = vadd.f32 %v3912_v10, %v3493_v31 }
 0x248   : > { %4075 = vperm.xlu0 %5430, %v3944_v20   ;;  %v2555_v7 = vpop.xlane.xlu0 %2554  ;;  %v3011_v19 = vld [vmem:[#allocation4 + $0xd6] sm:$0xff] }
 0x249   : > { %2595 = vst.msk [vmem:[#allocation4 + $0xe8] sm:$0xff] %vm8811_vm5, %v2555_v7  ;;  %v3462_v5 = vld [vmem:[#allocation4 + $0xd7] sm:$0xff] }
 0x24a   : > { %v3494_v58 = vadd.f32 %v3462_v5, %v3011_v19  ;;  %v3913_v21 = vld [vmem:[#allocation4 + $0xd8] sm:$0xff] }
 0x24c   : > { %v3945_v54 = vadd.f32 %v3913_v21, %v3494_v58  ;;  %v3012_v56 = vld [vmem:[#allocation4 + $0xde] sm:$0xff] }
 0x24d   : > { %v3463_v42 = vld [vmem:[#allocation4 + $0xdf] sm:$0xff]  ;;  %v2558_v38 = vpop.xlane.xlu1 %2557 }
 0x24e   : > { %v3495_v59 = vadd.f32 %v3463_v42, %v3012_v56  ;;  %2596 = vst.msk [vmem:[#allocation4 + $0xf0] sm:$0xff] %vm8812_vm6, %v2558_v38  ;;  %4080 = vperm.xlu1 %5431, %v3945_v54   ;;  %v3914_v35 = vld [vmem:[#allocation4 + $0xe0] sm:$0xff] }
 0x250   : > { %v3946_v6 = vadd.f32 %v3914_v35, %v3495_v59  ;;  %v3013_v8 = vld [vmem:[#allocation4 + $0xe6] sm:$0xff] }
 0x251   : > { %v3464_v16 = vld [vmem:[#allocation4 + $0xe7] sm:$0xff] }
 0x252   : > { %4085 = vperm.xlu0 %5430, %v3946_v6   ;;  %v3496_v27 = vadd.f32 %v3464_v16, %v3013_v8  ;;  %v3915_v37 = vld [vmem:[#allocation4 + $0xe8] sm:$0xff]  ;;  %v2561_v52 = vpop.xlane.xlu0 %2560 }
 0x253   : > { %2597 = vst.msk [vmem:[#allocation4 + $0xf8] sm:$0xff] %vm8813_vm7, %v2561_v52 }
 0x254   : > { %v3947_v14 = vadd.f32 %v3915_v37, %v3496_v27  ;;  %v7758_v0 = vpop.f32.mrf.mxu0 }
 0x255   : > { %v7760_v11 = vpop.f32.mrf.mxu1  ;;  %v3014_v48 = vld [vmem:[#allocation4 + $0xee] sm:$0xff] }
 0x256   : > { %v2564_v1 = vpop.xlane.xlu1 %2563  ;;  %4090 = vperm.xlu1 %5431, %v3947_v14   ;;  %v3465_v18 = vld [vmem:[#allocation4 + $0xef] sm:$0xff]  ;;  %v7763_v17 = vpop.f32.mrf.mxu0 }
 0x257   : > { %2598 = vst.msk [vmem:[#allocation4 + $0x100] sm:$0xff] %vm8814_vm8, %v2564_v1  ;;  %v3497_v39 = vadd.f32 %v3465_v18, %v3014_v48  ;;  %v7765_v3 = vpop.f32.mrf.mxu1  ;;  %v3916_v47 = vld [vmem:[#allocation4 + $0xf0] sm:$0xff] }
 0x259   : > { %v3948_v30 = vadd.f32 %v3916_v47, %v3497_v39  ;;  %v7767_v13 = vpop.f32.mrf.mxu0  ;;  %v2567_v57 = vpop.xlane.xlu0 %2566 }
 0x25a   : > { %v7769_v25 = vpop.f32.mrf.mxu1  ;;  %2599 = vst.msk [vmem:[#allocation4 + $0x108] sm:$0xff] %vm8815_vm9, %v2567_v57  ;;  %v3015_v12 = vld [vmem:[#allocation4 + $0xf6] sm:$0xff] }
 0x25b   : > { %4095 = vperm.xlu0 %5430, %v3948_v30   ;;  %v7772_v36 = vpop.f32.mrf.mxu0  ;;  %v3466_v63 = vld [vmem:[#allocation4 + $0xf7] sm:$0xff] }
 0x25c   : > { %v7774_v9 = vpop.f32.mrf.mxu1  ;;  %v3498_v2 = vadd.f32 %v3466_v63, %v3015_v12  ;;  %v3917_v34 = vld [vmem:[#allocation4 + $0xf8] sm:$0xff] }
 0x25d   : > { %v7776_v55 = vpop.f32.mrf.mxu0 }
 0x25e   : > { %v7778_v29 = vpop.f32.mrf.mxu1  ;;  %v3016_v23 = vld [vmem:[#allocation4 + $0xfe] sm:$0xff]  ;;  %v3949_v24 = vadd.f32 %v3917_v34, %v3498_v2 }
 0x25f   : > { %v3467_v33 = vld [vmem:[#allocation4 + $0xff] sm:$0xff]  ;;  %v7780_v51 = vpop.f32.mrf.mxu0 }
 0x260   : > { %v3499_v4 = vadd.f32 %v3467_v33, %v3016_v23  ;;  %v7782_v53 = vpop.f32.mrf.mxu1  ;;  %v3918_v44 = vld [vmem:[#allocation4 + $0x100] sm:$0xff]  ;;  %4100 = vperm.xlu1 %5431, %v3949_v24  }
 0x261   : > { %v7784_v43 = vpop.f32.mrf.mxu0  ;;  %v3017_v62 = vld [vmem:[#allocation4 + $0x106] sm:$0xff] }
 0x262   : > { %v3950_v61 = vadd.f32 %v3918_v44, %v3499_v4  ;;  %v7786_v32 = vpop.f32.mrf.mxu1  ;;  %v3468_v46 = vld [vmem:[#allocation4 + $0x107] sm:$0xff]  ;;  %v7821_v4 = vld [vmem:[%s8573_s8] ss:$0 sm:$0xff] }
 0x263   : > { %v3500_v26 = vadd.f32 %v3468_v46, %v3017_v62  ;;  %v3919_v22 = vld [vmem:[#allocation4 + $0x108] sm:$0xff]  ;;  %v7788_v40 = vpop.f32.mrf.mxu0 }
 0x264   : > { %4105 = vperm.xlu0 %5430, %v3950_v61   ;;  %v7790_v15 = vpop.f32.mrf.mxu1 }
 0x265   : > { %v3951_v28 = vadd.f32 %v3919_v22, %v3500_v26 }
 0x267   : > { %4110 = vperm.xlu1 %5431, %v3951_v28  }
 0x269   : > { %v7792_v45 = vpop.f32.mrf.mxu0 }
 0x26a   : > { %v7794_v50 = vpop.f32.mrf.mxu1 }
 0x26b   : > { %v2835_v41 = vpop.f32.mrf.mxu0 }
 0x26c   : > { %v3286_v60 = vpop.f32.mrf.mxu1 }
 0x26d   : > { %v7796_v31 = vadd.f32 %v3286_v60, %v2835_v41 }
 0x270   : > { %v5238_v10 = vpop.f32.mrf.mxu0 }
 0x271   : > { %v5288_v49 = vpop.f32.mrf.mxu1 }
 0x272   : > { %v7798_v20 = vadd.f32 %v5288_v49, %v5238_v10  ;;  %v2845_v7 = vpop.f32.mrf.mxu0 }
 0x273   : > { %v3296_v19 = vpop.f32.mrf.mxu1 }
 0x274   : > { %v7800_v5 = vadd.f32 %v3296_v19, %v2845_v7 }
 0x278   : > { %v5241_v58 = vpop.f32.mrf.mxu0 }
 0x279   : > { %v5291_v21 = vpop.f32.mrf.mxu1 }
 0x27a   : > { %v7802_v54 = vadd.f32 %v5291_v21, %v5241_v58  ;;  %v2855_v56 = vpop.f32.mrf.mxu0 }
 0x27b   : > { %v3306_v42 = vpop.f32.mrf.mxu1 }
 0x27c   : > { %v7804_v38 = vadd.f32 %v3306_v42, %v2855_v56 }
 0x281   : > { %v5244_v59 = vpop.f32.mrf.mxu0 }
 0x282   : > { %v5294_v35 = vpop.f32.mrf.mxu1 }
 0x283   : > { %v7806_v6 = vadd.f32 %v5294_v35, %v5244_v59  ;;  %v2865_v8 = vpop.f32.mrf.mxu0 }
 0x284   : > { %v3316_v16 = vpop.f32.mrf.mxu1 }
 0x285   : > { %v7808_v27 = vadd.f32 %v3316_v16, %v2865_v8 }
 0x28b   : > { %v5247_v37 = vpop.f32.mrf.mxu0 }
 0x28c   : > { %v5297_v52 = vpop.f32.mrf.mxu1  ;;  %v3956_v39 = vpop.permute.xlu1 %3955 }
 0x28d   : > { %v7810_v14 = vadd.f32 %v5297_v52, %v5247_v37  ;;  %v2875_v1 = vpop.f32.mrf.mxu0  ;;  %v7824_v62 = vadd.f32 %v7821_v4, %v3956_v39  ;;  %v7857_v39 = vadd.f32 %v7760_v11, %v7758_v0  ;;  %v7874_v0 = vadd.f32 %v7765_v3, %v7763_v17 }
 0x28e   : > { %v3326_v48 = vpop.f32.mrf.mxu1 }
 0x28f   : > { %v7812_v18 = vadd.f32 %v3326_v48, %v2875_v1  ;;  %vm4151_vm10 = vcmp.eq.f32.partialorder %v7824_v62, 0.0 }
 0x290   : > { %v4183_v16 = vsel %vm4151_vm10, 1.0, %v7824_v62 }
 0x291   : > { %8816 = vst [vmem:[#allocation30_spill] sm:$0xff] %v7812_v18  ;;  %v3966_v47 = vpop.permute.xlu1 %3965  ;;  %v3961_v30 = vpop.permute.xlu0 %3960  ;;  %5496 = vrcp.f32 %v4183_v16 }
 0x292   : > { %v7829_v28 = vadd.f32 %v7821_v4, %v3966_v47  ;;  %v7832_v10 = vadd.f32 %v7821_v4, %v3961_v30 }
 0x294   : > { %vm4153_vm11 = vcmp.eq.f32.partialorder %v7829_v28, 0.0  ;;  %vm4152_vm12 = vcmp.eq.f32.partialorder %v7832_v10, 0.0 }
 0x295   : > { %v5250_v57 = vpop.f32.mrf.mxu0  ;;  %v3971_v33 = vpop.permute.xlu1 %3970  ;;  %v4184_v11 = vsel %vm4152_vm12, 1.0, %v7832_v10 }
 0x296   : > { %v5300_v12 = vpop.f32.mrf.mxu1  ;;  %v3976_v24 = vpop.permute.xlu0 %3975  ;;  %v7838_v58 = vadd.f32 %v7821_v4, %v3971_v33 }
 0x297   : > { %v7814_v63 = vadd.f32 %v5300_v12, %v5250_v57  ;;  %v2885_v2 = vpop.f32.mrf.mxu0  ;;  %v7841_v42 = vadd.f32 %v7821_v4, %v3976_v24  ;;  %v4185_v12 = vsel %vm4153_vm11, 1.0, %v7829_v28 }
 0x298   : > { %v3336_v34 = vpop.f32.mrf.mxu1  ;;  %vm4154_vm13 = vcmp.eq.f32.partialorder %v7838_v58, 0.0  ;;  %5498 = vrcp.f32 %v4185_v12 }
 0x299   : > { %8817 = vst [vmem:[#allocation7_spill] sm:$0xff] %v7814_v63  ;;  %v7816_v23 = vadd.f32 %v3336_v34, %v2885_v2  ;;  %v3981_v44 = vpop.permute.xlu1 %3980  ;;  %vm4155_vm14 = vcmp.eq.f32.partialorder %v7841_v42, 0.0  ;;  %5500 = vrcp.f32 %v4184_v11 }
 0x29a   : > { %v3986_v61 = vpop.permute.xlu0 %3985  ;;  %v7851_v37 = vadd.f32 %v7821_v4, %v3981_v44 }
 0x29b   : > { %8818 = vst [vmem:[#allocation16_spill] sm:$0xff] %v7816_v23  ;;  %v7861_v47 = vadd.f32 %v7821_v4, %v3986_v61  ;;  %v4186_v61 = vsel %vm4154_vm13, 1.0, %v7838_v58 }
 0x29c   : > { %vm4156_vm1 = vcmp.eq.f32.partialorder %v7851_v37, 0.0  ;;  %5502 = vrcp.f32 %v4186_v61  ;;  %v7929_v61 = vadd.f32 %v7769_v25, %v7767_v13  ;;  %v7943_v13 = vadd.f32 %v7774_v9, %v7772_v36 }
 0x29d   : > { %v3991_v7 = vpop.permute.xlu1 %3990  ;;  %vm4157_vm15 = vcmp.eq.f32.partialorder %v7861_v47, 0.0 }
 0x29e   : > { %v5253_v46 = vpop.f32.mrf.mxu0  ;;  %v3996_v19 = vpop.permute.xlu0 %3995  ;;  %v7868_v2 = vadd.f32 %v7821_v4, %v3991_v7 }
 0x29f   : > { %v5303_v26 = vpop.f32.mrf.mxu1  ;;  %v7880_v33 = vadd.f32 %v7821_v4, %v3996_v19 }
 0x2a0   : > { %v7826_v22 = vadd.f32 %v5303_v26, %v5253_v46  ;;  %v2895_v41 = vpop.f32.mrf.mxu0  ;;  %vm4158_vm3 = vcmp.eq.f32.partialorder %v7868_v2, 0.0 }
 0x2a1   : > { %v3346_v60 = vpop.f32.mrf.mxu1  ;;  %v4001_v1 = vpop.permute.xlu1 %4000  ;;  %vm4159_vm2 = vcmp.eq.f32.partialorder %v7880_v33, 0.0  ;;  %v4190_v11 = vsel %vm4158_vm3, 1.0, %v7868_v2 }
 0x2a2   : > { %8819 = vst [vmem:[#allocation22_spill] sm:$0xff] %v7826_v22  ;;  %v7834_v49 = vadd.f32 %v3346_v60, %v2895_v41  ;;  %v5256_v21 = vpop.f32.mrf.mxu0  ;;  %v4006_v48 = vpop.permute.xlu0 %4005  ;;  %v7887_v46 = vadd.f32 %v7821_v4, %v4001_v1  ;;  %v4187_v41 = vsel %vm4155_vm14, 1.0, %v7841_v42 }
 0x2a3   : > { %v5306_v56 = vpop.f32.mrf.mxu1  ;;  %v7896_v60 = vadd.f32 %v7821_v4, %v4006_v48  ;;  %5504 = vrcp.f32 %v4187_v41  ;;  %v4189_v48 = vsel %vm4157_vm15, 1.0, %v7861_v47 }
 0x2a4   : > { %8820 = vst [vmem:[#allocation23_spill] sm:$0xff] %v7834_v49  ;;  %v7843_v59 = vadd.f32 %v5306_v56, %v5256_v21  ;;  %v2905_v35 = vpop.f32.mrf.mxu0  ;;  %vm4160_vm4 = vcmp.eq.f32.partialorder %v7887_v46, 0.0 }
 0x2a5   : > { %v3356_v8 = vpop.f32.mrf.mxu1  ;;  %v4011_v3 = vpop.permute.xlu1 %4010  ;;  %vm4161_vm0 = vcmp.eq.f32.partialorder %v7896_v60, 0.0 }
 0x2a6   : > { %8821 = vst [vmem:[#allocation19_spill] sm:$0xff] %v7843_v59  ;;  %v7853_v52 = vadd.f32 %v3356_v8, %v2905_v35  ;;  %v4016_v26 = vpop.permute.xlu0 %4015  ;;  %v7902_v56 = vadd.f32 %v7821_v4, %v4011_v3  ;;  %v4188_v35 = vsel %vm4156_vm1, 1.0, %v7851_v37  ;;  %v4191_v3 = vsel %vm4159_vm2, 1.0, %v7880_v33 }
 0x2a7   : > { %v5259_v30 = vpop.f32.mrf.mxu0  ;;  %v7909_v8 = vadd.f32 %v7821_v4, %v4016_v26  ;;  %5506 = vrcp.f32 %v4188_v35  ;;  %v4193_v25 = vsel %vm4161_vm0, 1.0, %v7896_v60 }
 0x2a8   : > { %8822 = vst [vmem:[#allocation18_spill] sm:$0xff] %v7853_v52  ;;  %v5309_v57 = vpop.f32.mrf.mxu1  ;;  %vm4162_vm5 = vcmp.eq.f32.partialorder %v7902_v56, 0.0  ;;  %5508 = vrcp.f32 %v4189_v48 }
 0x2a9   : > { %v7870_v34 = vadd.f32 %v5309_v57, %v5259_v30  ;;  %v2915_v24 = vpop.f32.mrf.mxu0  ;;  %v4021_v57 = vpop.permute.xlu1 %4020  ;;  %vm8612_vm6 = vcmp.eq.f32.partialorder %v7909_v8, 0.0  ;;  %5510 = vrcp.f32 %v4190_v11 }
 0x2aa   : > { %v3366_v44 = vpop.f32.mrf.mxu1  ;;  %v4026_v12 = vpop.permute.xlu0 %4025  ;;  %5512 = vrcp.f32 %v4191_v3 }
 0x2ab   : > { %8823 = vst [vmem:[#allocation32_spill] sm:$0xff] %v7870_v34  ;;  %v7889_v17 = vadd.f32 %v3366_v44, %v2915_v24  ;;  %v5262_v7 = vpop.f32.mrf.mxu0  ;;  %v7922_v24 = vadd.f32 %v7821_v4, %v4021_v57  ;;  %v7925_v44 = vadd.f32 %v7821_v4, %v4026_v12  ;;  %v4195_v57 = vsel %vm8612_vm6, 1.0, %v7909_v8 }
 0x2ac   : > { %v5312_v19 = vpop.f32.mrf.mxu1 }
 0x2ad   : > { %8824 = vst [vmem:[#allocation21_spill] sm:$0xff] %v7889_v17  ;;  %v7899_v21 = vadd.f32 %v5312_v19, %v5262_v7  ;;  %v2925_v16 = vpop.f32.mrf.mxu0  ;;  %v4192_v7 = vsel %vm4160_vm4, 1.0, %v7887_v46  ;;  %vm4164_vm7 = vcmp.eq.f32.partialorder %v7922_v24, 0.0  ;;  %vm8614_vm8 = vcmp.eq.f32.partialorder %v7925_v44, 0.0  ;;  %v4031_v36 = vpop.permute.xlu1 %4030 }
 0x2ae   : > { %v3376_v1 = vpop.f32.mrf.mxu1  ;;  %v4036_v9 = vpop.permute.xlu0 %4035  ;;  %5514 = vrcp.f32 %v4192_v7  ;;  %v4196_v7 = vsel %vm4164_vm7, 1.0, %v7922_v24  ;;  %v8011_v17 = vadd.f32 %v7790_v15, %v7788_v40 }
 0x2af   : > { %8825 = vst [vmem:[#allocation20_spill] sm:$0xff] %v7899_v21  ;;  %v7915_v30 = vadd.f32 %v3376_v1, %v2925_v16  ;;  %v5265_v26 = vpop.f32.mrf.mxu0  ;;  %v4194_v1 = vsel %vm4162_vm5, 1.0, %v7902_v56  ;;  %v7962_v3 = vadd.f32 %v7821_v4, %v4036_v9  ;;  %5516 = vrcp.f32 %v4193_v25 }
 0x2b0   : > { %v5315_v41 = vpop.f32.mrf.mxu1  ;;  %5518 = vrcp.f32 %v4194_v1  ;;  %v7985_v25 = vadd.f32 %v7782_v53, %v7780_v51 }
 0x2b1   : > { %8826 = vst [vmem:[#allocation31_spill] sm:$0xff] %v7915_v30  ;;  %v7939_v19 = vadd.f32 %v5315_v41, %v5265_v26  ;;  %v2935_v35 = vpop.f32.mrf.mxu0  ;;  %v7959_v26 = vadd.f32 %v7821_v4, %v4031_v36  ;;  %8829 = vst [vmem:[#allocation13_spill] sm:$0xff] %v7962_v3  ;;  %v7966_v41 = vadd.f32 %v7778_v29, %v7776_v55  ;;  %v4197_v36 = vsel %vm8614_vm8, 1.0, %v7925_v44  ;;  %v7981_v29 = vld [vmem:[%s8575_s10] ss:$0 sm:$0xff] }
 0x2b2   : > { %v3386_v16 = vpop.f32.mrf.mxu1  ;;  %vm8613_vm6 = vcmp.eq.f32.partialorder %v7962_v3, 0.0  ;;  %5520 = vrcp.f32 %v4195_v57 }
 0x2b3   : > { %8827 = vst [vmem:[#allocation34_spill] sm:$0xff] %v7939_v19  ;;  %v7953_v48 = vadd.f32 %v3386_v16, %v2935_v35  ;;  %v5268_v12 = vpop.f32.mrf.mxu0  ;;  %v5497_v16 = vpop.eup %5496  ;;  %vm8615_vm9 = vcmp.eq.f32.partialorder %v7959_v26, 0.0  ;;  %5522 = vrcp.f32 %v4196_v7  ;;  %v4199_v19 = vsel %vm8613_vm6, 1.0, %v7962_v3 }
 0x2b4   : > { %v5318_v11 = vpop.f32.mrf.mxu1  ;;  %v4198_v1 = vsel %vm8615_vm9, 1.0, %v7959_v26  ;;  %5524 = vrcp.f32 %v4197_v36  ;;  %vm4839_vm9 = vcmask 130048  }
 0x2b5   : > { %8828 = vst [vmem:[#allocation33_spill] sm:$0xff] %v7953_v48  ;;  %v7971_v35 = vadd.f32 %v5318_v11, %v5268_v12  ;;  %v2945_v9 = vpop.f32.mrf.mxu0  ;;  %v4041_v11 = vpop.permute.xlu1 %4040  ;;  %5526 = vrcp.f32 %v4198_v1 }
 0x2b6   : > { %v3396_v55 = vpop.f32.mrf.mxu1  ;;  %v7992_v48 = vpop.eup %5498  ;;  %v7998_v51 = vadd.f32 %v7821_v4, %v4041_v11  ;;  %5528 = vrcp.f32 %v4199_v19 }
 0x2b7   : > { %8830 = vst [vmem:[#allocation6_spill] sm:$0xff] %v7971_v35  ;;  %v7990_v12 = vadd.f32 %v3396_v55, %v2945_v9  ;;  %v4046_v35 = vpop.permute.xlu0 %4045  ;;  %v5323_v30 = vpop.f32.mrf.mxu0  ;;  %v8005_v9 = vadd.f32 %v7786_v32, %v7784_v43 }
 0x2b8   : > { %v5373_v21 = vpop.f32.mrf.mxu1  ;;  %8832 = vst [vmem:[#allocation5_spill] sm:$0xff] %v7998_v51  ;;  %v8001_v53 = vadd.f32 %v7821_v4, %v4046_v35  ;;  %v5501_v57 = vpop.eup %5500  ;;  %v3857_v7 = vadd.f32 %v5323_v30, %v7857_v39  ;;  %v8016_v35 = vld [vmem:[%s8572_s7] ss:$0 sm:$0xff]  ;;  %vm8619_vm6 = vcmp.eq.f32.partialorder %v7998_v51, 0.0 }
 0x2b9   : > { %8831 = vst [vmem:[#allocation29_spill] sm:$0xff] %v7990_v12  ;;  %v4712_v55 = vadd.f32 %v5373_v21, %v7981_v29  ;;  %v5503_v12 = vpop.eup %5502  ;;  %v3697_v43 = vpop.f32.mrf.mxu0  ;;  %v8024_v21 = vadd.f32 %v7794_v50, %v7792_v45  ;;  %v4200_v15 = vsel %vm8619_vm6, 1.0, %v7998_v51 }
 0x2ba   : > { %8833 = vst [vmem:[#allocation9_spill] sm:$0xff] %v8001_v53  ;;  %vm8618_vm8 = vcmp.eq.f32.partialorder %v8001_v53, 0.0  ;;  %v4545_v32 = vpop.f32.mrf.mxu1  ;;  %v8020_v39 = vpop.eup %5504  ;;  %v4248_v40 = vmul.f32 %v5501_v57, %v3857_v7  ;;  %v3856_v11 = vadd.f32 %v3697_v43, %v7874_v0  ;;  %5530 = vrcp.f32 %v4200_v15 }
 0x2bb   : > { %v4051_v30 = vpop.permute.xlu1 %4050  ;;  %v4056_v36 = vpop.permute.xlu0 %4055  ;;  %v4201_v1 = vsel %vm8618_vm8, 1.0, %v8001_v53  ;;  %v4711_v34 = vadd.f32 %v7981_v29, %v4545_v32  ;;  %v4744_v7 = vsel %vm4152_vm12, 0.0, %v4712_v55 }
 0x2bc   : > { %v5326_v52 = vpop.f32.mrf.mxu0  ;;  %v5376_v45 = vpop.f32.mrf.mxu1  ;;  %v8035_v50 = vadd.f32 %v7821_v4, %v4051_v30  ;;  %v4287_v57 = vadd.f32 %v8016_v35, %v4248_v40  ;;  %v4247_v0 = vmul.f32 %v5497_v16, %v3856_v11  ;;  %v8046_v43 = vadd.f32 %v7821_v4, %v4056_v36 }
 0x2bd   : > { %v5507_v19 = vpop.eup %5506  ;;  %v3859_v59 = vadd.f32 %v5326_v52, %v7929_v61  ;;  %v4714_v49 = vadd.f32 %v5376_v45, %v7981_v29  ;;  %5532 = vrcp.f32 %v4201_v1  ;;  %v4743_v36 = vsel %vm4151_vm10, 0.0, %v4711_v34 }
 0x2be   : > { %8834 = vst [vmem:[#allocation8_spill] sm:$0xff] %v8035_v50  ;;  %v8042_v53 = vpop.eup %5508  ;;  %vm4170_vm8 = vcmp.eq.f32.partialorder %v8035_v50, 0.0  ;;  %8835 = vst [vmem:[#allocation11_spill] sm:$0xff] %v8046_v43  ;;  %v3707_v32 = vpop.f32.mrf.mxu0  ;;  %v4319_v55 = vsel %vm4152_vm12, 0.0, %v4287_v57  ;;  %v4286_v15 = vadd.f32 %v8016_v35, %v4247_v0  ;;  %vm4171_vm6 = vcmp.eq.f32.partialorder %v8046_v43, 0.0 }
 0x2bf   : > { %v4555_v30 = vpop.f32.mrf.mxu1  ;;  %v8048_v22 = vpop.eup %5510  ;;  %v4250_v52 = vmul.f32 %v5503_v12, %v3859_v59  ;;  %v4202_v61 = vsel %vm4170_vm8, 1.0, %v8035_v50  ;;  %v4351_v16 = vmax.f32 %v4319_v55, 0.0  ;;  %v4746_v12 = vsel %vm4154_vm13, 0.0, %v4714_v49 }
 0x2c0   : > { %v8055_v40 = vpop.eup %5512  ;;  %v5329_v11 = vpop.f32.mrf.mxu0  ;;  %5534 = vrcp.f32 %v4202_v61  ;;  %v3858_v1 = vadd.f32 %v3707_v32, %v7943_v13  ;;  %v4318_v50 = vsel %vm4151_vm10, 0.0, %v4286_v15  ;;  %v4203_v23 = vsel %vm4171_vm6, 1.0, %v8046_v43 }
 0x2c1   : > { %v5379_v45 = vpop.f32.mrf.mxu1  ;;  %v8061_v10 = vpop.eup %5514  ;;  %v4289_v59 = vadd.f32 %v8016_v35, %v4250_v52  ;;  %v4776_v34 = vadd.f32 %v4744_v7, %v4351_v16  ;;  %v3861_v52 = vadd.f32 %v5329_v11, %v7966_v41  ;;  %v4350_v13 = vmax.f32 %v4318_v50, 0.0 }
 0x2c2   : > { %v4061_v57 = vpop.permute.xlu1 %4060  ;;  %v4066_v0 = vpop.permute.xlu0 %4065  ;;  %v4249_v7 = vmul.f32 %v7992_v48, %v3858_v1  ;;  %v4713_v32 = vadd.f32 %v7981_v29, %v4555_v30  ;;  %v4716_v11 = vadd.f32 %v5379_v45, %v7981_v29  ;;  %5536 = vrcp.f32 %v4203_v23 }
 0x2c3   : > { %v8067_v55 = vpop.eup %5516  ;;  %v3717_v3 = vpop.f32.mrf.mxu0  ;;  %v4321_v62 = vsel %vm4154_vm13, 0.0, %v4289_v59  ;;  %v4808_v61 = vmax.f32 %v4776_v34, 0.0  ;;  %v4252_v15 = vmul.f32 %v5507_v19, %v3861_v52  ;;  %v4775_v50 = vadd.f32 %v4743_v36, %v4350_v13 }
 0x2c4   : > { %v4565_v51 = vpop.f32.mrf.mxu1  ;;  %v8075_v49 = vpop.eup %5518  ;;  %v4353_v16 = vmax.f32 %v4321_v62, 0.0  ;;  %v4288_v58 = vadd.f32 %v8016_v35, %v4249_v7  ;;  %v8095_v59 = vadd.f32 %v7821_v4, %v4061_v57  ;;  %v8098_v48 = vadd.f32 %v7821_v4, %v4066_v0 }
 0x2c5   : > { %v8088_v41 = vpop.eup %5520  ;;  %v5332_v43 = vpop.f32.mrf.mxu0  ;;  %4841 = vst.msk [vmem:[%s8082_s30 + $0x8] sm:$0xff] %vm4839_vm9, %v4808_v61  ;;  %v4291_v45 = vadd.f32 %v8016_v35, %v4252_v15  ;;  %v3860_v1 = vadd.f32 %v3717_v3, %v7985_v25  ;;  %v4807_v57 = vmax.f32 %v4775_v50, 0.0  ;;  %v4748_v50 = vsel %vm4156_vm1, 0.0, %v4716_v11 }
 0x2c6   : > { %v5382_v63 = vpop.f32.mrf.mxu1  ;;  %v8091_v18 = vpop.eup %5522  ;;  %8836 = vst [vmem:[#allocation10_spill] sm:$0xff] %v8095_v59  ;;  %v4778_v19 = vadd.f32 %v4746_v12, %v4353_v16  ;;  %v4320_v0 = vsel %vm4153_vm11, 0.0, %v4288_v58  ;;  %vm4172_vm10 = vcmp.eq.f32.partialorder %v8095_v59, 0.0  ;;  %vm4173_vm12 = vcmp.eq.f32.partialorder %v8098_v48, 0.0 }
 0x2c7   : > { %v8100_v30 = vpop.eup %5524  ;;  %v3727_v36 = vpop.f32.mrf.mxu0  ;;  %v4352_v62 = vmax.f32 %v4320_v0, 0.0  ;;  %v4323_v3 = vsel %vm4156_vm1, 0.0, %v4291_v45  ;;  %v4204_v25 = vsel %vm4172_vm10, 1.0, %v8095_v59  ;;  %4840 = vst.msk [vmem:[%s8082_s30] sm:$0xff] %vm4839_vm9, %v4807_v57  ;;  %v4745_v16 = vsel %vm4153_vm11, 0.0, %v4713_v32 }
 0x2c8   : > { %v4575_v34 = vpop.f32.mrf.mxu1  ;;  %v8106_v52 = vpop.eup %5526  ;;  %v4810_v13 = vmax.f32 %v4778_v19, 0.0  ;;  %v4355_v15 = vmax.f32 %v4323_v3, 0.0  ;;  %v4251_v58 = vmul.f32 %v8020_v39, %v3860_v1  ;;  %v4205_v45 = vsel %vm4173_vm12, 1.0, %v8098_v48 }
 0x2c9   : > { %v4071_v12 = vpop.permute.xlu1 %4070  ;;  %v8112_v23 = vpop.eup %5528  ;;  %v4777_v19 = vadd.f32 %v4745_v16, %v4352_v62  ;;  %v4715_v0 = vadd.f32 %v7981_v29, %v4565_v51  ;;  %v3863_v57 = vadd.f32 %v5332_v43, %v8005_v9  ;;  %5538 = vrcp.f32 %v4204_v25 }
 0x2ca   : > { %v5335_v7 = vpop.f32.mrf.mxu0  ;;  %v5385_v61 = vpop.f32.mrf.mxu1  ;;  %4843 = vst.msk [vmem:[%s8082_s30 + $0x18] sm:$0xff] %vm4839_vm9, %v4810_v13  ;;  %v4780_v3 = vadd.f32 %v4748_v50, %v4355_v15  ;;  %v4290_v37 = vadd.f32 %v8016_v35, %v4251_v58  ;;  %v8137_v39 = vadd.f32 %v7821_v4, %v4071_v12  ;;  %v4718_v51 = vadd.f32 %v5382_v63, %v7981_v29 }
 0x2cb   : > { %v8133_v32 = vpop.eup %5530  ;;  %v4809_v1 = vmax.f32 %v4777_v19, 0.0  ;;  %v4254_v13 = vmul.f32 %v8048_v22, %v3863_v57  ;;  %v3862_v9 = vadd.f32 %v3727_v36, %v8011_v17  ;;  %v4076_v43 = vpop.permute.xlu0 %4075  ;;  %5540 = vrcp.f32 %v4205_v45 }
 0x2cc   : > { %v3737_v59 = vpop.f32.mrf.mxu0  ;;  %v4585_v28 = vpop.f32.mrf.mxu1  ;;  %v4812_v16 = vmax.f32 %v4780_v3, 0.0  ;;  %v4322_v25 = vsel %vm4155_vm14, 0.0, %v4290_v37  ;;  %vm4174_vm11 = vcmp.eq.f32.partialorder %v8137_v39, 0.0  ;;  %v4747_v63 = vsel %vm4155_vm14, 0.0, %v4715_v0 }
 0x2cd   : > { %v8139_v11 = vpop.eup %5532  ;;  %4842 = vst.msk [vmem:[%s8082_s30 + $0x10] sm:$0xff] %vm4839_vm9, %v4809_v1  ;;  %v4354_v22 = vmax.f32 %v4322_v25, 0.0  ;;  %v4293_v17 = vadd.f32 %v8016_v35, %v4254_v13  ;;  %v4253_v36 = vmul.f32 %v8042_v53, %v3862_v9  ;;  %v4206_v58 = vsel %vm4174_vm11, 1.0, %v8137_v39 }
 0x2ce   : > { %v5338_v62 = vpop.f32.mrf.mxu0  ;;  %v5388_v12 = vpop.f32.mrf.mxu1  ;;  %4845 = vst.msk [vmem:[%s8082_s30 + $0x28] sm:$0xff] %vm4839_vm9, %v4812_v16  ;;  %v4717_v19 = vadd.f32 %v7981_v29, %v4575_v34  ;;  %v8162_v45 = vadd.f32 %v7821_v4, %v4076_v43  ;;  %v3865_v57 = vadd.f32 %v5335_v7, %v8024_v21  ;;  %v4750_v53 = vsel %vm4158_vm3, 0.0, %v4718_v51 }
 0x2cf   : > { %v8147_v15 = vpop.eup %5534  ;;  %v4779_v0 = vadd.f32 %v4747_v63, %v4354_v22  ;;  %v4325_v3 = vsel %vm4158_vm3, 0.0, %v4293_v17  ;;  %v4292_v37 = vadd.f32 %v8016_v35, %v4253_v36  ;;  %v4720_v9 = vadd.f32 %v5385_v61, %v7981_v29  ;;  %v4081_v21 = vpop.permute.xlu1 %4080 }
 0x2d0   : > { %v3747_v50 = vpop.f32.mrf.mxu0  ;;  %v4595_v42 = vpop.f32.mrf.mxu1  ;;  %v4357_v13 = vmax.f32 %v4325_v3, 0.0  ;;  %vm4175_vm13 = vcmp.eq.f32.partialorder %v8162_v45, 0.0  ;;  %v4256_v34 = vmul.f32 %v8061_v10, %v3865_v57  ;;  %5542 = vrcp.f32 %v4206_v58 }
 0x2d1   : > { %v4811_v43 = vmax.f32 %v4779_v0, 0.0  ;;  %v4324_v16 = vsel %vm4157_vm15, 0.0, %v4292_v37  ;;  %v4749_v2 = vsel %vm4157_vm15, 0.0, %v4717_v19  ;;  %v8179_v25 = vpop.eup %5536  ;;  %v4207_v10 = vsel %vm4175_vm13, 1.0, %v8162_v45 }
 0x2d2   : > { %v5341_v1 = vpop.f32.mrf.mxu0  ;;  %v5391_v7 = vpop.f32.mrf.mxu1  ;;  %v4782_v22 = vadd.f32 %v4750_v53, %v4357_v13  ;;  %v4356_v63 = vmax.f32 %v4324_v16, 0.0  ;;  %v4295_v61 = vadd.f32 %v8016_v35, %v4256_v34  ;;  %v3864_v36 = vadd.f32 %v3737_v59, %v7796_v31 }
 0x2d3   : > { %4844 = vst.msk [vmem:[%s8082_s30 + $0x20] sm:$0xff] %vm4839_vm9, %v4811_v43  ;;  %v4719_v47 = vadd.f32 %v7981_v29, %v4585_v28  ;;  %v8190_v58 = vadd.f32 %v7821_v4, %v4081_v21  ;;  %v3867_v19 = vadd.f32 %v5338_v62, %v7798_v20  ;;  %v4752_v37 = vsel %vm4160_vm4, 0.0, %v4720_v9  ;;  %v4086_v28 = vpop.permute.xlu0 %4085 }
 0x2d4   : > { %v8177_v51 = vpop.f32.mrf.mxu0  ;;  %v4605_v17 = vpop.f32.mrf.mxu1  ;;  %v4814_v0 = vmax.f32 %v4782_v22, 0.0  ;;  %v4781_v3 = vadd.f32 %v4749_v2, %v4356_v63  ;;  %v4327_v53 = vsel %vm4160_vm4, 0.0, %v4295_v61  ;;  %v4255_v59 = vmul.f32 %v8055_v40, %v3864_v36 }
 0x2d5   : > { %v4359_v31 = vmax.f32 %v4327_v53, 0.0  ;;  %vm4176_vm14 = vcmp.eq.f32.partialorder %v8190_v58, 0.0  ;;  %v4722_v20 = vadd.f32 %v5388_v12, %v7981_v29  ;;  %5544 = vrcp.f32 %v4207_v10 }
 0x2d6   : > { %v8193_v57 = vpop.f32.mrf.mxu0  ;;  %v8199_v13 = vpop.f32.mrf.mxu1  ;;  %4847 = vst.msk [vmem:[%s8082_s30 + $0x38] sm:$0xff] %vm4839_vm9, %v4814_v0  ;;  %v4813_v34 = vmax.f32 %v4781_v3, 0.0  ;;  %v4751_v46 = vsel %vm4159_vm2, 0.0, %v4719_v47  ;;  %v4258_v9 = vmul.f32 %v8075_v49, %v3867_v19  ;;  %v4294_v16 = vadd.f32 %v8016_v35, %v4255_v59 }
 0x2d7   : > { %v8213_v40 = vpop.eup %5538  ;;  %v4784_v43 = vadd.f32 %v4752_v37, %v4359_v31  ;;  %v4208_v12 = vsel %vm4176_vm14, 1.0, %v8190_v58  ;;  %v3866_v2 = vadd.f32 %v3747_v50, %v7800_v5  ;;  %v4721_v49 = vadd.f32 %v7981_v29, %v4595_v42  ;;  %v4091_v31 = vpop.permute.xlu1 %4090 }
 0x2d8   : > { %v8204_v62 = vpop.f32.mrf.mxu0  ;;  %v8211_v21 = vpop.f32.mrf.mxu1  ;;  %4846 = vst.msk [vmem:[%s8082_s30 + $0x30] sm:$0xff] %vm4839_vm9, %v4813_v34  ;;  %v4297_v63 = vadd.f32 %v8016_v35, %v4258_v9  ;;  %v8227_v10 = vadd.f32 %v7821_v4, %v4086_v28  ;;  %v3869_v61 = vadd.f32 %v5341_v1, %v7802_v54  ;;  %v4326_v5 = vsel %vm4159_vm2, 0.0, %v4294_v16 }
 0x2d9   : > { %v8232_v47 = vpop.eup %5540  ;;  %v4816_v19 = vmax.f32 %v4784_v43, 0.0  ;;  %v4754_v50 = vsel %vm4162_vm5, 0.0, %v4722_v20  ;;  %v4257_v0 = vmul.f32 %v8067_v55, %v3866_v2  ;;  %v4358_v42 = vmax.f32 %v4326_v5, 0.0 }
 0x2da   : > { %v8220_v22 = vpop.f32.mrf.mxu0  ;;  %v8230_v36 = vpop.f32.mrf.mxu1  ;;  %5546 = vrcp.f32 %v4208_v12  ;;  %v4329_v54 = vsel %vm4162_vm5, 0.0, %v4297_v63  ;;  %vm4177_vm1 = vcmp.eq.f32.partialorder %v8227_v10, 0.0  ;;  %v4260_v37 = vmul.f32 %v8091_v18, %v3869_v61 }
 0x2db   : > { %4849 = vst.msk [vmem:[%s8082_s30 + $0x48] sm:$0xff] %vm4839_vm9, %v4816_v19  ;;  %v4361_v33 = vmax.f32 %v4329_v54, 0.0  ;;  %v4296_v53 = vadd.f32 %v8016_v35, %v4257_v0  ;;  %v4724_v55 = vadd.f32 %v5391_v7, %v7981_v29  ;;  %v4783_v20 = vadd.f32 %v4751_v46, %v4358_v42 }
 0x2dc   : > { %v8239_v3 = vpop.f32.mrf.mxu0  ;;  %v8244_v1 = vpop.f32.mrf.mxu1  ;;  %v4753_v56 = vsel %vm4161_vm0, 0.0, %v4721_v49  ;;  %v4209_v28 = vsel %vm4177_vm1, 1.0, %v8227_v10  ;;  %v3868_v34 = vadd.f32 %v8177_v51, %v7804_v38  ;;  %v4299_v7 = vadd.f32 %v8016_v35, %v4260_v37 }
 0x2dd   : > { %v4786_v43 = vadd.f32 %v4754_v50, %v4361_v33  ;;  %v4328_v18 = vsel %vm4161_vm0, 0.0, %v4296_v53  ;;  %v4723_v46 = vadd.f32 %v7981_v29, %v4605_v17  ;;  %v8268_v12 = vpop.eup %5542  ;;  %v4815_v2 = vmax.f32 %v4783_v20, 0.0  ;;  %v4096_v33 = vpop.permute.xlu0 %4095 }
 0x2de   : > { %v8251_v59 = vpop.f32.mrf.mxu0  ;;  %v8260_v9 = vpop.f32.mrf.mxu1  ;;  %v4360_v63 = vmax.f32 %v4328_v18, 0.0  ;;  %v4259_v38 = vmul.f32 %v8088_v41, %v3868_v34  ;;  %v8272_v51 = vadd.f32 %v7821_v4, %v4091_v31  ;;  %5548 = vrcp.f32 %v4209_v28 }
 0x2df   : > { %v4818_v60 = vmax.f32 %v4786_v43, 0.0  ;;  %v4331_v61 = vsel %vm4164_vm7, 0.0, %v4299_v7  ;;  %v3871_v17 = vadd.f32 %v8193_v57, %v7806_v6  ;;  %4848 = vst.msk [vmem:[%s8082_s30 + $0x40] sm:$0xff] %vm4839_vm9, %v4815_v2  ;;  %v4756_v42 = vsel %vm4164_vm7, 0.0, %v4724_v55 }
 0x2e0   : > { %v8266_v16 = vpop.f32.mrf.mxu0  ;;  %v8274_v49 = vpop.f32.mrf.mxu1  ;;  %v4785_v5 = vadd.f32 %v4753_v56, %v4360_v63  ;;  %v4363_v50 = vmax.f32 %v4331_v61, 0.0  ;;  %v4298_v41 = vadd.f32 %v8016_v35, %v4259_v38  ;;  %vm4178_vm15 = vcmp.eq.f32.partialorder %v8272_v51, 0.0 }
 0x2e1   : > { %4851 = vst.msk [vmem:[%s8082_s30 + $0x58] sm:$0xff] %vm4839_vm9, %v4818_v60  ;;  %vm8837_vm3 = vcmp.eq.f32.partialorder %v7909_v8, 0.0  ;;  %v4262_v57 = vmul.f32 %v8106_v52, %v3871_v17  ;;  %v3870_v54 = vadd.f32 %v8204_v62, %v7808_v27  ;;  %v4210_v24 = vsel %vm4178_vm15, 1.0, %v8272_v51 }
 0x2e2   : > { %v8280_v19 = vpop.f32.mrf.mxu0  ;;  %v8286_v0 = vpop.f32.mrf.mxu1  ;;  %v4755_v6 = vsel %vm8837_vm3, 0.0, %v4723_v46  ;;  %v4817_v37 = vmax.f32 %v4785_v5, 0.0  ;;  %v4788_v31 = vadd.f32 %v4756_v42, %v4363_v50  ;;  %vm8838_vm2 = vmmov %vm8837_vm3  ;;  %v4726_v62 = vadd.f32 %v8199_v13, %v7981_v29 }
 0x2e3   : > { %v4330_v20 = vsel %vm8838_vm2, 0.0, %v4298_v41  ;;  %v8306_v56 = vpop.eup %5544  ;;  %v4301_v27 = vadd.f32 %v8016_v35, %v4262_v57  ;;  %v4261_v28 = vmul.f32 %v8100_v30, %v3870_v54  ;;  %v4725_v43 = vadd.f32 %v7981_v29, %v8211_v21  ;;  %v8844_v54 = vld [vmem:[#allocation7_spill] sm:$0xff] }
 0x2e4   : > { %v8297_v53 = vpop.f32.mrf.mxu0  ;;  %v8304_v55 = vpop.f32.mrf.mxu1  ;;  %v4362_v52 = vmax.f32 %v4330_v20, 0.0  ;;  %4850 = vst.msk [vmem:[%s8082_s30 + $0x50] sm:$0xff] %vm4839_vm9, %v4817_v37  ;;  %v4820_v8 = vmax.f32 %v4788_v31, 0.0  ;;  %v8319_v18 = vadd.f32 %v7821_v4, %v4096_v33  ;;  %v3873_v7 = vadd.f32 %v8220_v22, %v7810_v14 }
 0x2e5   : > { %5550 = vrcp.f32 %v4210_v24  ;;  %vm8839_vm4 = vcmp.eq.f32.partialorder %v7959_v26, 0.0  ;;  %v4300_v30 = vadd.f32 %v8016_v35, %v4261_v28  ;;  %v4728_v14 = vadd.f32 %v8230_v36, %v7981_v29  ;;  %v4101_v22 = vpop.permute.xlu1 %4100  ;;  %v8845_v24 = vld [vmem:[#allocation5_spill] sm:$0xff]  ;;  %v4106_v28 = vpop.permute.xlu0 %4105 }
 0x2e6   : > { %v8312_v34 = vpop.f32.mrf.mxu0  ;;  %v4787_v46 = vadd.f32 %v4755_v6, %v4362_v52  ;;  %v4333_v13 = vsel %vm8839_vm4, 0.0, %v4301_v27  ;;  %4853 = vst.msk [vmem:[%s8082_s30 + $0x68] sm:$0xff] %vm4839_vm9, %v4820_v8  ;;  %vm4179_vm0 = vcmp.eq.f32.partialorder %v8319_v18, 0.0  ;;  %v4264_v21 = vmul.f32 %v8133_v32, %v3873_v7  ;;  %v8334_v38 = vpop.f32.mrf.mxu1  ;;  %vm8840_vm5 = vmmov %vm8839_vm4  ;;  %v8843_v6 = vld [vmem:[#allocation30_spill] sm:$0xff]  ;;  %v8848_v7 = vld [vmem:[#allocation13_spill] sm:$0xff] }
 0x2e7   : > { %v4365_v63 = vmax.f32 %v4333_v13, 0.0  ;;  %v8336_v60 = vpop.eup %5546  ;;  %v4758_v17 = vsel %vm8840_vm5, 0.0, %v4726_v62  ;;  %vm8841_vm7 = vcmp.eq.f32.partialorder %v7925_v44, 0.0  ;;  %v4211_v36 = vsel %vm4179_vm0, 1.0, %v8319_v18 }
 0x2e8   : > { %v8326_v2 = vpop.f32.mrf.mxu0  ;;  %v4819_v61 = vmax.f32 %v4787_v46, 0.0  ;;  %v4332_v5 = vsel %vm8841_vm7, 0.0, %v4300_v30  ;;  %vm8842_vm3 = vmmov %vm8841_vm7  ;;  %v4303_v42 = vadd.f32 %v8016_v35, %v4264_v21  ;;  %v3872_v26 = vadd.f32 %v8239_v3, %v8843_v6  ;;  %v8365_v27 = vpop.f32.mrf.mxu1 }
 0x2e9   : > { %v4757_v50 = vsel %vm8842_vm3, 0.0, %v4725_v43  ;;  %v4790_v41 = vadd.f32 %v4758_v17, %v4365_v63  ;;  %v4364_v32 = vmax.f32 %v4332_v5, 0.0  ;;  %v4727_v57 = vadd.f32 %v7981_v29, %v8244_v1  ;;  %v8851_v17 = vld [vmem:[#allocation22_spill] sm:$0xff] }
 0x2ea   : > { %4852 = vst.msk [vmem:[%s8082_s30 + $0x60] sm:$0xff] %vm4839_vm9, %v4819_v61  ;;  %v8355_v44 = vadd.f32 %v7821_v4, %v4101_v22  ;;  %v3875_v33 = vadd.f32 %v8251_v59, %v8844_v54  ;;  %v8359_v37 = vpop.f32.mrf.mxu0  ;;  %vm8846_vm2 = vcmp.eq.f32.partialorder %v8845_v24, 0.0  ;;  %v4263_v1 = vmul.f32 %v8112_v23, %v3872_v26  ;;  %v8854_v24 = vld [vmem:[#allocation9_spill] sm:$0xff] }
 0x2eb   : > { %v4822_v31 = vmax.f32 %v4790_v41, 0.0  ;;  %v4789_v20 = vadd.f32 %v4757_v50, %v4364_v32  ;;  %v4335_v52 = vsel %vm8846_vm2, 0.0, %v4303_v42  ;;  %vm8847_vm4 = vmmov %vm8846_vm2  ;;  %v4730_v59 = vadd.f32 %v8260_v9, %v7981_v29  ;;  %v8371_v8 = vpop.eup %5548  ;;  %v8850_v9 = vld [vmem:[#allocation16_spill] sm:$0xff]  ;;  %v8396_v50 = vpop.f32.mrf.mxu1 }
 0x2ec   : > { %v4760_v3 = vsel %vm8847_vm4, 0.0, %v4728_v14  ;;  %v4367_v62 = vmax.f32 %v4335_v52, 0.0  ;;  %vm4180_vm5 = vcmp.eq.f32.partialorder %v8355_v44, 0.0  ;;  %5552 = vrcp.f32 %v4211_v36  ;;  %v8384_v14 = vpop.f32.mrf.mxu0 }
 0x2ed   : > { %4855 = vst.msk [vmem:[%s8082_s30 + $0x78] sm:$0xff] %vm4839_vm9, %v4822_v31  ;;  %v4821_v43 = vmax.f32 %v4789_v20, 0.0  ;;  %vm8849_vm7 = vcmp.eq.f32.partialorder %v8848_v7, 0.0  ;;  %v4266_v13 = vmul.f32 %v8147_v15, %v3875_v33  ;;  %v4302_v23 = vadd.f32 %v8016_v35, %v4263_v1  ;;  %v4111_v33 = vpop.permute.xlu1 %4110 }
 0x2ee   : > { %v4759_v46 = vsel %vm8849_vm7, 0.0, %v4727_v57  ;;  %v4792_v30 = vadd.f32 %v4760_v3, %v4367_v62  ;;  %v4212_v63 = vsel %vm4180_vm5, 1.0, %v8355_v44  ;;  %v3874_v21 = vadd.f32 %v8266_v16, %v8850_v9  ;;  %vm8852_vm3 = vmmov %vm8849_vm7  ;;  %v8856_v62 = vld [vmem:[#allocation23_spill] sm:$0xff] }
 0x2ef   : > { %4854 = vst.msk [vmem:[%s8082_s30 + $0x70] sm:$0xff] %vm4839_vm9, %v4821_v43  ;;  %v4305_v22 = vadd.f32 %v8016_v35, %v4266_v13  ;;  %v4729_v15 = vadd.f32 %v7981_v29, %v8274_v49  ;;  %v8392_v61 = vadd.f32 %v7821_v4, %v4106_v28  ;;  %v3877_v5 = vadd.f32 %v8280_v19, %v8851_v17  ;;  %v8859_v9 = vld [vmem:[#allocation19_spill] sm:$0xff] }
 0x2f0   : > { %v4824_v41 = vmax.f32 %v4792_v30, 0.0  ;;  %v4334_v16 = vsel %vm8852_vm3, 0.0, %v4302_v23  ;;  %v4762_v36 = vsel %vm4170_vm8, 0.0, %v4730_v59  ;;  %v4265_v42 = vmul.f32 %v8139_v11, %v3874_v21  ;;  %v8413_v11 = vpop.f32.mrf.mxu0  ;;  %v4665_v59 = vpop.f32.mrf.mxu1 }
 0x2f1   : > { %v4366_v6 = vmax.f32 %v4334_v16, 0.0  ;;  %5554 = vrcp.f32 %v4212_v63  ;;  %v4337_v49 = vsel %vm4170_vm8, 0.0, %v4305_v22  ;;  %vm4181_vm2 = vcmp.eq.f32.partialorder %v8392_v61, 0.0 }
 0x2f2   : > { %4857 = vst.msk [vmem:[%s8082_s30 + $0x88] sm:$0xff] %vm4839_vm9, %v4824_v41  ;;  %v4369_v19 = vmax.f32 %v4337_v49, 0.0  ;;  %v4304_v26 = vadd.f32 %v8016_v35, %v4265_v42  ;;  %v4213_v57 = vsel %vm4181_vm2, 1.0, %v8392_v61  ;;  %v4268_v54 = vmul.f32 %v8213_v40, %v3877_v5  ;;  %v8415_v31 = vpop.eup %5550  ;;  %v3827_v22 = vpop.f32.mrf.mxu0  ;;  %v8860_v41 = vld [vmem:[#allocation18_spill] sm:$0xff] }
 0x2f3   : > { %v4791_v20 = vadd.f32 %v4759_v46, %v4366_v6  ;;  %vm8855_vm8 = vcmp.eq.f32.partialorder %v8854_v24, 0.0  ;;  %v4732_v3 = vadd.f32 %v8286_v0, %v7981_v29  ;;  %v3876_v1 = vadd.f32 %v8297_v53, %v8856_v62 }
 0x2f4   : > { %v4761_v52 = vsel %vm8855_vm8, 0.0, %v4729_v15  ;;  %v4794_v28 = vadd.f32 %v4762_v36, %v4369_v19  ;;  %vm8857_vm4 = vmmov %vm8855_vm8  ;;  %5556 = vrcp.f32 %v4213_v57  ;;  %v4307_v43 = vadd.f32 %v8016_v35, %v4268_v54 }
 0x2f5   : > { %v4336_v40 = vsel %vm8857_vm4, 0.0, %v4304_v26  ;;  %v4823_v7 = vmax.f32 %v4791_v20, 0.0  ;;  %v4267_v13 = vmul.f32 %v8179_v25, %v3876_v1  ;;  %v8428_v30 = vadd.f32 %v7821_v4, %v4111_v33  ;;  %v5412_v4 = vpop.f32.mrf.mxu1 }
 0x2f6   : > { %v4368_v46 = vmax.f32 %v4336_v40, 0.0  ;;  %v4826_v0 = vmax.f32 %v4794_v28, 0.0  ;;  %v4339_v53 = vsel %vm4172_vm10, 0.0, %v4307_v43  ;;  %v4731_v63 = vadd.f32 %v7981_v29, %v8304_v55  ;;  %v8863_v28 = vld [vmem:[#allocation21_spill] sm:$0xff] }
 0x2f7   : > { %v3879_v21 = vadd.f32 %v8312_v34, %v8859_v9  ;;  %4856 = vst.msk [vmem:[%s8082_s30 + $0x80] sm:$0xff] %vm4839_vm9, %v4823_v7  ;;  %v4371_v17 = vmax.f32 %v4339_v53, 0.0  ;;  %v4306_v25 = vadd.f32 %v8016_v35, %v4267_v13  ;;  %vm4182_vm7 = vcmp.eq.f32.partialorder %v8428_v30, 0.0  ;;  %v8864_v9 = vld [vmem:[#allocation20_spill] sm:$0xff] }
 0x2f8   : > { %v4793_v15 = vadd.f32 %v4761_v52, %v4368_v46  ;;  %4859 = vst.msk [vmem:[%s8082_s30 + $0x98] sm:$0xff] %vm4839_vm9, %v4826_v0  ;;  %v4764_v5 = vsel %vm4172_vm10, 0.0, %v4732_v3  ;;  %v4214_v55 = vsel %vm4182_vm7, 1.0, %v8428_v30  ;;  %v3878_v16 = vadd.f32 %v8326_v2, %v8860_v41  ;;  %v5365_v2 = vpop.f32.mrf.mxu0  ;;  %v4675_v52 = vpop.f32.mrf.mxu1 }
 0x2f9   : > { %v4270_v34 = vmul.f32 %v8268_v12, %v3879_v21  ;;  %v4796_v36 = vadd.f32 %v4764_v5, %v4371_v17  ;;  %v4338_v6 = vsel %vm4171_vm6, 0.0, %v4306_v25  ;;  %v4734_v49 = vadd.f32 %v8334_v38, %v7981_v29  ;;  %v8454_v19 = vpop.eup %5552  ;;  %v8862_v38 = vld [vmem:[#allocation32_spill] sm:$0xff] }
 0x2fa   : > { %v4825_v32 = vmax.f32 %v4793_v15, 0.0  ;;  %v4370_v26 = vmax.f32 %v4338_v6, 0.0  ;;  %v4763_v57 = vsel %vm4171_vm6, 0.0, %v4731_v63  ;;  %v4269_v54 = vmul.f32 %v8232_v47, %v3878_v16  ;;  %v3837_v23 = vpop.f32.mrf.mxu0  ;;  %v5415_v21 = vpop.f32.mrf.mxu1 }
 0x2fb   : > { %v4309_v12 = vadd.f32 %v8016_v35, %v4270_v34  ;;  %v4828_v33 = vmax.f32 %v4796_v36, 0.0  ;;  %5558 = vrcp.f32 %v4214_v55  ;;  %v4733_v20 = vadd.f32 %v7981_v29, %v8365_v27 }
 0x2fc   : > { %4858 = vst.msk [vmem:[%s8082_s30 + $0x90] sm:$0xff] %vm4839_vm9, %v4825_v32  ;;  %v3881_v24 = vadd.f32 %v8359_v37, %v8862_v38  ;;  %v4795_v3 = vadd.f32 %v4763_v57, %v4370_v26  ;;  %v4308_v1 = vadd.f32 %v8016_v35, %v4269_v54  ;;  %v3880_v47 = vadd.f32 %v8384_v14, %v8863_v28  ;;  %v5368_v32 = vpop.f32.mrf.mxu0  ;;  %v4685_v6 = vpop.f32.mrf.mxu1  ;;  %v8866_v57 = vld [vmem:[#allocation34_spill] sm:$0xff] }
 0x2fd   : > { %v4341_v62 = vsel %vm4174_vm11, 0.0, %v4309_v12  ;;  %4861 = vst.msk [vmem:[%s8082_s30 + $0xa8] sm:$0xff] %vm4839_vm9, %v4828_v33  ;;  %v4766_v27 = vsel %vm4174_vm11, 0.0, %v4734_v49  ;;  %v4736_v37 = vadd.f32 %v8396_v50, %v7981_v29  ;;  %v4735_v14 = vadd.f32 %v7981_v29, %v4665_v59  ;;  %v8865_v59 = vld [vmem:[#allocation31_spill] sm:$0xff]  ;;  %v8867_v33 = vld [vmem:[#allocation33_spill] sm:$0xff] }
 0x2fe   : > { %v4373_v40 = vmax.f32 %v4341_v62, 0.0  ;;  %v4272_v43 = vmul.f32 %v8336_v60, %v3881_v24  ;;  %v5555_v7 = vpop.eup %5554  ;;  %v4827_v46 = vmax.f32 %v4795_v3, 0.0  ;;  %v4340_v13 = vsel %vm4173_vm12, 0.0, %v4308_v1 }
 0x2ff   : > { %v4271_v0 = vmul.f32 %v8306_v56, %v3880_v47  ;;  %v4372_v63 = vmax.f32 %v4340_v13, 0.0  ;;  %v3883_v60 = vadd.f32 %v8413_v11, %v8864_v9  ;;  %v4765_v50 = vsel %vm4173_vm12, 0.0, %v4733_v20 }
 0x300   : > { %v4798_v53 = vadd.f32 %v4766_v27, %v4373_v40  ;;  %v4311_v39 = vadd.f32 %v8016_v35, %v4272_v43  ;;  %4860 = vst.msk [vmem:[%s8082_s30 + $0xa0] sm:$0xff] %vm4839_vm9, %v4827_v46  ;;  %v4738_v56 = vadd.f32 %v5412_v4, %v7981_v29  ;;  %v3882_v17 = vadd.f32 %v3827_v22, %v8865_v59  ;;  %v5418_v40 = vpop.f32.mrf.mxu1  ;;  %v8868_v46 = vld [vmem:[#allocation6_spill] sm:$0xff] }
 0x301   : > { %v4310_v15 = vadd.f32 %v8016_v35, %v4271_v0  ;;  %v5557_v25 = vpop.eup %5556  ;;  %v4797_v55 = vadd.f32 %v4765_v50, %v4372_v63  ;;  %v4274_v11 = vmul.f32 %v8415_v31, %v3883_v60  ;;  %v4768_v48 = vsel %vm4176_vm14, 0.0, %v4736_v37 }
 0x302   : > { %v4830_v5 = vmax.f32 %v4798_v53, 0.0  ;;  %v4343_v34 = vsel %vm4176_vm14, 0.0, %v4311_v39  ;;  %v4273_v4 = vmul.f32 %v8371_v8, %v3882_v17  ;;  %v4767_v42 = vsel %vm4175_vm13, 0.0, %v4735_v14  ;;  %v8869_v14 = vld [vmem:[#allocation29_spill] sm:$0xff]  ;;  %v4695_v50 = vpop.f32.mrf.mxu1 }
 0x303   : > { %v4375_v41 = vmax.f32 %v4343_v34, 0.0  ;;  %v4342_v16 = vsel %vm4175_vm13, 0.0, %v4310_v15  ;;  %v4829_v22 = vmax.f32 %v4797_v55, 0.0  ;;  %v4313_v31 = vadd.f32 %v8016_v35, %v4274_v11 }
 0x304   : > { %4863 = vst.msk [vmem:[%s8082_s30 + $0xb8] sm:$0xff] %vm4839_vm9, %v4830_v5  ;;  %v4374_v36 = vmax.f32 %v4342_v16, 0.0  ;;  %v4312_v58 = vadd.f32 %v8016_v35, %v4273_v4  ;;  %v4737_v26 = vadd.f32 %v7981_v29, %v4675_v52  ;;  %v3885_v12 = vadd.f32 %v5365_v2, %v8866_v57  ;;  %v3847_v2 = vpop.f32.mrf.mxu0 }
 0x305   : > { %v4800_v49 = vadd.f32 %v4768_v48, %v4375_v41  ;;  %4862 = vst.msk [vmem:[%s8082_s30 + $0xb0] sm:$0xff] %vm4839_vm9, %v4829_v22  ;;  %v4345_v54 = vsel %vm4178_vm15, 0.0, %v4313_v31  ;;  %v4770_v45 = vsel %vm4178_vm15, 0.0, %v4738_v56  ;;  %v3884_v20 = vadd.f32 %v3837_v23, %v8867_v33 }
 0x306   : > { %v4799_v8 = vadd.f32 %v4767_v42, %v4374_v36  ;;  %v4377_v24 = vmax.f32 %v4345_v54, 0.0  ;;  %v4344_v52 = vsel %vm4177_vm1, 0.0, %v4312_v58  ;;  %v4276_v3 = vmul.f32 %v5555_v7, %v3885_v12 }
 0x307   : > { %v4832_v38 = vmax.f32 %v4800_v49, 0.0  ;;  %v4376_v1 = vmax.f32 %v4344_v52, 0.0  ;;  %v4740_v28 = vadd.f32 %v5415_v21, %v7981_v29  ;;  %v4275_v47 = vmul.f32 %v8454_v19, %v3884_v20 }
 0x308   : > { %v4831_v62 = vmax.f32 %v4799_v8, 0.0  ;;  %v5559_v27 = vpop.eup %5558  ;;  %v4802_v51 = vadd.f32 %v4770_v45, %v4377_v24  ;;  %v4769_v43 = vsel %vm4177_vm1, 0.0, %v4737_v26  ;;  %v4315_v37 = vadd.f32 %v8016_v35, %v4276_v3 }
 0x309   : > { %4865 = vst.msk [vmem:[%s8082_s30 + $0xc8] sm:$0xff] %vm4839_vm9, %v4832_v38  ;;  %v3887_v7 = vadd.f32 %v5368_v32, %v8868_v46  ;;  %v4801_v13 = vadd.f32 %v4769_v43, %v4376_v1  ;;  %v4314_v0 = vadd.f32 %v8016_v35, %v4275_v47  ;;  %v4739_v19 = vadd.f32 %v7981_v29, %v4685_v6 }
 0x30a   : > { %4864 = vst.msk [vmem:[%s8082_s30 + $0xc0] sm:$0xff] %vm4839_vm9, %v4831_v62  ;;  %v3886_v23 = vadd.f32 %v3847_v2, %v8869_v14  ;;  %v4834_v53 = vmax.f32 %v4802_v51, 0.0  ;;  %v4347_v10 = vsel %vm4180_vm5, 0.0, %v4315_v37  ;;  %v4772_v60 = vsel %vm4180_vm5, 0.0, %v4740_v28 }
 0x30b   : > { %v4278_v63 = vmul.f32 %v5559_v27, %v3887_v7  ;;  %v4833_v39 = vmax.f32 %v4801_v13, 0.0  ;;  %v4379_v9 = vmax.f32 %v4347_v10, 0.0  ;;  %v4346_v21 = vsel %vm4179_vm0, 0.0, %v4314_v0 }
 0x30c   : > { %4867 = vst.msk [vmem:[%s8082_s30 + $0xd8] sm:$0xff] %vm4839_vm9, %v4834_v53  ;;  %v4378_v15 = vmax.f32 %v4346_v21, 0.0  ;;  %v4742_v59 = vadd.f32 %v5418_v40, %v7981_v29  ;;  %v4277_v17 = vmul.f32 %v5557_v25, %v3886_v23  ;;  %v4771_v44 = vsel %vm4179_vm0, 0.0, %v4739_v19 }
 0x30d   : > { %v4317_v56 = vadd.f32 %v8016_v35, %v4278_v63  ;;  %4866 = vst.msk [vmem:[%s8082_s30 + $0xd0] sm:$0xff] %vm4839_vm9, %v4833_v39  ;;  %v4804_v5 = vadd.f32 %v4772_v60, %v4379_v9  ;;  %v4741_v41 = vadd.f32 %v7981_v29, %v4695_v50 }
 0x30e   : > { %v4803_v55 = vadd.f32 %v4771_v44, %v4378_v15  ;;  %v4316_v11 = vadd.f32 %v8016_v35, %v4277_v17  ;;  %v4774_v4 = vsel %vm4182_vm7, 0.0, %v4742_v59 }
 0x30f   : > { %v4349_v34 = vsel %vm4182_vm7, 0.0, %v4317_v56  ;;  %v4836_v48 = vmax.f32 %v4804_v5, 0.0  ;;  %v4773_v35 = vsel %vm4181_vm2, 0.0, %v4741_v41 }
 0x310   : > { %v4381_v16 = vmax.f32 %v4349_v34, 0.0  ;;  %v4835_v25 = vmax.f32 %v4803_v55, 0.0  ;;  %v4348_v18 = vsel %vm4181_vm2, 0.0, %v4316_v11 }
 0x311   : > { %4869 = vst.msk [vmem:[%s8082_s30 + $0xe8] sm:$0xff] %vm4839_vm9, %v4836_v48  ;;  %v4380_v22 = vmax.f32 %v4348_v18, 0.0 }
 0x312   : > { %v4806_v32 = vadd.f32 %v4774_v4, %v4381_v16  ;;  %4868 = vst.msk [vmem:[%s8082_s30 + $0xe0] sm:$0xff] %vm4839_vm9, %v4835_v25 }
 0x313   : > { %v4805_v29 = vadd.f32 %v4773_v35, %v4380_v22 }
 0x314   : > { %v4838_v36 = vmax.f32 %v4806_v32, 0.0 }
 0x315   : > { %v4837_v42 = vmax.f32 %v4805_v29, 0.0 }
 0x316   : > { %4871 = vst.msk [vmem:[%s8082_s30 + $0xf8] sm:$0xff] %vm4839_vm9, %v4838_v36 }
 0x317   : > { %4870 = vst.msk [vmem:[%s8082_s30 + $0xf0] sm:$0xff] %vm4839_vm9, %v4837_v42 }
 0x318 PF: > { %s21_s17 = sadd.s32 1, %s5602_s17  }
 0x319   : > { %p18_p4 = scmp.ge.s32.totalorder %s21_s17, 4  }
 0x31b   :  { %20 = sbr.rel (!%p18_p4) target bundleno = 1 (0x1), region = 98 }

</bundles_post_ra>
